<compile_context>
chip_gen: v6e
topology: v6e:2x2x1
jax: 0.10.0
libtpu: 0.0.40
codegen_flags: <defaults>
</compile_context>

<pallas_src>
import functools

import jax
import jax.numpy as jnp
from jax.experimental import pallas as pl
from jax.experimental.pallas import tpu as pltpu

_VMEM_LIMIT = 64 * 1024 * 1024   # explicit scoped-VMEM budget (fits all gens)
_BN_EPS = 1e-5
_NORM_EPS = 1e-12


def _choose_tile(dim, target):
    """Largest tile <= target that divides dim and is a multiple of 128
    (lane-aligned), else the full dim (always legal as a full block)."""
    if dim <= target:
        return dim
    t = (target // 128) * 128
    while t >= 128:
        if dim % t == 0:
            return t
        t -= 128
    return dim


# ----------------------------------------------------------------------------
# Kernels
# ----------------------------------------------------------------------------

def _encoder_kernel(*refs, ema, beta_ema):
    # grid = (view, k_tile); o = relu(x @ W + b), reduced over k tiles.
    if ema:
        (x_ref, wo_ref, bo_ref, wt_ref, bt_ref,
         o_ref, wn_ref, bn_ref, acc_ref) = refs
    else:
        x_ref, wo_ref, bo_ref, o_ref, acc_ref = refs
        wt_ref = bt_ref = wn_ref = bn_ref = None

    k = pl.program_id(1)
    nk = pl.num_programs(1)

    @pl.when(k == 0)
    def _init():
        acc_ref[...] = jnp.zeros_like(acc_ref)

    if ema:
        # Fused EMA: w_t' = beta*w_t + (1-beta)*w_o (f32, VPU) — used for the
        # matmul and written back. Re-writes across the view axis are
        # idempotent (computed from unmutated inputs).
        w = beta_ema * wt_ref[...] + (1.0 - beta_ema) * wo_ref[...]
        b = beta_ema * bt_ref[...] + (1.0 - beta_ema) * bo_ref[...]
        wn_ref[...] = w
        bn_ref[...] = b
    else:
        w = wo_ref[...]
        b = bo_ref[...]

    x = x_ref[0]                                           # (B, tk)
    acc_ref[...] += jnp.dot(x.astype(jnp.bfloat16), w.astype(jnp.bfloat16),
                            preferred_element_type=jnp.float32)

    @pl.when(k == nk - 1)
    def _finalize():
        o_ref[...] = jnp.maximum(acc_ref[...] + b, 0.0)[None].astype(o_ref.dtype)


def _mlp_kernel(*refs, ema, with_loss, beta_ema):
    # grid = (view, h_tile); Linear -> BatchNorm1d(batch stats) -> ReLU ->
    # Linear, accumulating the second matmul over hidden tiles. Optionally
    # fuses the EMA target update and/or the BYOL loss epilogue.
    i = 0
    x_ref = refs[i]; i += 1
    po = refs[i:i + 6]; i += 6                 # online: w1, b1, gamma, beta, w2, b2
    pt = None
    if ema:
        pt = refs[i:i + 6]; i += 6             # target copies
    tgt_ref = None
    if with_loss:
        tgt_ref = refs[i]; i += 1              # target projections (other view)
    o_ref = refs[i]; i += 1
    pn = None
    if ema:
        pn = refs[i:i + 6]; i += 6             # updated target params (outputs)
    acc_ref = refs[i]

    h = pl.program_id(1)
    nh = pl.num_programs(1)

    @pl.when(h == 0)
    def _init():
        acc_ref[...] = jnp.zeros_like(acc_ref)

    if ema:
        params = []
        for o_p, t_p, n_p in zip(po, pt, pn):
            v = beta_ema * t_p[...] + (1.0 - beta_ema) * o_p[...]
            n_p[...] = v                       # idempotent re-write across views
            params.append(v)
        w1, b1, g, bt, w2, b2 = params
    else:
        w1, b1, g, bt, w2, b2 = (p[...] for p in po)

    x = x_ref[0]                                           # (B, D)
    hp = jnp.dot(x.astype(jnp.bfloat16), w1.astype(jnp.bfloat16),
                 preferred_element_type=jnp.float32) + b1
    # BatchNorm1d, training mode: biased variance over the (untiled) batch.
    mean = jnp.mean(hp, axis=0, keepdims=True)
    var = jnp.mean((hp - mean) * (hp - mean), axis=0, keepdims=True)
    hn = (hp - mean) * jax.lax.rsqrt(var + _BN_EPS) * g + bt
    hn = jnp.maximum(hn, 0.0)
    acc_ref[...] += jnp.dot(hn.astype(jnp.bfloat16), w2.astype(jnp.bfloat16),
                            preferred_element_type=jnp.float32)

    @pl.when(h == nh - 1)
    def _finalize():
        out = acc_ref[...] + b2                            # (B, P) f32
        if with_loss:
            def _l2n(v):
                n = jnp.sqrt(jnp.sum(v * v, axis=-1, keepdims=True))
                return v * pl.reciprocal(jnp.maximum(n, _NORM_EPS), approx=True)
            t = tgt_ref[0]                                 # (B, P)
            cos = jnp.sum(_l2n(out) * _l2n(t), axis=-1, keepdims=True)
            loss = 2.0 - 2.0 * cos                         # (B, 1)
            o_ref[...] = jnp.broadcast_to(loss, out.shape)[None].astype(o_ref.dtype)
        else:
            o_ref[...] = out[None].astype(o_ref.dtype)


# ----------------------------------------------------------------------------
# pallas_call wrappers
# ----------------------------------------------------------------------------

def _encoder_call(x_stacked, online, *, target=None, beta_ema=0.99,
                  tk_target=512):
    ema = target is not None
    V, B, K = x_stacked.shape
    w, b = online
    E = w.shape[1]
    tk = _choose_tile(K, tk_target)
    nk = K // tk
    grid = (V, nk)

    x_spec = pl.BlockSpec((1, B, tk), lambda v, k: (v, 0, k))
    w_spec = pl.BlockSpec((tk, E), lambda v, k: (k, 0))
    b_spec = pl.BlockSpec((1, E), lambda v, k: (0, 0))
    o_spec = pl.BlockSpec((1, B, E), lambda v, k: (v, 0, 0))

    in_specs = [x_spec, w_spec, b_spec]
    inputs = [x_stacked, w, b]
    out_specs = [o_spec]
    out_shapes = [jax.ShapeDtypeStruct((V, B, E), jnp.float32)]
    if ema:
        in_specs += [w_spec, b_spec]
        inputs += [target[0], target[1]]
        out_specs += [w_spec, b_spec]
        out_shapes += [jax.ShapeDtypeStruct(w.shape, w.dtype),
                       jax.ShapeDtypeStruct(b.shape, b.dtype)]

    flops = 2 * V * B * K * E
    bytes_accessed = 4 * (int(x_stacked.size)
                          + (3 if ema else 1) * (int(w.size) + int(b.size))
                          + V * B * E)
    sem = ("arbitrary", "arbitrary") if ema else ("parallel", "arbitrary")

    out = pl.pallas_call(
        functools.partial(_encoder_kernel, ema=ema, beta_ema=beta_ema),
        grid=grid,
        in_specs=in_specs,
        out_specs=tuple(out_specs),
        out_shape=tuple(out_shapes),
        scratch_shapes=[pltpu.VMEM((B, E), jnp.float32)],
        compiler_params=pltpu.CompilerParams(
            dimension_semantics=sem, vmem_limit_bytes=_VMEM_LIMIT),
        cost_estimate=pl.CostEstimate(flops=flops, transcendentals=0,
                                      bytes_accessed=bytes_accessed),
    )(*inputs)
    return out if ema else out[0]


def _mlp_call(x_stacked, online, *, target=None, tgt=None, beta_ema=0.99,
              th_target=512):
    ema = target is not None
    with_loss = tgt is not None
    V, B, D = x_stacked.shape
    w1, b1, g, bt, w2, b2 = online
    Hd = w1.shape[1]
    P = w2.shape[1]
    th = _choose_tile(Hd, th_target)
    nh = Hd // th
    grid = (V, nh)

    x_spec = pl.BlockSpec((1, B, D), lambda v, h: (v, 0, 0))
    w1_spec = pl.BlockSpec((D, th), lambda v, h: (0, h))
    h_spec = pl.BlockSpec((1, th), lambda v, h: (0, h))
    w2_spec = pl.BlockSpec((th, P), lambda v, h: (h, 0))
    b2_spec = pl.BlockSpec((1, P), lambda v, h: (0, 0))
    p_specs = [w1_spec, h_spec, h_spec, h_spec, w2_spec, b2_spec]
    o_spec = pl.BlockSpec((1, B, P), lambda v, h: (v, 0, 0))

    in_specs = [x_spec] + p_specs
    inputs = [x_stacked, *online]
    if ema:
        in_specs += p_specs
        inputs += list(target)
    if with_loss:
        # pred(view v) is paired with target-projection(view 1-v).
        in_specs.append(pl.BlockSpec((1, B, P), lambda v, h: (1 - v, 0, 0)))
        inputs.append(tgt)

    out_specs = [o_spec]
    out_shapes = [jax.ShapeDtypeStruct((V, B, P), jnp.float32)]
    if ema:
        out_specs += p_specs
        out_shapes += [jax.ShapeDtypeStruct(p.shape, p.dtype) for p in online]

    flops = 2 * V * B * Hd * (D + P)
    param_bytes = 4 * sum(int(p.size) for p in online)
    bytes_accessed = (4 * int(x_stacked.size) + (3 if ema else 1) * param_bytes
                      + 4 * V * B * P + (4 * int(tgt.size) if with_loss else 0))
    sem = ("arbitrary", "arbitrary") if ema else ("parallel", "arbitrary")

    out = pl.pallas_call(
        functools.partial(_mlp_kernel, ema=ema, with_loss=with_loss,
                          beta_ema=beta_ema),
        grid=grid,
        in_specs=in_specs,
        out_specs=tuple(out_specs),
        out_shape=tuple(out_shapes),
        scratch_shapes=[pltpu.VMEM((B, P), jnp.float32)],
        compiler_params=pltpu.CompilerParams(
            dimension_semantics=sem, vmem_limit_bytes=_VMEM_LIMIT),
        cost_estimate=pl.CostEstimate(flops=flops, transcendentals=V * B * Hd,
                                      bytes_accessed=int(bytes_accessed)),
    )(*inputs)
    return out if ema else out[0]


# ----------------------------------------------------------------------------
# Parameter construction (deterministic)
# ----------------------------------------------------------------------------

def init_linear(key, fan_in, fan_out):
    kw, kb = jax.random.split(key)
    bound = 1.0 / jnp.sqrt(fan_in)
    w = jax.random.uniform(kw, (fan_in, fan_out), jnp.float32, -bound, bound)
    b = jax.random.uniform(kb, (1, fan_out), jnp.float32, -bound, bound)
    return w, b


def init_mlp(key, dim, hidden, proj):
    k1, k2 = jax.random.split(key)
    w1, b1 = init_linear(k1, dim, hidden)
    gamma = jnp.ones((1, hidden), jnp.float32)
    beta = jnp.zeros((1, hidden), jnp.float32)
    w2, b2 = init_linear(k2, hidden, proj)
    return (w1, b1, gamma, beta, w2, b2)


# ----------------------------------------------------------------------------
# BYOL forward
# ----------------------------------------------------------------------------

@functools.partial(jax.jit, static_argnames=("beta_ema",))
def byol_forward(params, image_one, image_two, beta_ema=0.99):
    B = image_one.shape[0]
    # Both augmented views stacked on a leading "view" grid axis; each view
    # keeps its own BatchNorm batch statistics (matches the PyTorch module).
    x = jnp.stack([image_one.reshape(B, -1), image_two.reshape(B, -1)])

    online_enc = params["online_encoder"]
    online_proj = params["online_projector"]
    online_pred = params["online_predictor"]
    target_enc = params["target_encoder"]
    target_proj = params["target_projector"]

    # --- online branch: both views in one call, weights stay VMEM-resident ---
    feat = _encoder_call(x, online_enc)                   # (2, B, EMB)
    proj = _mlp_call(feat, online_proj)                   # (2, B, PROJ)

    # --- target branch (no_grad in PyTorch): EMA fused into the kernels,
    #     the updated target params are used for the forward and returned ---
    tfeat, t_enc_w, t_enc_b = _encoder_call(
        x, online_enc, target=target_enc, beta_ema=beta_ema)
    t_out = _mlp_call(tfeat, online_proj, target=target_proj,
                      beta_ema=beta_ema)
    tproj = t_out[0]                                      # (2, B, PROJ)
    new_target_proj = tuple(t_out[1:7])

    # --- online predictor with the symmetric BYOL loss fused in epilogue ---
    loss_blk = _mlp_call(proj, online_pred, tgt=tproj)    # (2, B, PROJ)
    loss = loss_blk[0, :, 0] + loss_blk[1, :, 0]          # (B,)

    new_target = {"target_encoder": (t_enc_w, t_enc_b),
                  "target_projector": new_target_proj}
    return loss, new_target


# ----------------------------------------------------------------------------
# Main
# ----------------------------------------------------------------------------

if __name__ == "__main__":
    # Small shapes consistent with the module (scaled down from 2048/4096/256).
    B, C, H, W = 2, 4, 16, 16
    EMB, HIDDEN, PROJ = 32, 64, 16
    FLAT = C * H * W

    key = jax.random.PRNGKey(0)
    k_img1, k_img2, k_enc, k_proj, k_pred = jax.random.split(key, 5)

    image_one = jax.random.normal(k_img1, (B, C, H, W), jnp.float32)
    image_two = jax.random.normal(k_img2, (B, C, H, W), jnp.float32)

    online_encoder = init_linear(k_enc, FLAT, EMB)        # synthetic encoder
    online_projector = init_mlp(k_proj, EMB, HIDDEN, PROJ)
    online_predictor = init_mlp(k_pred, PROJ, HIDDEN, PROJ)

    params = {
        "online_encoder": online_encoder,
        "online_projector": online_projector,
        "online_predictor": online_predictor,
        # deepcopy in PyTorch -> identical initial target params
        "target_encoder": jax.tree_util.tree_map(jnp.copy, online_encoder),
        "target_projector": jax.tree_util.tree_map(jnp.copy, online_projector),
    }

    loss, new_target = byol_forward(params, image_one, image_two, beta_ema=0.99)
    loss = jax.block_until_ready(loss)
    assert loss.shape == (B,), loss.shape
    assert bool(jnp.all(jnp.isfinite(loss)))
    for leaf in jax.tree_util.tree_leaves(new_target):
        assert bool(jnp.all(jnp.isfinite(leaf)))
    print("KERNEL_OK")
</pallas_src>

<mosaic_0001>
module attributes {stable_mosaic.version = 11 : i64} {
  func.func @_encoder_kernel(%arg0: i32, %arg1: i32, %arg2: memref<1x2x512xf32, #tpu.memory_space<vmem>>, %arg3: memref<512x32xf32, #tpu.memory_space<vmem>>, %arg4: memref<1x32xf32, #tpu.memory_space<vmem>>, %arg5: memref<1x2x32xf32, #tpu.memory_space<vmem>>, %arg6: memref<2x32xf32, #tpu.memory_space<vmem>>) attributes {dimension_semantics = [#tpu.dimension_semantics<parallel>, #tpu.dimension_semantics<arbitrary>], iteration_bounds = array<i64: 2, 2>, scalar_prefetch = 0 : i64, scratch_operands = 1 : i64, tpu.core_type = #tpu.core_type<tc>, window_params = [{transform_indices = @transform_0, window_bounds = array<i64: 1, 2, 512>}, {transform_indices = @transform_1, window_bounds = array<i64: 512, 32>}, {pipeline_mode = #tpu.pipeline_mode<synchronous>, transform_indices = @transform_2, window_bounds = array<i64: 1, 32>}, {transform_indices = @transform_3, window_bounds = array<i64: 1, 2, 32>}]} {
    %c0_i32 = arith.constant 0 : i32
    %0 = arith.cmpi eq, %arg1, %c0_i32 : i32
    %1 = arith.extui %0 : i1 to i32
    %c0_i32_0 = arith.constant 0 : i32
    %2 = arith.cmpi ne, %1, %c0_i32_0 : i32
    scf.if %2 {
      %cst_12 = arith.constant 0.000000e+00 : f32
      %16 = vector.broadcast %cst_12 : f32 to vector<2x32xf32>
      %c0_13 = arith.constant 0 : index
      %c0_14 = arith.constant 0 : index
      %17 = vector.load %arg6[%c0_13, %c0_14] : memref<2x32xf32, #tpu.memory_space<vmem>>, vector<2x32xf32>
      tpu.vector_store %arg6[%c0_13, %c0_14], %16 {strides = array<i32>} : memref<2x32xf32, #tpu.memory_space<vmem>>, vector<2x32xf32>,
    } else {
    }
    %c0 = arith.constant 0 : index
    %c0_1 = arith.constant 0 : index
    %3 = vector.load %arg3[%c0, %c0_1] : memref<512x32xf32, #tpu.memory_space<vmem>>, vector<512x32xf32>
    %c0_2 = arith.constant 0 : index
    %c0_3 = arith.constant 0 : index
    %4 = vector.load %arg4[%c0_2, %c0_3] : memref<1x32xf32, #tpu.memory_space<vmem>>, vector<1x32xf32>
    %c0_4 = arith.constant 0 : index
    %c0_5 = arith.constant 0 : index
    %c0_6 = arith.constant 0 : index
    %5 = vector.load %arg2[%c0_4, %c0_5, %c0_6] : memref<1x2x512xf32, #tpu.memory_space<vmem>>, vector<1x2x512xf32>
    %6 = vector.shape_cast %5 : vector<1x2x512xf32> to vector<2x512xf32>
    %c0_7 = arith.constant 0 : index
    %c0_8 = arith.constant 0 : index
    %7 = vector.load %arg6[%c0_7, %c0_8] : memref<2x32xf32, #tpu.memory_space<vmem>>, vector<2x32xf32>
    %8 = arith.truncf %6 : vector<2x512xf32> to vector<2x512xbf16>
    %9 = arith.truncf %3 : vector<512x32xf32> to vector<512x32xbf16>
    %cst = arith.constant dense<0.000000e+00> : vector<2x32xf32>
    %10 = tpu.matmul %8, %9, %cst {dimension_numbers = #tpu.dot_dimension_numbers<[1], [0], [0], [1], [0, 0, 1, 1], [], []>} : vector<2x512xbf16>, vector<512x32xbf16>, vector<2x32xf32> -> vector<2x32xf32>
    %11 = arith.addf %7, %10 : vector<2x32xf32>
    %c0_9 = arith.constant 0 : index
    %c0_10 = arith.constant 0 : index
    %12 = vector.load %arg6[%c0_9, %c0_10] : memref<2x32xf32, #tpu.memory_space<vmem>>, vector<2x32xf32>
    tpu.vector_store %arg6[%c0_9, %c0_10], %11 {strides = array<i32>} : memref<2x32xf32, #tpu.memory_space<vmem>>, vector<2x32xf32>,
    %c1_i32 = arith.constant 1 : i32
    %13 = arith.cmpi eq, %arg1, %c1_i32 : i32
    %14 = arith.extui %13 : i1 to i32
    %c0_i32_11 = arith.constant 0 : i32
    %15 = arith.cmpi ne, %14, %c0_i32_11 : i32
    scf.if %15 {
      %c0_12 = arith.constant 0 : index
      %c0_13 = arith.constant 0 : index
      %16 = vector.load %arg6[%c0_12, %c0_13] : memref<2x32xf32, #tpu.memory_space<vmem>>, vector<2x32xf32>
      %17 = vector.broadcast %4 : vector<1x32xf32> to vector<2x32xf32>
      %18 = arith.addf %16, %17 : vector<2x32xf32>
      %cst_14 = arith.constant 0.000000e+00 : f32
      %19 = vector.broadcast %cst_14 : f32 to vector<2x32xf32>
      %20 = arith.maximumf %18, %19 : vector<2x32xf32>
      %21 = vector.shape_cast %20 : vector<2x32xf32> to vector<1x2x32xf32>
      %c0_15 = arith.constant 0 : index
      %c0_16 = arith.constant 0 : index
      %c0_17 = arith.constant 0 : index
      %22 = vector.load %arg5[%c0_15, %c0_16, %c0_17] : memref<1x2x32xf32, #tpu.memory_space<vmem>>, vector<1x2x32xf32>
      tpu.vector_store %arg5[%c0_15, %c0_16, %c0_17], %21 {strides = array<i32>} : memref<1x2x32xf32, #tpu.memory_space<vmem>>, vector<1x2x32xf32>,
    } else {
    }
    return
  }
  func.func @transform_0(%arg0: i32, %arg1: i32) -> (i32, i32, i32) {
    %c0_i32 = arith.constant 0 : i32
    %c0_i32_0 = arith.constant 0 : i32
    return %arg0, %c0_i32, %arg1 : i32, i32, i32
  }
  func.func @transform_1(%arg0: i32, %arg1: i32) -> (i32, i32) {
    %c0_i32 = arith.constant 0 : i32
    %c0_i32_0 = arith.constant 0 : i32
    return %arg1, %c0_i32 : i32, i32
  }
  func.func @transform_2(%arg0: i32, %arg1: i32) -> (i32, i32) {
    %c0_i32 = arith.constant 0 : i32
    %c0_i32_0 = arith.constant 0 : i32
    %c0_i32_1 = arith.constant 0 : i32
    return %c0_i32, %c0_i32_0 : i32, i32
  }
  func.func @transform_3(%arg0: i32, %arg1: i32) -> (i32, i32, i32) {
    %c0_i32 = arith.constant 0 : i32
    %c0_i32_0 = arith.constant 0 : i32
    %c0_i32_1 = arith.constant 0 : i32
    return %arg0, %c0_i32, %c0_i32_0 : i32, i32, i32
  }
}

module attributes {stable_mosaic.version = 11 : i64} {
  func.func @_encoder_kernel(%arg0: i32, %arg1: i32, %arg2: memref<1x2x512xf32, #tpu.memory_space<vmem>>, %arg3: memref<512x32xf32, #tpu.memory_space<vmem>>, %arg4: memref<1x32xf32, #tpu.memory_space<vmem>>, %arg5: memref<512x32xf32, #tpu.memory_space<vmem>>, %arg6: memref<1x32xf32, #tpu.memory_space<vmem>>, %arg7: memref<1x2x32xf32, #tpu.memory_space<vmem>>, %arg8: memref<512x32xf32, #tpu.memory_space<vmem>>, %arg9: memref<1x32xf32, #tpu.memory_space<vmem>>, %arg10: memref<2x32xf32, #tpu.memory_space<vmem>>) attributes {dimension_semantics = [#tpu.dimension_semantics<arbitrary>, #tpu.dimension_semantics<arbitrary>], iteration_bounds = array<i64: 2, 2>, scalar_prefetch = 0 : i64, scratch_operands = 1 : i64, tpu.core_type = #tpu.core_type<tc>, window_params = [{transform_indices = @transform_0, window_bounds = array<i64: 1, 2, 512>}, {transform_indices = @transform_1, window_bounds = array<i64: 512, 32>}, {pipeline_mode = #tpu.pipeline_mode<synchronous>, transform_indices = @transform_2, window_bounds = array<i64: 1, 32>}, {transform_indices = @transform_3, window_bounds = array<i64: 512, 32>}, {pipeline_mode = #tpu.pipeline_mode<synchronous>, transform_indices = @transform_4, window_bounds = array<i64: 1, 32>}, {transform_indices = @transform_5, window_bounds = array<i64: 1, 2, 32>}, {transform_indices = @transform_6, window_bounds = array<i64: 512, 32>}, {pipeline_mode = #tpu.pipeline_mode<synchronous>, transform_indices = @transform_7, window_bounds = array<i64: 1, 32>}]} {
    %c0_i32 = arith.constant 0 : i32
    %0 = arith.cmpi eq, %arg1, %c0_i32 : i32
    %1 = arith.extui %0 : i1 to i32
    %c0_i32_0 = arith.constant 0 : i32
    %2 = arith.cmpi ne, %1, %c0_i32_0 : i32
    scf.if %2 {
      %cst_24 = arith.constant 0.000000e+00 : f32
      %30 = vector.broadcast %cst_24 : f32 to vector<2x32xf32>
      %c0_25 = arith.constant 0 : index
      %c0_26 = arith.constant 0 : index
      %31 = vector.load %arg10[%c0_25, %c0_26] : memref<2x32xf32, #tpu.memory_space<vmem>>, vector<2x32xf32>
      tpu.vector_store %arg10[%c0_25, %c0_26], %30 {strides = array<i32>} : memref<2x32xf32, #tpu.memory_space<vmem>>, vector<2x32xf32>,
    } else {
    }
    %c0 = arith.constant 0 : index
    %c0_1 = arith.constant 0 : index
    %3 = vector.load %arg5[%c0, %c0_1] : memref<512x32xf32, #tpu.memory_space<vmem>>, vector<512x32xf32>
    %cst = arith.constant 9.900000e-01 : f32
    %4 = vector.broadcast %cst : f32 to vector<512x32xf32>
    %5 = arith.mulf %4, %3 : vector<512x32xf32>
    %c0_2 = arith.constant 0 : index
    %c0_3 = arith.constant 0 : index
    %6 = vector.load %arg3[%c0_2, %c0_3] : memref<512x32xf32, #tpu.memory_space<vmem>>, vector<512x32xf32>
    %cst_4 = arith.constant 0.00999999977 : f32
    %7 = vector.broadcast %cst_4 : f32 to vector<512x32xf32>
    %8 = arith.mulf %7, %6 : vector<512x32xf32>
    %9 = arith.addf %5, %8 : vector<512x32xf32>
    %c0_5 = arith.constant 0 : index
    %c0_6 = arith.constant 0 : index
    %10 = vector.load %arg6[%c0_5, %c0_6] : memref<1x32xf32, #tpu.memory_space<vmem>>, vector<1x32xf32>
    %cst_7 = arith.constant 9.900000e-01 : f32
    %11 = vector.broadcast %cst_7 : f32 to vector<1x32xf32>
    %12 = arith.mulf %11, %10 : vector<1x32xf32>
    %c0_8 = arith.constant 0 : index
    %c0_9 = arith.constant 0 : index
    %13 = vector.load %arg4[%c0_8, %c0_9] : memref<1x32xf32, #tpu.memory_space<vmem>>, vector<1x32xf32>
    %cst_10 = arith.constant 0.00999999977 : f32
    %14 = vector.broadcast %cst_10 : f32 to vector<1x32xf32>
    %15 = arith.mulf %14, %13 : vector<1x32xf32>
    %16 = arith.addf %12, %15 : vector<1x32xf32>
    %c0_11 = arith.constant 0 : index
    %c0_12 = arith.constant 0 : index
    %17 = vector.load %arg8[%c0_11, %c0_12] : memref<512x32xf32, #tpu.memory_space<vmem>>, vector<512x32xf32>
    tpu.vector_store %arg8[%c0_11, %c0_12], %9 {strides = array<i32>} : memref<512x32xf32, #tpu.memory_space<vmem>>, vector<512x32xf32>,
    %c0_13 = arith.constant 0 : index
    %c0_14 = arith.constant 0 : index
    %18 = vector.load %arg9[%c0_13, %c0_14] : memref<1x32xf32, #tpu.memory_space<vmem>>, vector<1x32xf32>
    tpu.vector_store %arg9[%c0_13, %c0_14], %16 {strides = array<i32>} : memref<1x32xf32, #tpu.memory_space<vmem>>, vector<1x32xf32>,
    %c0_15 = arith.constant 0 : index
    %c0_16 = arith.constant 0 : index
    %c0_17 = arith.constant 0 : index
    %19 = vector.load %arg2[%c0_15, %c0_16, %c0_17] : memref<1x2x512xf32, #tpu.memory_space<vmem>>, vector<1x2x512xf32>
    %20 = vector.shape_cast %19 : vector<1x2x512xf32> to vector<2x512xf32>
    %c0_18 = arith.constant 0 : index
    %c0_19 = arith.constant 0 : index
    %21 = vector.load %arg10[%c0_18, %c0_19] : memref<2x32xf32, #tpu.memory_space<vmem>>, vector<2x32xf32>
    %22 = arith.truncf %20 : vector<2x512xf32> to vector<2x512xbf16>
    %23 = arith.truncf %9 : vector<512x32xf32> to vector<512x32xbf16>
    %cst_20 = arith.constant dense<0.000000e+00> : vector<2x32xf32>
    %24 = tpu.matmul %22, %23, %cst_20 {dimension_numbers = #tpu.dot_dimension_numbers<[1], [0], [0], [1], [0, 0, 1, 1], [], []>} : vector<2x512xbf16>, vector<512x32xbf16>, vector<2x32xf32> -> vector<2x32xf32>
    %25 = arith.addf %21, %24 : vector<2x32xf32>
    %c0_21 = arith.constant 0 : index
    %c0_22 = arith.constant 0 : index
    %26 = vector.load %arg10[%c0_21, %c0_22] : memref<2x32xf32, #tpu.memory_space<vmem>>, vector<2x32xf32>
    tpu.vector_store %arg10[%c0_21, %c0_22], %25 {strides = array<i32>} : memref<2x32xf32, #tpu.memory_space<vmem>>, vector<2x32xf32>,
    %c1_i32 = arith.constant 1 : i32
    %27 = arith.cmpi eq, %arg1, %c1_i32 : i32
    %28 = arith.extui %27 : i1 to i32
    %c0_i32_23 = arith.constant 0 : i32
    %29 = arith.cmpi ne, %28, %c0_i32_23 : i32
    scf.if %29 {
      %c0_24 = arith.constant 0 : index
      %c0_25 = arith.constant 0 : index
      %30 = vector.load %arg10[%c0_24, %c0_25] : memref<2x32xf32, #tpu.memory_space<vmem>>, vector<2x32xf32>
      %31 = vector.broadcast %16 : vector<1x32xf32> to vector<2x32xf32>
      %32 = arith.addf %30, %31 : vector<2x32xf32>
      %cst_26 = arith.constant 0.000000e+00 : f32
      %33 = vector.broadcast %cst_26 : f32 to vector<2x32xf32>
      %34 = arith.maximumf %32, %33 : vector<2x32xf32>
      %35 = vector.shape_cast %34 : vector<2x32xf32> to vector<1x2x32xf32>
      %c0_27 = arith.constant 0 : index
      %c0_28 = arith.constant 0 : index
      %c0_29 = arith.constant 0 : index
      %36 = vector.load %arg7[%c0_27, %c0_28, %c0_29] : memref<1x2x32xf32, #tpu.memory_space<vmem>>, vector<1x2x32xf32>
      tpu.vector_store %arg7[%c0_27, %c0_28, %c0_29], %35 {strides = array<i32>} : memref<1x2x32xf32, #tpu.memory_space<vmem>>, vector<1x2x32xf32>,
    } else {
    }
    return
  }
  func.func @transform_0(%arg0: i32, %arg1: i32) -> (i32, i32, i32) {
    %c0_i32 = arith.constant 0 : i32
    %c0_i32_0 = arith.constant 0 : i32
    return %arg0, %c0_i32, %arg1 : i32, i32, i32
  }
  func.func @transform_1(%arg0: i32, %arg1: i32) -> (i32, i32) {
    %c0_i32 = arith.constant 0 : i32
    %c0_i32_0 = arith.constant 0 : i32
    return %arg1, %c0_i32 : i32, i32
  }
  func.func @transform_2(%arg0: i32, %arg1: i32) -> (i32, i32) {
    %c0_i32 = arith.constant 0 : i32
    %c0_i32_0 = arith.constant 0 : i32
    %c0_i32_1 = arith.constant 0 : i32
    return %c0_i32, %c0_i32_0 : i32, i32
  }
  func.func @transform_3(%arg0: i32, %arg1: i32) -> (i32, i32) {
    %c0_i32 = arith.constant 0 : i32
    %c0_i32_0 = arith.constant 0 : i32
    return %arg1, %c0_i32 : i32, i32
  }
  func.func @transform_4(%arg0: i32, %arg1: i32) -> (i32, i32) {
    %c0_i32 = arith.constant 0 : i32
    %c0_i32_0 = arith.constant 0 : i32
    %c0_i32_1 = arith.constant 0 : i32
    return %c0_i32, %c0_i32_0 : i32, i32
  }
  func.func @transform_5(%arg0: i32, %arg1: i32) -> (i32, i32, i32) {
    %c0_i32 = arith.constant 0 : i32
    %c0_i32_0 = arith.constant 0 : i32
    %c0_i32_1 = arith.constant 0 : i32
    return %arg0, %c0_i32, %c0_i32_0 : i32, i32, i32
  }
  func.func @transform_6(%arg0: i32, %arg1: i32) -> (i32, i32) {
    %c0_i32 = arith.constant 0 : i32
    %c0_i32_0 = arith.constant 0 : i32
    return %arg1, %c0_i32 : i32, i32
  }
  func.func @transform_7(%arg0: i32, %arg1: i32) -> (i32, i32) {
    %c0_i32 = arith.constant 0 : i32
    %c0_i32_0 = arith.constant 0 : i32
    %c0_i32_1 = arith.constant 0 : i32
    return %c0_i32, %c0_i32_0 : i32, i32
  }
}

module attributes {stable_mosaic.version = 11 : i64} {
  func.func @_mlp_kernel(%arg0: i32, %arg1: i32, %arg2: memref<1x2x32xf32, #tpu.memory_space<vmem>>, %arg3: memref<32x64xf32, #tpu.memory_space<vmem>>, %arg4: memref<1x64xf32, #tpu.memory_space<vmem>>, %arg5: memref<1x64xf32, #tpu.memory_space<vmem>>, %arg6: memref<1x64xf32, #tpu.memory_space<vmem>>, %arg7: memref<64x16xf32, #tpu.memory_space<vmem>>, %arg8: memref<1x16xf32, #tpu.memory_space<vmem>>, %arg9: memref<32x64xf32, #tpu.memory_space<vmem>>, %arg10: memref<1x64xf32, #tpu.memory_space<vmem>>, %arg11: memref<1x64xf32, #tpu.memory_space<vmem>>, %arg12: memref<1x64xf32, #tpu.memory_space<vmem>>, %arg13: memref<64x16xf32, #tpu.memory_space<vmem>>, %arg14: memref<1x16xf32, #tpu.memory_space<vmem>>, %arg15: memref<1x2x16xf32, #tpu.memory_space<vmem>>, %arg16: memref<32x64xf32, #tpu.memory_space<vmem>>, %arg17: memref<1x64xf32, #tpu.memory_space<vmem>>, %arg18: memref<1x64xf32, #tpu.memory_space<vmem>>, %arg19: memref<1x64xf32, #tpu.memory_space<vmem>>, %arg20: memref<64x16xf32, #tpu.memory_space<vmem>>, %arg21: memref<1x16xf32, #tpu.memory_space<vmem>>, %arg22: memref<2x16xf32, #tpu.memory_space<vmem>>) attributes {dimension_semantics = [#tpu.dimension_semantics<arbitrary>, #tpu.dimension_semantics<arbitrary>], iteration_bounds = array<i64: 2, 1>, scalar_prefetch = 0 : i64, scratch_operands = 1 : i64, tpu.core_type = #tpu.core_type<tc>, window_params = [{transform_indices = @transform_0, window_bounds = array<i64: 1, 2, 32>}, {transform_indices = @transform_1, window_bounds = array<i64: 32, 64>}, {transform_indices = @transform_2, window_bounds = array<i64: 1, 64>}, {transform_indices = @transform_3, window_bounds = array<i64: 1, 64>}, {transform_indices = @transform_4, window_bounds = array<i64: 1, 64>}, {transform_indices = @transform_5, window_bounds = array<i64: 64, 16>}, {pipeline_mode = #tpu.pipeline_mode<synchronous>, transform_indices = @transform_6, window_bounds = array<i64: 1, 16>}, {transform_indices = @transform_7, window_bounds = array<i64: 32, 64>}, {transform_indices = @transform_8, window_bounds = array<i64: 1, 64>}, {transform_indices = @transform_9, window_bounds = array<i64: 1, 64>}, {transform_indices = @transform_10, window_bounds = array<i64: 1, 64>}, {transform_indices = @transform_11, window_bounds = array<i64: 64, 16>}, {pipeline_mode = #tpu.pipeline_mode<synchronous>, transform_indices = @transform_12, window_bounds = array<i64: 1, 16>}, {transform_indices = @transform_13, window_bounds = array<i64: 1, 2, 16>}, {transform_indices = @transform_14, window_bounds = array<i64: 32, 64>}, {transform_indices = @transform_15, window_bounds = array<i64: 1, 64>}, {transform_indices = @transform_16, window_bounds = array<i64: 1, 64>}, {transform_indices = @transform_17, window_bounds = array<i64: 1, 64>}, {transform_indices = @transform_18, window_bounds = array<i64: 64, 16>}, {pipeline_mode = #tpu.pipeline_mode<synchronous>, transform_indices = @transform_19, window_bounds = array<i64: 1, 16>}]} {
    %c0_i32 = arith.constant 0 : i32
    %0 = arith.cmpi eq, %arg1, %c0_i32 : i32
    %1 = arith.extui %0 : i1 to i32
    %c0_i32_0 = arith.constant 0 : i32
    %2 = arith.cmpi ne, %1, %c0_i32_0 : i32
    scf.if %2 {
      %cst_64 = arith.constant 0.000000e+00 : f32
      %93 = vector.broadcast %cst_64 : f32 to vector<2x16xf32>
      %c0_65 = arith.constant 0 : index
      %c0_66 = arith.constant 0 : index
      %94 = vector.load %arg22[%c0_65, %c0_66] : memref<2x16xf32, #tpu.memory_space<vmem>>, vector<2x16xf32>
      tpu.vector_store %arg22[%c0_65, %c0_66], %93 {strides = array<i32>} : memref<2x16xf32, #tpu.memory_space<vmem>>, vector<2x16xf32>,
    } else {
    }
    %c0 = arith.constant 0 : index
    %c0_1 = arith.constant 0 : index
    %3 = vector.load %arg9[%c0, %c0_1] : memref<32x64xf32, #tpu.memory_space<vmem>>, vector<32x64xf32>
    %cst = arith.constant 9.900000e-01 : f32
    %4 = vector.broadcast %cst : f32 to vector<32x64xf32>
    %5 = arith.mulf %4, %3 : vector<32x64xf32>
    %c0_2 = arith.constant 0 : index
    %c0_3 = arith.constant 0 : index
    %6 = vector.load %arg3[%c0_2, %c0_3] : memref<32x64xf32, #tpu.memory_space<vmem>>, vector<32x64xf32>
    %cst_4 = arith.constant 0.00999999977 : f32
    %7 = vector.broadcast %cst_4 : f32 to vector<32x64xf32>
    %8 = arith.mulf %7, %6 : vector<32x64xf32>
    %9 = arith.addf %5, %8 : vector<32x64xf32>
    %c0_5 = arith.constant 0 : index
    %c0_6 = arith.constant 0 : index
    %10 = vector.load %arg16[%c0_5, %c0_6] : memref<32x64xf32, #tpu.memory_space<vmem>>, vector<32x64xf32>
    tpu.vector_store %arg16[%c0_5, %c0_6], %9 {strides = array<i32>} : memref<32x64xf32, #tpu.memory_space<vmem>>, vector<32x64xf32>,
    %c0_7 = arith.constant 0 : index
    %c0_8 = arith.constant 0 : index
    %11 = vector.load %arg10[%c0_7, %c0_8] : memref<1x64xf32, #tpu.memory_space<vmem>>, vector<1x64xf32>
    %cst_9 = arith.constant 9.900000e-01 : f32
    %12 = vector.broadcast %cst_9 : f32 to vector<1x64xf32>
    %13 = arith.mulf %12, %11 : vector<1x64xf32>
    %c0_10 = arith.constant 0 : index
    %c0_11 = arith.constant 0 : index
    %14 = vector.load %arg4[%c0_10, %c0_11] : memref<1x64xf32, #tpu.memory_space<vmem>>, vector<1x64xf32>
    %cst_12 = arith.constant 0.00999999977 : f32
    %15 = vector.broadcast %cst_12 : f32 to vector<1x64xf32>
    %16 = arith.mulf %15, %14 : vector<1x64xf32>
    %17 = arith.addf %13, %16 : vector<1x64xf32>
    %c0_13 = arith.constant 0 : index
    %c0_14 = arith.constant 0 : index
    %18 = vector.load %arg17[%c0_13, %c0_14] : memref<1x64xf32, #tpu.memory_space<vmem>>, vector<1x64xf32>
    tpu.vector_store %arg17[%c0_13, %c0_14], %17 {strides = array<i32>} : memref<1x64xf32, #tpu.memory_space<vmem>>, vector<1x64xf32>,
    %c0_15 = arith.constant 0 : index
    %c0_16 = arith.constant 0 : index
    %19 = vector.load %arg11[%c0_15, %c0_16] : memref<1x64xf32, #tpu.memory_space<vmem>>, vector<1x64xf32>
    %cst_17 = arith.constant 9.900000e-01 : f32
    %20 = vector.broadcast %cst_17 : f32 to vector<1x64xf32>
    %21 = arith.mulf %20, %19 : vector<1x64xf32>
    %c0_18 = arith.constant 0 : index
    %c0_19 = arith.constant 0 : index
    %22 = vector.load %arg5[%c0_18, %c0_19] : memref<1x64xf32, #tpu.memory_space<vmem>>, vector<1x64xf32>
    %cst_20 = arith.constant 0.00999999977 : f32
    %23 = vector.broadcast %cst_20 : f32 to vector<1x64xf32>
    %24 = arith.mulf %23, %22 : vector<1x64xf32>
    %25 = arith.addf %21, %24 : vector<1x64xf32>
    %c0_21 = arith.constant 0 : index
    %c0_22 = arith.constant 0 : index
    %26 = vector.load %arg18[%c0_21, %c0_22] : memref<1x64xf32, #tpu.memory_space<vmem>>, vector<1x64xf32>
    tpu.vector_store %arg18[%c0_21, %c0_22], %25 {strides = array<i32>} : memref<1x64xf32, #tpu.memory_space<vmem>>, vector<1x64xf32>,
    %c0_23 = arith.constant 0 : index
    %c0_24 = arith.constant 0 : index
    %27 = vector.load %arg12[%c0_23, %c0_24] : memref<1x64xf32, #tpu.memory_space<vmem>>, vector<1x64xf32>
    %cst_25 = arith.constant 9.900000e-01 : f32
    %28 = vector.broadcast %cst_25 : f32 to vector<1x64xf32>
    %29 = arith.mulf %28, %27 : vector<1x64xf32>
    %c0_26 = arith.constant 0 : index
    %c0_27 = arith.constant 0 : index
    %30 = vector.load %arg6[%c0_26, %c0_27] : memref<1x64xf32, #tpu.memory_space<vmem>>, vector<1x64xf32>
    %cst_28 = arith.constant 0.00999999977 : f32
    %31 = vector.broadcast %cst_28 : f32 to vector<1x64xf32>
    %32 = arith.mulf %31, %30 : vector<1x64xf32>
    %33 = arith.addf %29, %32 : vector<1x64xf32>
    %c0_29 = arith.constant 0 : index
    %c0_30 = arith.constant 0 : index
    %34 = vector.load %arg19[%c0_29, %c0_30] : memref<1x64xf32, #tpu.memory_space<vmem>>, vector<1x64xf32>
    tpu.vector_store %arg19[%c0_29, %c0_30], %33 {strides = array<i32>} : memref<1x64xf32, #tpu.memory_space<vmem>>, vector<1x64xf32>,
    %c0_31 = arith.constant 0 : index
    %c0_32 = arith.constant 0 : index
    %35 = vector.load %arg13[%c0_31, %c0_32] : memref<64x16xf32, #tpu.memory_space<vmem>>, vector<64x16xf32>
    %cst_33 = arith.constant 9.900000e-01 : f32
    %36 = vector.broadcast %cst_33 : f32 to vector<64x16xf32>
    %37 = arith.mulf %36, %35 : vector<64x16xf32>
    %c0_34 = arith.constant 0 : index
    %c0_35 = arith.constant 0 : index
    %38 = vector.load %arg7[%c0_34, %c0_35] : memref<64x16xf32, #tpu.memory_space<vmem>>, vector<64x16xf32>
    %cst_36 = arith.constant 0.00999999977 : f32
    %39 = vector.broadcast %cst_36 : f32 to vector<64x16xf32>
    %40 = arith.mulf %39, %38 : vector<64x16xf32>
    %41 = arith.addf %37, %40 : vector<64x16xf32>
    %c0_37 = arith.constant 0 : index
    %c0_38 = arith.constant 0 : index
    %42 = vector.load %arg20[%c0_37, %c0_38] : memref<64x16xf32, #tpu.memory_space<vmem>>, vector<64x16xf32>
    tpu.vector_store %arg20[%c0_37, %c0_38], %41 {strides = array<i32>} : memref<64x16xf32, #tpu.memory_space<vmem>>, vector<64x16xf32>,
    %c0_39 = arith.constant 0 : index
    %c0_40 = arith.constant 0 : index
    %43 = vector.load %arg14[%c0_39, %c0_40] : memref<1x16xf32, #tpu.memory_space<vmem>>, vector<1x16xf32>
    %cst_41 = arith.constant 9.900000e-01 : f32
    %44 = vector.broadcast %cst_41 : f32 to vector<1x16xf32>
    %45 = arith.mulf %44, %43 : vector<1x16xf32>
    %c0_42 = arith.constant 0 : index
    %c0_43 = arith.constant 0 : index
    %46 = vector.load %arg8[%c0_42, %c0_43] : memref<1x16xf32, #tpu.memory_space<vmem>>, vector<1x16xf32>
    %cst_44 = arith.constant 0.00999999977 : f32
    %47 = vector.broadcast %cst_44 : f32 to vector<1x16xf32>
    %48 = arith.mulf %47, %46 : vector<1x16xf32>
    %49 = arith.addf %45, %48 : vector<1x16xf32>
    %c0_45 = arith.constant 0 : index
    %c0_46 = arith.constant 0 : index
    %50 = vector.load %arg21[%c0_45, %c0_46] : memref<1x16xf32, #tpu.memory_space<vmem>>, vector<1x16xf32>
    tpu.vector_store %arg21[%c0_45, %c0_46], %49 {strides = array<i32>} : memref<1x16xf32, #tpu.memory_space<vmem>>, vector<1x16xf32>,
    %c0_47 = arith.constant 0 : index
    %c0_48 = arith.constant 0 : index
    %c0_49 = arith.constant 0 : index
    %51 = vector.load %arg2[%c0_47, %c0_48, %c0_49] : memref<1x2x32xf32, #tpu.memory_space<vmem>>, vector<1x2x32xf32>
    %52 = vector.shape_cast %51 : vector<1x2x32xf32> to vector<2x32xf32>
    %53 = arith.truncf %52 : vector<2x32xf32> to vector<2x32xbf16>
    %54 = arith.truncf %9 : vector<32x64xf32> to vector<32x64xbf16>
    %cst_50 = arith.constant dense<0.000000e+00> : vector<2x64xf32>
    %55 = tpu.matmul %53, %54, %cst_50 {dimension_numbers = #tpu.dot_dimension_numbers<[1], [0], [0], [1], [0, 0, 1, 1], [], []>} : vector<2x32xbf16>, vector<32x64xbf16>, vector<2x64xf32> -> vector<2x64xf32>
    %56 = vector.broadcast %17 : vector<1x64xf32> to vector<2x64xf32>
    %57 = arith.addf %55, %56 : vector<2x64xf32>
    %cst_51 = arith.constant dense<0.000000e+00> : vector<64xf32>
    %58 = vector.multi_reduction <add>, %57, %cst_51 [0] : vector<2x64xf32> to vector<64xf32>
    %59 = vector.shape_cast %58 : vector<64xf32> to vector<1x64xf32>
    %cst_52 = arith.constant 2.000000e+00 : f32
    %60 = vector.broadcast %cst_52 : f32 to vector<1x64xf32>
    %61 = arith.divf %59, %60 : vector<1x64xf32>
    %62 = vector.broadcast %61 : vector<1x64xf32> to vector<2x64xf32>
    %63 = arith.subf %57, %62 : vector<2x64xf32>
    %64 = vector.broadcast %61 : vector<1x64xf32> to vector<2x64xf32>
    %65 = arith.subf %57, %64 : vector<2x64xf32>
    %66 = arith.mulf %63, %65 : vector<2x64xf32>
    %cst_53 = arith.constant dense<0.000000e+00> : vector<64xf32>
    %67 = vector.multi_reduction <add>, %66, %cst_53 [0] : vector<2x64xf32> to vector<64xf32>
    %68 = vector.shape_cast %67 : vector<64xf32> to vector<1x64xf32>
    %cst_54 = arith.constant 2.000000e+00 : f32
    %69 = vector.broadcast %cst_54 : f32 to vector<1x64xf32>
    %70 = arith.divf %68, %69 : vector<1x64xf32>
    %71 = vector.broadcast %61 : vector<1x64xf32> to vector<2x64xf32>
    %72 = arith.subf %57, %71 : vector<2x64xf32>
    %cst_55 = arith.constant 9.99999974E-6 : f32
    %73 = vector.broadcast %cst_55 : f32 to vector<1x64xf32>
    %74 = arith.addf %70, %73 : vector<1x64xf32>
    %75 = math.rsqrt %74 : vector<1x64xf32>
    %76 = vector.broadcast %75 : vector<1x64xf32> to vector<2x64xf32>
    %77 = arith.mulf %72, %76 : vector<2x64xf32>
    %78 = vector.broadcast %25 : vector<1x64xf32> to vector<2x64xf32>
    %79 = arith.mulf %77, %78 : vector<2x64xf32>
    %80 = vector.broadcast %33 : vector<1x64xf32> to vector<2x64xf32>
    %81 = arith.addf %79, %80 : vector<2x64xf32>
    %cst_56 = arith.constant 0.000000e+00 : f32
    %82 = vector.broadcast %cst_56 : f32 to vector<2x64xf32>
    %83 = arith.maximumf %81, %82 : vector<2x64xf32>
    %c0_57 = arith.constant 0 : index
    %c0_58 = arith.constant 0 : index
    %84 = vector.load %arg22[%c0_57, %c0_58] : memref<2x16xf32, #tpu.memory_space<vmem>>, vector<2x16xf32>
    %85 = arith.truncf %83 : vector<2x64xf32> to vector<2x64xbf16>
    %86 = arith.truncf %41 : vector<64x16xf32> to vector<64x16xbf16>
    %cst_59 = arith.constant dense<0.000000e+00> : vector<2x16xf32>
    %87 = tpu.matmul %85, %86, %cst_59 {dimension_numbers = #tpu.dot_dimension_numbers<[1], [0], [0], [1], [0, 0, 1, 1], [], []>} : vector<2x64xbf16>, vector<64x16xbf16>, vector<2x16xf32> -> vector<2x16xf32>
    %88 = arith.addf %84, %87 : vector<2x16xf32>
    %c0_60 = arith.constant 0 : index
    %c0_61 = arith.constant 0 : index
    %89 = vector.load %arg22[%c0_60, %c0_61] : memref<2x16xf32, #tpu.memory_space<vmem>>, vector<2x16xf32>
    tpu.vector_store %arg22[%c0_60, %c0_61], %88 {strides = array<i32>} : memref<2x16xf32, #tpu.memory_space<vmem>>, vector<2x16xf32>,
    %c0_i32_62 = arith.constant 0 : i32
    %90 = arith.cmpi eq, %arg1, %c0_i32_62 : i32
    %91 = arith.extui %90 : i1 to i32
    %c0_i32_63 = arith.constant 0 : i32
    %92 = arith.cmpi ne, %91, %c0_i32_63 : i32
    scf.if %92 {
      %c0_64 = arith.constant 0 : index
      %c0_65 = arith.constant 0 : index
      %93 = vector.load %arg22[%c0_64, %c0_65] : memref<2x16xf32, #tpu.memory_space<vmem>>, vector<2x16xf32>
      %94 = vector.broadcast %49 : vector<1x16xf32> to vector<2x16xf32>
      %95 = arith.addf %93, %94 : vector<2x16xf32>
      %96 = vector.shape_cast %95 : vector<2x16xf32> to vector<1x2x16xf32>
      %c0_66 = arith.constant 0 : index
      %c0_67 = arith.constant 0 : index
      %c0_68 = arith.constant 0 : index
      %97 = vector.load %arg15[%c0_66, %c0_67, %c0_68] : memref<1x2x16xf32, #tpu.memory_space<vmem>>, vector<1x2x16xf32>
      tpu.vector_store %arg15[%c0_66, %c0_67, %c0_68], %96 {strides = array<i32>} : memref<1x2x16xf32, #tpu.memory_space<vmem>>, vector<1x2x16xf32>,
    } else {
    }
    return
  }
  func.func @transform_0(%arg0: i32, %arg1: i32) -> (i32, i32, i32) {
    %c0_i32 = arith.constant 0 : i32
    %c0_i32_0 = arith.constant 0 : i32
    %c0_i32_1 = arith.constant 0 : i32
    return %arg0, %c0_i32, %c0_i32_0 : i32, i32, i32
  }
  func.func @transform_1(%arg0: i32, %arg1: i32) -> (i32, i32) {
    %c0_i32 = arith.constant 0 : i32
    %c0_i32_0 = arith.constant 0 : i32
    return %c0_i32, %arg1 : i32, i32
  }
  func.func @transform_2(%arg0: i32, %arg1: i32) -> (i32, i32) {
    %c0_i32 = arith.constant 0 : i32
    %c0_i32_0 = arith.constant 0 : i32
    return %c0_i32, %arg1 : i32, i32
  }
  func.func @transform_3(%arg0: i32, %arg1: i32) -> (i32, i32) {
    %c0_i32 = arith.constant 0 : i32
    %c0_i32_0 = arith.constant 0 : i32
    return %c0_i32, %arg1 : i32, i32
  }
  func.func @transform_4(%arg0: i32, %arg1: i32) -> (i32, i32) {
    %c0_i32 = arith.constant 0 : i32
    %c0_i32_0 = arith.constant 0 : i32
    return %c0_i32, %arg1 : i32, i32
  }
  func.func @transform_5(%arg0: i32, %arg1: i32) -> (i32, i32) {
    %c0_i32 = arith.constant 0 : i32
    %c0_i32_0 = arith.constant 0 : i32
    return %arg1, %c0_i32 : i32, i32
  }
  func.func @transform_6(%arg0: i32, %arg1: i32) -> (i32, i32) {
    %c0_i32 = arith.constant 0 : i32
    %c0_i32_0 = arith.constant 0 : i32
    %c0_i32_1 = arith.constant 0 : i32
    return %c0_i32, %c0_i32_0 : i32, i32
  }
  func.func @transform_7(%arg0: i32, %arg1: i32) -> (i32, i32) {
    %c0_i32 = arith.constant 0 : i32
    %c0_i32_0 = arith.constant 0 : i32
    return %c0_i32, %arg1 : i32, i32
  }
  func.func @transform_8(%arg0: i32, %arg1: i32) -> (i32, i32) {
    %c0_i32 = arith.constant 0 : i32
    %c0_i32_0 = arith.constant 0 : i32
    return %c0_i32, %arg1 : i32, i32
  }
  func.func @transform_9(%arg0: i32, %arg1: i32) -> (i32, i32) {
    %c0_i32 = arith.constant 0 : i32
    %c0_i32_0 = arith.constant 0 : i32
    return %c0_i32, %arg1 : i32, i32
  }
  func.func @transform_10(%arg0: i32, %arg1: i32) -> (i32, i32) {
    %c0_i32 = arith.constant 0 : i32
    %c0_i32_0 = arith.constant 0 : i32
    return %c0_i32, %arg1 : i32, i32
  }
  func.func @transform_11(%arg0: i32, %arg1: i32) -> (i32, i32) {
    %c0_i32 = arith.constant 0 : i32
    %c0_i32_0 = arith.constant 0 : i32
    return %arg1, %c0_i32 : i32, i32
  }
  func.func @transform_12(%arg0: i32, %arg1: i32) -> (i32, i32) {
    %c0_i32 = arith.constant 0 : i32
    %c0_i32_0 = arith.constant 0 : i32
    %c0_i32_1 = arith.constant 0 : i32
    return %c0_i32, %c0_i32_0 : i32, i32
  }
  func.func @transform_13(%arg0: i32, %arg1: i32) -> (i32, i32, i32) {
    %c0_i32 = arith.constant 0 : i32
    %c0_i32_0 = arith.constant 0 : i32
    %c0_i32_1 = arith.constant 0 : i32
    return %arg0, %c0_i32, %c0_i32_0 : i32, i32, i32
  }
  func.func @transform_14(%arg0: i32, %arg1: i32) -> (i32, i32) {
    %c0_i32 = arith.constant 0 : i32
    %c0_i32_0 = arith.constant 0 : i32
    return %c0_i32, %arg1 : i32, i32
  }
  func.func @transform_15(%arg0: i32, %arg1: i32) -> (i32, i32) {
    %c0_i32 = arith.constant 0 : i32
    %c0_i32_0 = arith.constant 0 : i32
    return %c0_i32, %arg1 : i32, i32
  }
  func.func @transform_16(%arg0: i32, %arg1: i32) -> (i32, i32) {
    %c0_i32 = arith.constant 0 : i32
    %c0_i32_0 = arith.constant 0 : i32
    return %c0_i32, %arg1 : i32, i32
  }
  func.func @transform_17(%arg0: i32, %arg1: i32) -> (i32, i32) {
    %c0_i32 = arith.constant 0 : i32
    %c0_i32_0 = arith.constant 0 : i32
    return %c0_i32, %arg1 : i32, i32
  }
  func.func @transform_18(%arg0: i32, %arg1: i32) -> (i32, i32) {
    %c0_i32 = arith.constant 0 : i32
    %c0_i32_0 = arith.constant 0 : i32
    return %arg1, %c0_i32 : i32, i32
  }
  func.func @transform_19(%arg0: i32, %arg1: i32) -> (i32, i32) {
    %c0_i32 = arith.constant 0 : i32
    %c0_i32_0 = arith.constant 0 : i32
    %c0_i32_1 = arith.constant 0 : i32
    return %c0_i32, %c0_i32_0 : i32, i32
  }
}

module attributes {stable_mosaic.version = 11 : i64} {
  func.func @_mlp_kernel(%arg0: i32, %arg1: i32, %arg2: memref<1x2x32xf32, #tpu.memory_space<vmem>>, %arg3: memref<32x64xf32, #tpu.memory_space<vmem>>, %arg4: memref<1x64xf32, #tpu.memory_space<vmem>>, %arg5: memref<1x64xf32, #tpu.memory_space<vmem>>, %arg6: memref<1x64xf32, #tpu.memory_space<vmem>>, %arg7: memref<64x16xf32, #tpu.memory_space<vmem>>, %arg8: memref<1x16xf32, #tpu.memory_space<vmem>>, %arg9: memref<1x2x16xf32, #tpu.memory_space<vmem>>, %arg10: memref<2x16xf32, #tpu.memory_space<vmem>>) attributes {dimension_semantics = [#tpu.dimension_semantics<parallel>, #tpu.dimension_semantics<arbitrary>], iteration_bounds = array<i64: 2, 1>, scalar_prefetch = 0 : i64, scratch_operands = 1 : i64, tpu.core_type = #tpu.core_type<tc>, window_params = [{transform_indices = @transform_0, window_bounds = array<i64: 1, 2, 32>}, {transform_indices = @transform_1, window_bounds = array<i64: 32, 64>}, {transform_indices = @transform_2, window_bounds = array<i64: 1, 64>}, {transform_indices = @transform_3, window_bounds = array<i64: 1, 64>}, {transform_indices = @transform_4, window_bounds = array<i64: 1, 64>}, {transform_indices = @transform_5, window_bounds = array<i64: 64, 16>}, {pipeline_mode = #tpu.pipeline_mode<synchronous>, transform_indices = @transform_6, window_bounds = array<i64: 1, 16>}, {transform_indices = @transform_7, window_bounds = array<i64: 1, 2, 16>}]} {
    %c0_i32 = arith.constant 0 : i32
    %0 = arith.cmpi eq, %arg1, %c0_i32 : i32
    %1 = arith.extui %0 : i1 to i32
    %c0_i32_0 = arith.constant 0 : i32
    %2 = arith.cmpi ne, %1, %c0_i32_0 : i32
    scf.if %2 {
      %cst_28 = arith.constant 0.000000e+00 : f32
      %51 = vector.broadcast %cst_28 : f32 to vector<2x16xf32>
      %c0_29 = arith.constant 0 : index
      %c0_30 = arith.constant 0 : index
      %52 = vector.load %arg10[%c0_29, %c0_30] : memref<2x16xf32, #tpu.memory_space<vmem>>, vector<2x16xf32>
      tpu.vector_store %arg10[%c0_29, %c0_30], %51 {strides = array<i32>} : memref<2x16xf32, #tpu.memory_space<vmem>>, vector<2x16xf32>,
    } else {
    }
    %c0 = arith.constant 0 : index
    %c0_1 = arith.constant 0 : index
    %3 = vector.load %arg3[%c0, %c0_1] : memref<32x64xf32, #tpu.memory_space<vmem>>, vector<32x64xf32>
    %c0_2 = arith.constant 0 : index
    %c0_3 = arith.constant 0 : index
    %4 = vector.load %arg4[%c0_2, %c0_3] : memref<1x64xf32, #tpu.memory_space<vmem>>, vector<1x64xf32>
    %c0_4 = arith.constant 0 : index
    %c0_5 = arith.constant 0 : index
    %5 = vector.load %arg5[%c0_4, %c0_5] : memref<1x64xf32, #tpu.memory_space<vmem>>, vector<1x64xf32>
    %c0_6 = arith.constant 0 : index
    %c0_7 = arith.constant 0 : index
    %6 = vector.load %arg6[%c0_6, %c0_7] : memref<1x64xf32, #tpu.memory_space<vmem>>, vector<1x64xf32>
    %c0_8 = arith.constant 0 : index
    %c0_9 = arith.constant 0 : index
    %7 = vector.load %arg7[%c0_8, %c0_9] : memref<64x16xf32, #tpu.memory_space<vmem>>, vector<64x16xf32>
    %c0_10 = arith.constant 0 : index
    %c0_11 = arith.constant 0 : index
    %8 = vector.load %arg8[%c0_10, %c0_11] : memref<1x16xf32, #tpu.memory_space<vmem>>, vector<1x16xf32>
    %c0_12 = arith.constant 0 : index
    %c0_13 = arith.constant 0 : index
    %c0_14 = arith.constant 0 : index
    %9 = vector.load %arg2[%c0_12, %c0_13, %c0_14] : memref<1x2x32xf32, #tpu.memory_space<vmem>>, vector<1x2x32xf32>
    %10 = vector.shape_cast %9 : vector<1x2x32xf32> to vector<2x32xf32>
    %11 = arith.truncf %10 : vector<2x32xf32> to vector<2x32xbf16>
    %12 = arith.truncf %3 : vector<32x64xf32> to vector<32x64xbf16>
    %cst = arith.constant dense<0.000000e+00> : vector<2x64xf32>
    %13 = tpu.matmul %11, %12, %cst {dimension_numbers = #tpu.dot_dimension_numbers<[1], [0], [0], [1], [0, 0, 1, 1], [], []>} : vector<2x32xbf16>, vector<32x64xbf16>, vector<2x64xf32> -> vector<2x64xf32>
    %14 = vector.broadcast %4 : vector<1x64xf32> to vector<2x64xf32>
    %15 = arith.addf %13, %14 : vector<2x64xf32>
    %cst_15 = arith.constant dense<0.000000e+00> : vector<64xf32>
    %16 = vector.multi_reduction <add>, %15, %cst_15 [0] : vector<2x64xf32> to vector<64xf32>
    %17 = vector.shape_cast %16 : vector<64xf32> to vector<1x64xf32>
    %cst_16 = arith.constant 2.000000e+00 : f32
    %18 = vector.broadcast %cst_16 : f32 to vector<1x64xf32>
    %19 = arith.divf %17, %18 : vector<1x64xf32>
    %20 = vector.broadcast %19 : vector<1x64xf32> to vector<2x64xf32>
    %21 = arith.subf %15, %20 : vector<2x64xf32>
    %22 = vector.broadcast %19 : vector<1x64xf32> to vector<2x64xf32>
    %23 = arith.subf %15, %22 : vector<2x64xf32>
    %24 = arith.mulf %21, %23 : vector<2x64xf32>
    %cst_17 = arith.constant dense<0.000000e+00> : vector<64xf32>
    %25 = vector.multi_reduction <add>, %24, %cst_17 [0] : vector<2x64xf32> to vector<64xf32>
    %26 = vector.shape_cast %25 : vector<64xf32> to vector<1x64xf32>
    %cst_18 = arith.constant 2.000000e+00 : f32
    %27 = vector.broadcast %cst_18 : f32 to vector<1x64xf32>
    %28 = arith.divf %26, %27 : vector<1x64xf32>
    %29 = vector.broadcast %19 : vector<1x64xf32> to vector<2x64xf32>
    %30 = arith.subf %15, %29 : vector<2x64xf32>
    %cst_19 = arith.constant 9.99999974E-6 : f32
    %31 = vector.broadcast %cst_19 : f32 to vector<1x64xf32>
    %32 = arith.addf %28, %31 : vector<1x64xf32>
    %33 = math.rsqrt %32 : vector<1x64xf32>
    %34 = vector.broadcast %33 : vector<1x64xf32> to vector<2x64xf32>
    %35 = arith.mulf %30, %34 : vector<2x64xf32>
    %36 = vector.broadcast %5 : vector<1x64xf32> to vector<2x64xf32>
    %37 = arith.mulf %35, %36 : vector<2x64xf32>
    %38 = vector.broadcast %6 : vector<1x64xf32> to vector<2x64xf32>
    %39 = arith.addf %37, %38 : vector<2x64xf32>
    %cst_20 = arith.constant 0.000000e+00 : f32
    %40 = vector.broadcast %cst_20 : f32 to vector<2x64xf32>
    %41 = arith.maximumf %39, %40 : vector<2x64xf32>
    %c0_21 = arith.constant 0 : index
    %c0_22 = arith.constant 0 : index
    %42 = vector.load %arg10[%c0_21, %c0_22] : memref<2x16xf32, #tpu.memory_space<vmem>>, vector<2x16xf32>
    %43 = arith.truncf %41 : vector<2x64xf32> to vector<2x64xbf16>
    %44 = arith.truncf %7 : vector<64x16xf32> to vector<64x16xbf16>
    %cst_23 = arith.constant dense<0.000000e+00> : vector<2x16xf32>
    %45 = tpu.matmul %43, %44, %cst_23 {dimension_numbers = #tpu.dot_dimension_numbers<[1], [0], [0], [1], [0, 0, 1, 1], [], []>} : vector<2x64xbf16>, vector<64x16xbf16>, vector<2x16xf32> -> vector<2x16xf32>
    %46 = arith.addf %42, %45 : vector<2x16xf32>
    %c0_24 = arith.constant 0 : index
    %c0_25 = arith.constant 0 : index
    %47 = vector.load %arg10[%c0_24, %c0_25] : memref<2x16xf32, #tpu.memory_space<vmem>>, vector<2x16xf32>
    tpu.vector_store %arg10[%c0_24, %c0_25], %46 {strides = array<i32>} : memref<2x16xf32, #tpu.memory_space<vmem>>, vector<2x16xf32>,
    %c0_i32_26 = arith.constant 0 : i32
    %48 = arith.cmpi eq, %arg1, %c0_i32_26 : i32
    %49 = arith.extui %48 : i1 to i32
    %c0_i32_27 = arith.constant 0 : i32
    %50 = arith.cmpi ne, %49, %c0_i32_27 : i32
    scf.if %50 {
      %c0_28 = arith.constant 0 : index
      %c0_29 = arith.constant 0 : index
      %51 = vector.load %arg10[%c0_28, %c0_29] : memref<2x16xf32, #tpu.memory_space<vmem>>, vector<2x16xf32>
      %52 = vector.broadcast %8 : vector<1x16xf32> to vector<2x16xf32>
      %53 = arith.addf %51, %52 : vector<2x16xf32>
      %54 = vector.shape_cast %53 : vector<2x16xf32> to vector<1x2x16xf32>
      %c0_30 = arith.constant 0 : index
      %c0_31 = arith.constant 0 : index
      %c0_32 = arith.constant 0 : index
      %55 = vector.load %arg9[%c0_30, %c0_31, %c0_32] : memref<1x2x16xf32, #tpu.memory_space<vmem>>, vector<1x2x16xf32>
      tpu.vector_store %arg9[%c0_30, %c0_31, %c0_32], %54 {strides = array<i32>} : memref<1x2x16xf32, #tpu.memory_space<vmem>>, vector<1x2x16xf32>,
    } else {
    }
    return
  }
  func.func @transform_0(%arg0: i32, %arg1: i32) -> (i32, i32, i32) {
    %c0_i32 = arith.constant 0 : i32
    %c0_i32_0 = arith.constant 0 : i32
    %c0_i32_1 = arith.constant 0 : i32
    return %arg0, %c0_i32, %c0_i32_0 : i32, i32, i32
  }
  func.func @transform_1(%arg0: i32, %arg1: i32) -> (i32, i32) {
    %c0_i32 = arith.constant 0 : i32
    %c0_i32_0 = arith.constant 0 : i32
    return %c0_i32, %arg1 : i32, i32
  }
  func.func @transform_2(%arg0: i32, %arg1: i32) -> (i32, i32) {
    %c0_i32 = arith.constant 0 : i32
    %c0_i32_0 = arith.constant 0 : i32
    return %c0_i32, %arg1 : i32, i32
  }
  func.func @transform_3(%arg0: i32, %arg1: i32) -> (i32, i32) {
    %c0_i32 = arith.constant 0 : i32
    %c0_i32_0 = arith.constant 0 : i32
    return %c0_i32, %arg1 : i32, i32
  }
  func.func @transform_4(%arg0: i32, %arg1: i32) -> (i32, i32) {
    %c0_i32 = arith.constant 0 : i32
    %c0_i32_0 = arith.constant 0 : i32
    return %c0_i32, %arg1 : i32, i32
  }
  func.func @transform_5(%arg0: i32, %arg1: i32) -> (i32, i32) {
    %c0_i32 = arith.constant 0 : i32
    %c0_i32_0 = arith.constant 0 : i32
    return %arg1, %c0_i32 : i32, i32
  }
  func.func @transform_6(%arg0: i32, %arg1: i32) -> (i32, i32) {
    %c0_i32 = arith.constant 0 : i32
    %c0_i32_0 = arith.constant 0 : i32
    %c0_i32_1 = arith.constant 0 : i32
    return %c0_i32, %c0_i32_0 : i32, i32
  }
  func.func @transform_7(%arg0: i32, %arg1: i32) -> (i32, i32, i32) {
    %c0_i32 = arith.constant 0 : i32
    %c0_i32_0 = arith.constant 0 : i32
    %c0_i32_1 = arith.constant 0 : i32
    return %arg0, %c0_i32, %c0_i32_0 : i32, i32, i32
  }
}

module attributes {stable_mosaic.version = 11 : i64} {
  func.func @_mlp_kernel(%arg0: i32, %arg1: i32, %arg2: memref<1x2x16xf32, #tpu.memory_space<vmem>>, %arg3: memref<16x64xf32, #tpu.memory_space<vmem>>, %arg4: memref<1x64xf32, #tpu.memory_space<vmem>>, %arg5: memref<1x64xf32, #tpu.memory_space<vmem>>, %arg6: memref<1x64xf32, #tpu.memory_space<vmem>>, %arg7: memref<64x16xf32, #tpu.memory_space<vmem>>, %arg8: memref<1x16xf32, #tpu.memory_space<vmem>>, %arg9: memref<1x2x16xf32, #tpu.memory_space<vmem>>, %arg10: memref<1x2x16xf32, #tpu.memory_space<vmem>>, %arg11: memref<2x16xf32, #tpu.memory_space<vmem>>) attributes {dimension_semantics = [#tpu.dimension_semantics<parallel>, #tpu.dimension_semantics<arbitrary>], iteration_bounds = array<i64: 2, 1>, scalar_prefetch = 0 : i64, scratch_operands = 1 : i64, tpu.core_type = #tpu.core_type<tc>, window_params = [{transform_indices = @transform_0, window_bounds = array<i64: 1, 2, 16>}, {transform_indices = @transform_1, window_bounds = array<i64: 16, 64>}, {transform_indices = @transform_2, window_bounds = array<i64: 1, 64>}, {transform_indices = @transform_3, window_bounds = array<i64: 1, 64>}, {transform_indices = @transform_4, window_bounds = array<i64: 1, 64>}, {transform_indices = @transform_5, window_bounds = array<i64: 64, 16>}, {pipeline_mode = #tpu.pipeline_mode<synchronous>, transform_indices = @transform_6, window_bounds = array<i64: 1, 16>}, {transform_indices = @transform_7, window_bounds = array<i64: 1, 2, 16>}, {transform_indices = @transform_8, window_bounds = array<i64: 1, 2, 16>}]} {
    %c0_i32 = arith.constant 0 : i32
    %0 = arith.cmpi eq, %arg1, %c0_i32 : i32
    %1 = arith.extui %0 : i1 to i32
    %c0_i32_0 = arith.constant 0 : i32
    %2 = arith.cmpi ne, %1, %c0_i32_0 : i32
    scf.if %2 {
      %cst_28 = arith.constant 0.000000e+00 : f32
      %51 = vector.broadcast %cst_28 : f32 to vector<2x16xf32>
      %c0_29 = arith.constant 0 : index
      %c0_30 = arith.constant 0 : index
      %52 = vector.load %arg11[%c0_29, %c0_30] : memref<2x16xf32, #tpu.memory_space<vmem>>, vector<2x16xf32>
      tpu.vector_store %arg11[%c0_29, %c0_30], %51 {strides = array<i32>} : memref<2x16xf32, #tpu.memory_space<vmem>>, vector<2x16xf32>,
    } else {
    }
    %c0 = arith.constant 0 : index
    %c0_1 = arith.constant 0 : index
    %3 = vector.load %arg3[%c0, %c0_1] : memref<16x64xf32, #tpu.memory_space<vmem>>, vector<16x64xf32>
    %c0_2 = arith.constant 0 : index
    %c0_3 = arith.constant 0 : index
    %4 = vector.load %arg4[%c0_2, %c0_3] : memref<1x64xf32, #tpu.memory_space<vmem>>, vector<1x64xf32>
    %c0_4 = arith.constant 0 : index
    %c0_5 = arith.constant 0 : index
    %5 = vector.load %arg5[%c0_4, %c0_5] : memref<1x64xf32, #tpu.memory_space<vmem>>, vector<1x64xf32>
    %c0_6 = arith.constant 0 : index
    %c0_7 = arith.constant 0 : index
    %6 = vector.load %arg6[%c0_6, %c0_7] : memref<1x64xf32, #tpu.memory_space<vmem>>, vector<1x64xf32>
    %c0_8 = arith.constant 0 : index
    %c0_9 = arith.constant 0 : index
    %7 = vector.load %arg7[%c0_8, %c0_9] : memref<64x16xf32, #tpu.memory_space<vmem>>, vector<64x16xf32>
    %c0_10 = arith.constant 0 : index
    %c0_11 = arith.constant 0 : index
    %8 = vector.load %arg8[%c0_10, %c0_11] : memref<1x16xf32, #tpu.memory_space<vmem>>, vector<1x16xf32>
    %c0_12 = arith.constant 0 : index
    %c0_13 = arith.constant 0 : index
    %c0_14 = arith.constant 0 : index
    %9 = vector.load %arg2[%c0_12, %c0_13, %c0_14] : memref<1x2x16xf32, #tpu.memory_space<vmem>>, vector<1x2x16xf32>
    %10 = vector.shape_cast %9 : vector<1x2x16xf32> to vector<2x16xf32>
    %11 = arith.truncf %10 : vector<2x16xf32> to vector<2x16xbf16>
    %12 = arith.truncf %3 : vector<16x64xf32> to vector<16x64xbf16>
    %cst = arith.constant dense<0.000000e+00> : vector<2x64xf32>
    %13 = tpu.matmul %11, %12, %cst {dimension_numbers = #tpu.dot_dimension_numbers<[1], [0], [0], [1], [0, 0, 1, 1], [], []>} : vector<2x16xbf16>, vector<16x64xbf16>, vector<2x64xf32> -> vector<2x64xf32>
    %14 = vector.broadcast %4 : vector<1x64xf32> to vector<2x64xf32>
    %15 = arith.addf %13, %14 : vector<2x64xf32>
    %cst_15 = arith.constant dense<0.000000e+00> : vector<64xf32>
    %16 = vector.multi_reduction <add>, %15, %cst_15 [0] : vector<2x64xf32> to vector<64xf32>
    %17 = vector.shape_cast %16 : vector<64xf32> to vector<1x64xf32>
    %cst_16 = arith.constant 2.000000e+00 : f32
    %18 = vector.broadcast %cst_16 : f32 to vector<1x64xf32>
    %19 = arith.divf %17, %18 : vector<1x64xf32>
    %20 = vector.broadcast %19 : vector<1x64xf32> to vector<2x64xf32>
    %21 = arith.subf %15, %20 : vector<2x64xf32>
    %22 = vector.broadcast %19 : vector<1x64xf32> to vector<2x64xf32>
    %23 = arith.subf %15, %22 : vector<2x64xf32>
    %24 = arith.mulf %21, %23 : vector<2x64xf32>
    %cst_17 = arith.constant dense<0.000000e+00> : vector<64xf32>
    %25 = vector.multi_reduction <add>, %24, %cst_17 [0] : vector<2x64xf32> to vector<64xf32>
    %26 = vector.shape_cast %25 : vector<64xf32> to vector<1x64xf32>
    %cst_18 = arith.constant 2.000000e+00 : f32
    %27 = vector.broadcast %cst_18 : f32 to vector<1x64xf32>
    %28 = arith.divf %26, %27 : vector<1x64xf32>
    %29 = vector.broadcast %19 : vector<1x64xf32> to vector<2x64xf32>
    %30 = arith.subf %15, %29 : vector<2x64xf32>
    %cst_19 = arith.constant 9.99999974E-6 : f32
    %31 = vector.broadcast %cst_19 : f32 to vector<1x64xf32>
    %32 = arith.addf %28, %31 : vector<1x64xf32>
    %33 = math.rsqrt %32 : vector<1x64xf32>
    %34 = vector.broadcast %33 : vector<1x64xf32> to vector<2x64xf32>
    %35 = arith.mulf %30, %34 : vector<2x64xf32>
    %36 = vector.broadcast %5 : vector<1x64xf32> to vector<2x64xf32>
    %37 = arith.mulf %35, %36 : vector<2x64xf32>
    %38 = vector.broadcast %6 : vector<1x64xf32> to vector<2x64xf32>
    %39 = arith.addf %37, %38 : vector<2x64xf32>
    %cst_20 = arith.constant 0.000000e+00 : f32
    %40 = vector.broadcast %cst_20 : f32 to vector<2x64xf32>
    %41 = arith.maximumf %39, %40 : vector<2x64xf32>
    %c0_21 = arith.constant 0 : index
    %c0_22 = arith.constant 0 : index
    %42 = vector.load %arg11[%c0_21, %c0_22] : memref<2x16xf32, #tpu.memory_space<vmem>>, vector<2x16xf32>
    %43 = arith.truncf %41 : vector<2x64xf32> to vector<2x64xbf16>
    %44 = arith.truncf %7 : vector<64x16xf32> to vector<64x16xbf16>
    %cst_23 = arith.constant dense<0.000000e+00> : vector<2x16xf32>
    %45 = tpu.matmul %43, %44, %cst_23 {dimension_numbers = #tpu.dot_dimension_numbers<[1], [0], [0], [1], [0, 0, 1, 1], [], []>} : vector<2x64xbf16>, vector<64x16xbf16>, vector<2x16xf32> -> vector<2x16xf32>
    %46 = arith.addf %42, %45 : vector<2x16xf32>
    %c0_24 = arith.constant 0 : index
    %c0_25 = arith.constant 0 : index
    %47 = vector.load %arg11[%c0_24, %c0_25] : memref<2x16xf32, #tpu.memory_space<vmem>>, vector<2x16xf32>
    tpu.vector_store %arg11[%c0_24, %c0_25], %46 {strides = array<i32>} : memref<2x16xf32, #tpu.memory_space<vmem>>, vector<2x16xf32>,
    %c0_i32_26 = arith.constant 0 : i32
    %48 = arith.cmpi eq, %arg1, %c0_i32_26 : i32
    %49 = arith.extui %48 : i1 to i32
    %c0_i32_27 = arith.constant 0 : i32
    %50 = arith.cmpi ne, %49, %c0_i32_27 : i32
    scf.if %50 {
      %c0_28 = arith.constant 0 : index
      %c0_29 = arith.constant 0 : index
      %51 = vector.load %arg11[%c0_28, %c0_29] : memref<2x16xf32, #tpu.memory_space<vmem>>, vector<2x16xf32>
      %52 = vector.broadcast %8 : vector<1x16xf32> to vector<2x16xf32>
      %53 = arith.addf %51, %52 : vector<2x16xf32>
      %c0_30 = arith.constant 0 : index
      %c0_31 = arith.constant 0 : index
      %c0_32 = arith.constant 0 : index
      %54 = vector.load %arg9[%c0_30, %c0_31, %c0_32] : memref<1x2x16xf32, #tpu.memory_space<vmem>>, vector<1x2x16xf32>
      %55 = vector.shape_cast %54 : vector<1x2x16xf32> to vector<2x16xf32>
      %56 = arith.mulf %53, %53 : vector<2x16xf32>
      %cst_33 = arith.constant dense<0.000000e+00> : vector<2xf32>
      %57 = vector.multi_reduction <add>, %56, %cst_33 [1] : vector<2x16xf32> to vector<2xf32>
      %58 = vector.shape_cast %57 : vector<2xf32> to vector<2x1xf32>
      %59 = math.sqrt %58 : vector<2x1xf32>
      %cst_34 = arith.constant 9.99999996E-13 : f32
      %60 = vector.broadcast %cst_34 : f32 to vector<2x1xf32>
      %61 = arith.maximumf %59, %60 : vector<2x1xf32>
      %62 = tpu.reciprocal %61 {approx = true} : vector<2x1xf32> -> vector<2x1xf32>
      %63 = vector.broadcast %62 : vector<2x1xf32> to vector<2x16xf32>
      %64 = arith.mulf %53, %63 : vector<2x16xf32>
      %65 = arith.mulf %55, %55 : vector<2x16xf32>
      %cst_35 = arith.constant dense<0.000000e+00> : vector<2xf32>
      %66 = vector.multi_reduction <add>, %65, %cst_35 [1] : vector<2x16xf32> to vector<2xf32>
      %67 = vector.shape_cast %66 : vector<2xf32> to vector<2x1xf32>
      %68 = math.sqrt %67 : vector<2x1xf32>
      %cst_36 = arith.constant 9.99999996E-13 : f32
      %69 = vector.broadcast %cst_36 : f32 to vector<2x1xf32>
      %70 = arith.maximumf %68, %69 : vector<2x1xf32>
      %71 = tpu.reciprocal %70 {approx = true} : vector<2x1xf32> -> vector<2x1xf32>
      %72 = vector.broadcast %71 : vector<2x1xf32> to vector<2x16xf32>
      %73 = arith.mulf %55, %72 : vector<2x16xf32>
      %74 = arith.mulf %64, %73 : vector<2x16xf32>
      %cst_37 = arith.constant dense<0.000000e+00> : vector<2xf32>
      %75 = vector.multi_reduction <add>, %74, %cst_37 [1] : vector<2x16xf32> to vector<2xf32>
      %76 = vector.shape_cast %75 : vector<2xf32> to vector<2x1xf32>
      %cst_38 = arith.constant 2.000000e+00 : f32
      %77 = vector.broadcast %cst_38 : f32 to vector<2x1xf32>
      %78 = arith.mulf %77, %76 : vector<2x1xf32>
      %cst_39 = arith.constant 2.000000e+00 : f32
      %79 = vector.broadcast %cst_39 : f32 to vector<2x1xf32>
      %80 = arith.subf %79, %78 : vector<2x1xf32>
      %81 = vector.shape_cast %80 : vector<2x1xf32> to vector<2x1xf32>
      %82 = vector.broadcast %81 : vector<2x1xf32> to vector<2x16xf32>
      %83 = vector.shape_cast %82 : vector<2x16xf32> to vector<1x2x16xf32>
      %c0_40 = arith.constant 0 : index
      %c0_41 = arith.constant 0 : index
      %c0_42 = arith.constant 0 : index
      %84 = vector.load %arg10[%c0_40, %c0_41, %c0_42] : memref<1x2x16xf32, #tpu.memory_space<vmem>>, vector<1x2x16xf32>
      tpu.vector_store %arg10[%c0_40, %c0_41, %c0_42], %83 {strides = array<i32>} : memref<1x2x16xf32, #tpu.memory_space<vmem>>, vector<1x2x16xf32>,
    } else {
    }
    return
  }
  func.func @transform_0(%arg0: i32, %arg1: i32) -> (i32, i32, i32) {
    %c0_i32 = arith.constant 0 : i32
    %c0_i32_0 = arith.constant 0 : i32
    %c0_i32_1 = arith.constant 0 : i32
    return %arg0, %c0_i32, %c0_i32_0 : i32, i32, i32
  }
  func.func @transform_1(%arg0: i32, %arg1: i32) -> (i32, i32) {
    %c0_i32 = arith.constant 0 : i32
    %c0_i32_0 = arith.constant 0 : i32
    return %c0_i32, %arg1 : i32, i32
  }
  func.func @transform_2(%arg0: i32, %arg1: i32) -> (i32, i32) {
    %c0_i32 = arith.constant 0 : i32
    %c0_i32_0 = arith.constant 0 : i32
    return %c0_i32, %arg1 : i32, i32
  }
  func.func @transform_3(%arg0: i32, %arg1: i32) -> (i32, i32) {
    %c0_i32 = arith.constant 0 : i32
    %c0_i32_0 = arith.constant 0 : i32
    return %c0_i32, %arg1 : i32, i32
  }
  func.func @transform_4(%arg0: i32, %arg1: i32) -> (i32, i32) {
    %c0_i32 = arith.constant 0 : i32
    %c0_i32_0 = arith.constant 0 : i32
    return %c0_i32, %arg1 : i32, i32
  }
  func.func @transform_5(%arg0: i32, %arg1: i32) -> (i32, i32) {
    %c0_i32 = arith.constant 0 : i32
    %c0_i32_0 = arith.constant 0 : i32
    return %arg1, %c0_i32 : i32, i32
  }
  func.func @transform_6(%arg0: i32, %arg1: i32) -> (i32, i32) {
    %c0_i32 = arith.constant 0 : i32
    %c0_i32_0 = arith.constant 0 : i32
    %c0_i32_1 = arith.constant 0 : i32
    return %c0_i32, %c0_i32_0 : i32, i32
  }
  func.func @transform_7(%arg0: i32, %arg1: i32) -> (i32, i32, i32) {
    %c1_i32 = arith.constant 1 : i32
    %0 = arith.subi %c1_i32, %arg0 : i32
    %c0_i32 = arith.constant 0 : i32
    %c0_i32_0 = arith.constant 0 : i32
    %c0_i32_1 = arith.constant 0 : i32
    return %0, %c0_i32, %c0_i32_0 : i32, i32, i32
  }
  func.func @transform_8(%arg0: i32, %arg1: i32) -> (i32, i32, i32) {
    %c0_i32 = arith.constant 0 : i32
    %c0_i32_0 = arith.constant 0 : i32
    %c0_i32_1 = arith.constant 0 : i32
    return %arg0, %c0_i32, %c0_i32_0 : i32, i32, i32
  }
}

</mosaic_0001>

<bundles_post_ra>
// kernel: byol_forward.5
= control target key start
LH: loop header
LB: loop body
LE: loop exit
PB: predicated region body
PF: predicated region fallthrough
CT: control target
= control target key end

     0   :  { %s695_s12 = smov 0   ;;  %s697_s13 = smov 0   ;;  %s833_s0 = inlined_call_operand.vmem [shape: f32[2,2,1024], index: 0, kind: input, shape index: {}]   ;;  %s834_s1 = inlined_call_operand.vmem [shape: f32[1024,32], index: 1, kind: input, shape index: {}]   ;;  %s835_s2 = inlined_call_operand.vmem [shape: f32[1,32], index: 2, kind: input, shape index: {}]   ;;  %s836_s3 = inlined_call_operand.vmem [shape: f32[2,2,32], index: 3, kind: output, shape index: {}]  }
   0x1   :  { %s699_s14 = smov 0   ;;  %s701_s15 = smov 0  }
   0x2   :  { %s703_s16 = smov 0  }
   0x3 LB: > { %s22_s17 = sadd.s32 1, %s663_s14  ;;  %s25_s18 = sadd.s32 1, %s667_s15  ;;  %s671_s16 = sphi %s703_s16, %s13_s16   ;;  %s667_s15 = sphi %s701_s15, %s840_s15   ;;  %s663_s14 = sphi %s699_s14, %s839_s14   ;;  %s659_s13 = sphi %s697_s13, %s838_s13   ;;  %s655_s12 = sphi %s695_s12, %s837_s12  }
   0x4   : > { %p23_p0 = scmp.ge.s32.totalorder %s22_s17, 2  ;;  %p534_p1 = scmp.ge.s32.totalorder %s671_s16, 1 }
   0x5   : > { %p167_p2 = scmp.lt.s32.totalorder %s671_s16, 5 }
   0x6   : > { %s842_s17 = smov (%p23_p0, %s22_s17), 0  ;;  %s844_s18 = smov (!%p23_p0, %s25_s18), %s667_s15 }
   0x7   : > { %p168_p3 = pnand %p534_p1, %p167_p2  ;;  %p27_p4 = scmp.ge.s32.totalorder %s844_s18, 2 }
   0x8   : > { %s535_s19 = sshll.u32 (!%p168_p3), %s655_s12, 2  ;;  %p200_p5 = scmp.lt.s32.totalorder (!%p168_p3), %s659_s13, 1 }
   0x9   : > { %s846_s18 = smov (%p27_p4, %s844_s18), 0  ;;  %171 = sbr.rel (%p168_p3) target bundleno = 277 (0x115), region = 32 }
   0xa   : > { %p202_p6 = scmp.lt.s32.totalorder (!%p168_p3), %s535_s19, 7  ;;  %s538_s20 = sshll.u32 (!%p168_p3), %s655_s12, 6 }
   0xb   : > { %p210_p7 = scmp.lt.s32.totalorder (!%p168_p3), %s538_s20, 127  ;;  %p541_p8 = scmp.ne.s32.totalorder (!%p168_p3), %s655_s12, 0 }
   0xe   : > { %s848_s13 = smov (!%p200_p5, %s659_s13), 1  ;;  %s850_s19 = smov (!%p202_p6, %s535_s19), 7 }
   0xf   : > { %s536_s21 = sshll.u32 %s848_s13, 3  ;;  %s540_s23 = sshll.u32 %s848_s13, 1 }
  0x10   : > { %s205_s22 = sadd.s32 %s536_s21, %s850_s19  ;;  %s732_s27 = scalar_lea.vmem %s836_s3, %s540_s23 }
  0x11   : > { %s537_s24 = sshll.u32 %s205_s22, 1  ;;  %s852_s20 = smov (!%p210_p7, %s538_s20), 127 }
  0x12   : > { %s737_s30 = scalar_lea.vmem %s833_s0, %s537_s24  ;;  %s539_s4 = sshll.u32 %s852_s20, 3 }
  0x13   : > { %s742_s7 = scalar_lea.vmem %s834_s1, %s539_s4  ;;  %223 = sbr.rel (%p541_p8) target bundleno = 26 (0x1a), region = 36 }
  0x18   : > { %vm224_vm0 = vcmask 254976   ;;  %v673_v0 = vmov 0.0  }
  0x19   : > { %225 = vst.msk [vmem:[#allocation2] sm:$0x3] %vm224_vm0, %v673_v0 }
  0x1a PF: > { %v256_v1 = vld [vmem:[%s742_s7 + $0xf0] sm:$0xff]  ;;  %v257_v2 = vld [vmem:[%s742_s7 + $0xf8] sm:$0xff]  ;;  %v750_v3 = vld [vmem:[%s835_s2] ss:$0 sm:$0xff]  ;;  %v674_v48 = vmov 1983009808   ;;  %v298_v50 = vlaneseq }
  0x1b   : > { %v334_v4 = vpack.c.bf16 %v257_v2, %v256_v1  ;;  %v288_v5 = vld [vmem:[%s742_s7 + $0x1f0] sm:$0xff]  ;;  %v289_v6 = vld [vmem:[%s742_s7 + $0x1f8] sm:$0xff]  ;;  %v254_v14 = vld [vmem:[%s742_s7 + $0xe0] sm:$0xff]  ;;  %v296_v49 = vunpack.c.l.s4 %v674_v48  ;;  %vm432_vm1 = vcmask 254976   ;;  %p542_p9 = scmp.ne.s32.totalorder %s655_s12, 1 }
  0x1c   : > { %v240_v7 = vld [vmem:[%s742_s7 + $0x70] sm:$0xff]  ;;  %v350_v8 = vpack.c.bf16 %v289_v6, %v288_v5  ;;  %v241_v9 = vld [vmem:[%s742_s7 + $0x78] sm:$0xff]  ;;  %v255_v15 = vld [vmem:[%s742_s7 + $0xe8] sm:$0xff]  ;;  %v299_v1 = vshrl.u32 %v298_v50, 7 }
  0x1d   : > { %v272_v10 = vld [vmem:[%s742_s7 + $0x170] sm:$0xff]  ;;  %v273_v11 = vld [vmem:[%s742_s7 + $0x178] sm:$0xff]  ;;  %546 = vmatprep.subr.bf16.mxu0 %v334_v4  ;;  %v326_v12 = vpack.c.bf16 %v241_v9, %v240_v7  ;;  %v286_v16 = vld [vmem:[%s742_s7 + $0x1e0] sm:$0xff]  ;;  %v333_v17 = vpack.c.bf16 %v255_v15, %v254_v14  ;;  %v297_v0 = vunpack.c.0.s8 %v296_v49 }
  0x1e   : > { %v342_v13 = vpack.c.bf16 %v273_v11, %v272_v10  ;;  %568 = vmatprep.subr.bf16.mxu1 %v350_v8  ;;  %v287_v18 = vld [vmem:[%s742_s7 + $0x1e8] sm:$0xff]  ;;  %v238_v19 = vld [vmem:[%s742_s7 + $0x60] sm:$0xff]  ;;  %v252_v25 = vld [vmem:[%s742_s7 + $0xd0] sm:$0xff] }
  0x1f   : > { %v239_v20 = vld [vmem:[%s742_s7 + $0x68] sm:$0xff]  ;;  %547 = vmatpush3.bf16.msra.mxu0 %v326_v12  ;;  %v349_v21 = vpack.c.bf16 %v287_v18, %v286_v16  ;;  %v270_v23 = vld [vmem:[%s742_s7 + $0x160] sm:$0xff]  ;;  %v253_v27 = vld [vmem:[%s742_s7 + $0xd8] sm:$0xff]  ;;  %v300_v16 = vsub.s32 %v297_v0, %v299_v1 }
  0x20   : > { %569 = vmatpush3.bf16.msra.mxu1 %v342_v13  ;;  %v325_v22 = vpack.c.bf16 %v239_v20, %v238_v19  ;;  %v271_v24 = vld [vmem:[%s742_s7 + $0x168] sm:$0xff]  ;;  %548 = vmatprep.subr.bf16.mxu0 %v333_v17  ;;  %v284_v28 = vld [vmem:[%s742_s7 + $0x1d0] sm:$0xff]  ;;  %v285_v29 = vld [vmem:[%s742_s7 + $0x1d8] sm:$0xff]  ;;  %v332_v30 = vpack.c.bf16 %v253_v27, %v252_v25 }
  0x21   : > { %v341_v26 = vpack.c.bf16 %v271_v24, %v270_v23  ;;  %570 = vmatprep.subr.bf16.mxu1 %v349_v21  ;;  %v348_v31 = vpack.c.bf16 %v285_v29, %v284_v28  ;;  %v236_v32 = vld [vmem:[%s742_s7 + $0x50] sm:$0xff]  ;;  %v237_v33 = vld [vmem:[%s742_s7 + $0x58] sm:$0xff]  ;;  %v250_v36 = vld [vmem:[%s742_s7 + $0xc0] sm:$0xff] }
  0x22   : > { %v268_v34 = vld [vmem:[%s742_s7 + $0x150] sm:$0xff]  ;;  %v269_v35 = vld [vmem:[%s742_s7 + $0x158] sm:$0xff]  ;;  %v251_v37 = vld [vmem:[%s742_s7 + $0xc8] sm:$0xff]  ;;  %v324_v38 = vpack.c.bf16 %v237_v33, %v236_v32 }
  0x23   : > { %549 = vmatpush3.bf16.msra.mxu0 %v325_v22  ;;  %v340_v39 = vpack.c.bf16 %v269_v35, %v268_v34  ;;  %v282_v40 = vld [vmem:[%s742_s7 + $0x1c0] sm:$0xff]  ;;  %v283_v41 = vld [vmem:[%s742_s7 + $0x1c8] sm:$0xff]  ;;  %v331_v43 = vpack.c.bf16 %v251_v37, %v250_v36  ;;  %v248_v51 = vld [vmem:[%s742_s7 + $0xb0] sm:$0xff] }
  0x24   : > { %571 = vmatpush3.bf16.msra.mxu1 %v341_v26  ;;  %v234_v42 = vld [vmem:[%s742_s7 + $0x40] sm:$0xff]  ;;  %550 = vmatprep.subr.bf16.mxu0 %v332_v30  ;;  %v347_v44 = vpack.c.bf16 %v283_v41, %v282_v40  ;;  %v235_v45 = vld [vmem:[%s742_s7 + $0x48] sm:$0xff]  ;;  %v249_v52 = vld [vmem:[%s742_s7 + $0xb8] sm:$0xff] }
  0x25   : > { %572 = vmatprep.subr.bf16.mxu1 %v348_v31  ;;  %v266_v46 = vld [vmem:[%s742_s7 + $0x140] sm:$0xff]  ;;  %v267_v47 = vld [vmem:[%s742_s7 + $0x148] sm:$0xff]  ;;  %v280_v53 = vld [vmem:[%s742_s7 + $0x1b0] sm:$0xff]  ;;  %v323_v55 = vpack.c.bf16 %v235_v45, %v234_v42  ;;  %v330_v59 = vpack.c.bf16 %v249_v52, %v248_v51 }
  0x26   : > { %v281_v54 = vld [vmem:[%s742_s7 + $0x1b8] sm:$0xff]  ;;  %v339_v56 = vpack.c.bf16 %v267_v47, %v266_v46  ;;  %v232_v57 = vld [vmem:[%s742_s7 + $0x30] sm:$0xff]  ;;  %v246_v63 = vld [vmem:[%s742_s7 + $0xa0] sm:$0xff] }
  0x27   : > { %551 = vmatpush3.bf16.msra.mxu0 %v324_v38  ;;  %v233_v58 = vld [vmem:[%s742_s7 + $0x38] sm:$0xff]  ;;  %v346_v60 = vpack.c.bf16 %v281_v54, %v280_v53  ;;  %v264_v61 = vld [vmem:[%s742_s7 + $0x130] sm:$0xff]  ;;  %v247_v2 = vld [vmem:[%s742_s7 + $0xa8] sm:$0xff] }
  0x28   : > { %573 = vmatpush3.bf16.msra.mxu1 %v340_v39  ;;  %552 = vmatprep.subr.bf16.mxu0 %v331_v43  ;;  %v265_v62 = vld [vmem:[%s742_s7 + $0x138] sm:$0xff]  ;;  %v278_v4 = vld [vmem:[%s742_s7 + $0x1a0] sm:$0xff]  ;;  %v279_v5 = vld [vmem:[%s742_s7 + $0x1a8] sm:$0xff]  ;;  %v322_v6 = vpack.c.bf16 %v233_v58, %v232_v57  ;;  %v329_v11 = vpack.c.bf16 %v247_v2, %v246_v63 }
  0x29   : > { %574 = vmatprep.subr.bf16.mxu1 %v347_v44  ;;  %v338_v7 = vpack.c.bf16 %v265_v62, %v264_v61  ;;  %v230_v8 = vld [vmem:[%s742_s7 + $0x20] sm:$0xff]  ;;  %v231_v9 = vld [vmem:[%s742_s7 + $0x28] sm:$0xff]  ;;  %v345_v12 = vpack.c.bf16 %v279_v5, %v278_v4  ;;  %v244_v14 = vld [vmem:[%s742_s7 + $0x90] sm:$0xff] }
  0x2a   : > { %v262_v10 = vld [vmem:[%s742_s7 + $0x120] sm:$0xff]  ;;  %v263_v13 = vld [vmem:[%s742_s7 + $0x128] sm:$0xff]  ;;  %v245_v15 = vld [vmem:[%s742_s7 + $0x98] sm:$0xff]  ;;  %v321_v20 = vpack.c.bf16 %v231_v9, %v230_v8 }
  0x2b   : > { %553 = vmatpush3.bf16.msra.mxu0 %v323_v55  ;;  %v276_v17 = vld [vmem:[%s742_s7 + $0x190] sm:$0xff]  ;;  %v277_v18 = vld [vmem:[%s742_s7 + $0x198] sm:$0xff]  ;;  %v337_v21 = vpack.c.bf16 %v263_v13, %v262_v10  ;;  %v328_v22 = vpack.c.bf16 %v245_v15, %v244_v14  ;;  %v291_v25 = vld [vmem:[%s737_s30] sm:$0xff] }
  0x2c   : > { %575 = vmatpush3.bf16.msra.mxu1 %v339_v56  ;;  %554 = vmatprep.subr.bf16.mxu0 %v330_v59  ;;  %v228_v19 = vld [vmem:[%s742_s7 + $0x10] sm:$0xff]  ;;  %v229_v23 = vld [vmem:[%s742_s7 + $0x18] sm:$0xff]  ;;  %v344_v26 = vpack.c.bf16 %v277_v18, %v276_v17  ;;  %v242_v28 = vld [vmem:[%s742_s7 + $0x80] sm:$0xff]  ;;  %v301_v30 = vrot.slane %v291_v25, %v300_v16  ;;  %v294_v31 = vcombine.high %v291_v25, %v291_v25 }
  0x2d   : > { %576 = vmatprep.subr.bf16.mxu1 %v346_v60  ;;  %v260_v24 = vld [vmem:[%s742_s7 + $0x110] sm:$0xff]  ;;  %v261_v27 = vld [vmem:[%s742_s7 + $0x118] sm:$0xff]  ;;  %v243_v29 = vld [vmem:[%s742_s7 + $0x88] sm:$0xff]  ;;  %v320_v36 = vpack.c.bf16 %v229_v23, %v228_v19 }
  0x2e   : > { %v274_v32 = vld [vmem:[%s742_s7 + $0x180] sm:$0xff]  ;;  %v275_v33 = vld [vmem:[%s742_s7 + $0x188] sm:$0xff]  ;;  %v309_v34 = vcombine.high %v301_v30, %v301_v30  ;;  %v308_v35 = vrot.slane %v294_v31, %v300_v16  ;;  %v336_v37 = vpack.c.bf16 %v261_v27, %v260_v24  ;;  %v327_v38 = vpack.c.bf16 %v243_v29, %v242_v28 }
  0x2f   : > { %555 = vmatpush3.bf16.msra.mxu0 %v322_v6  ;;  %v226_v39 = vld [vmem:[%s742_s7] sm:$0xff]  ;;  %v343_v40 = vpack.c.bf16 %v275_v33, %v274_v32  ;;  %v227_v41 = vld [vmem:[%s742_s7 + $0x8] sm:$0xff]  ;;  %v315_v49 = vpack.c.bf16 %v301_v30, %v301_v30 }
  0x30   : > { %577 = vmatpush3.bf16.msra.mxu1 %v338_v7  ;;  %556 = vmatprep.subr.bf16.mxu0 %v329_v11  ;;  %v258_v42 = vld [vmem:[%s742_s7 + $0x100] sm:$0xff]  ;;  %v259_v43 = vld [vmem:[%s742_s7 + $0x108] sm:$0xff]  ;;  %v316_v44 = vpack.c.bf16 %v309_v34, %v309_v34  ;;  %v310_v45 = vcombine.high %v308_v35, %v308_v35  ;;  %v319_v47 = vpack.c.bf16 %v227_v41, %v226_v39 }
  0x31   : > { %578 = vmatprep.subr.bf16.mxu1 %v345_v12  ;;  %v335_v48 = vpack.c.bf16 %v259_v43, %v258_v42  ;;  %v317_v50 = vpack.c.bf16 %v308_v35, %v308_v35  ;;  %v292_v57 = vld [vmem:[#allocation2] sm:$0x3] }
  0x32   : > { %383 = vmatprep.mubr.bf16.mxu0 %v316_v44  ;;  %v318_v46 = vpack.c.bf16 %v310_v45, %v310_v45 }
  0x33   : > { %557 = vmatpush3.bf16.msra.mxu0 %v321_v20 }
  0x34   : > { %579 = vmatpush3.bf16.msra.mxu1 %v337_v21  ;;  %558 = vmatprep.subr.bf16.mxu0 %v328_v22 }
  0x35   : > { %580 = vmatprep.subr.bf16.mxu1 %v344_v26  ;;  %423 = vmatprep.mubr.bf16.mxu1 %v318_v46 }
  0x37   : > { %559 = vmatpush3.bf16.msra.mxu0 %v320_v36 }
  0x38   : > { %581 = vmatpush3.bf16.msra.mxu1 %v336_v37  ;;  %560 = vmatprep.subr.bf16.mxu0 %v327_v38 }
  0x39   : > { %582 = vmatprep.subr.bf16.mxu1 %v343_v40 }
  0x3b   : > { %561 = vmatpush3.bf16.msra.mxu0 %v319_v47 }
  0x3c   : > { %583 = vmatpush3.bf16.msra.mxu1 %v335_v48 }
  0x3e   : > { %384 = vmatmul.mubr.bf16.vlgmr.msra.gmra.mxu0 %v315_v49 }
  0x3f   : > { %424 = vmatmul.mubr.bf16.vlgmr.msra.gmra.mxu1 %v317_v50 }
  0xfe   : > { %v562_v51 = vpop.f32.mrf.mxu0 }
  0xff   : > { %v584_v52 = vpop.f32.mrf.mxu1 }
 0x100   : > { %v563_v53 = vpop.f32.mrf.mxu0 }
 0x101   : > { %v585_v54 = vpop.f32.mrf.mxu1  ;;  %v564_v55 = vadd.f32 %v563_v53, %v562_v51 }
 0x102   : > { %v586_v56 = vadd.f32 %v585_v54, %v584_v52  ;;  %v565_v58 = vpop.f32.mrf.mxu0 }
 0x103   : > { %v587_v59 = vpop.f32.mrf.mxu1 }
 0x104   : > { %v426_v60 = vadd.f32 %v586_v56, %v564_v55  ;;  %v566_v61 = vpop.f32.mrf.mxu0  ;;  %437 = sbr.rel (%p542_p9) target bundleno = 277 (0x115), region = 40 }
 0x105   : > { %v588_v62 = vpop.f32.mrf.mxu1 }
 0x106   : > { %v431_v63 = vadd.f32 %v426_v60, %v292_v57 }
 0x108   : > { %433 = vst.msk [vmem:[#allocation2] sm:$0x3] %vm432_vm1, %v431_v63 }
 0x10f   : > { %v438_v0 = vld [vmem:[#allocation2] sm:$0x3] }
 0x110   : > { %v445_v1 = vadd.f32 %v750_v3, %v438_v0 }
 0x112   : > { %v446_v2 = vmax.f32 %v445_v1, 0.0 }
 0x114   : > { %447 = vst.msk [vmem:[%s732_s27] sm:$0x3] %vm432_vm1, %v446_v2 }
 0x115 PF: > { %s13_s16 = sadd.s32 1, %s671_s16   ;;  %s837_s12 = smov %s663_s14 }
 0x116   : > { %p10_p10 = scmp.ge.s32.totalorder %s13_s16, 6   ;;  %s838_s13 = smov %s667_s15 }
 0x117   : > { %s839_s14 = smov %s842_s17  ;;  %s840_s15 = smov %s846_s18 }
 0x118   :  { %12 = sbr.rel (!%p10_p10) target bundleno = 3 (0x3), region = 73 }

// kernel: byol_forward.6
= control target key start
LH: loop header
LB: loop body
LE: loop exit
PB: predicated region body
PF: predicated region fallthrough
CT: control target
= control target key end

     0   :  { %s817_s24 = smov 0   ;;  %s819_s25 = smov 0   ;;  %s908_s0 = inlined_call_operand.vmem [shape: f32[2,2,32], index: 0, kind: input, shape index: {}]   ;;  %s909_s1 = inlined_call_operand.vmem [shape: f32[32,64], index: 1, kind: input, shape index: {}]   ;;  %s910_s2 = inlined_call_operand.vmem [shape: f32[1,64], index: 2, kind: input, shape index: {}]   ;;  %s911_s3 = inlined_call_operand.vmem [shape: f32[1,64], index: 3, kind: input, shape index: {}]   ;;  %s912_s4 = inlined_call_operand.vmem [shape: f32[1,64], index: 4, kind: input, shape index: {}]   ;;  %s913_s5 = inlined_call_operand.vmem [shape: f32[64,16], index: 5, kind: input, shape index: {}]   ;;  %s914_s6 = inlined_call_operand.vmem [shape: f32[1,16], index: 6, kind: input, shape index: {}]   ;;  %s915_s7 = inlined_call_operand.vmem [shape: f32[2,2,16], index: 7, kind: output, shape index: {}]  }
   0x1   :  { %s821_s26 = smov 0  }
   0x2 LB: > { %s29_s27 = sadd.s32 1, %s769_s25  ;;  %p684_p0 = scmp.ge.s32.totalorder %s773_s26, 1  ;;  %s773_s26 = sphi %s821_s26, %s17_s26   ;;  %s769_s25 = sphi %s819_s25, %s917_s25   ;;  %s765_s24 = sphi %s817_s24, %s916_s24  }
   0x3   : > { %p31_p1 = scmp.ge.s32.totalorder %s29_s27, 2  ;;  %p292_p2 = scmp.lt.s32.totalorder %s773_s26, 3 }
   0x5   : > { %s919_s27 = smov (%p31_p1, %s29_s27), 0  ;;  %p293_p3 = pnand %p684_p0, %p292_p2 }
   0x6   : > { %p340_p4 = scmp.lt.s32.totalorder (!%p293_p3), %s765_s24, 1 }
   0x7   : > { %296 = sbr.rel (%p293_p3) target bundleno = 483 (0x1e3), region = 48 }
   0xc   : > { %v376_v0 = vld [vmem:[%s909_s1 + $0x10] sm:$0xff]  ;;  %v377_v1 = vld [vmem:[%s909_s1 + $0x18] sm:$0xff]  ;;  %v374_v2 = vld [vmem:[%s909_s1] sm:$0xff]  ;;  %v775_v3 = vmov 0.0   ;;  %vm776_vm0 = vmmov 0   ;;  %s921_s24 = smov (!%p340_p4, %s765_s24), 1 }
   0xd   : > { %703 = vmatprep.subr.bf16.mxu0 %v775_v3  ;;  %v393_v4 = vpack.c.bf16 %v377_v1, %v376_v0  ;;  %v375_v5 = vld [vmem:[%s909_s1 + $0x8] sm:$0xff]  ;;  %707 = vmatprep.mubr.msk.bf16.mxu0 %vm776_vm0, %v775_v3  ;;  %s685_s13 = sshll.u32 %s921_s24, 1  ;;  %vm400_vm1 = vcmask 261120   ;;  %v387_v9 = vld [vmem:[%s913_s5 + $0x30] sm:$0xff]  ;;  %v388_v10 = vld [vmem:[%s913_s5 + $0x38] sm:$0xff]  ;;  %vm372_vm2 = vcmask 123904  }
   0xe   : > { %711 = vmatprep.subr.bf16.mxu1 %v775_v3  ;;  %719 = vmatprep.mubr.msk.bf16.mxu1 %vm776_vm0, %v775_v3  ;;  %v392_v6 = vpack.c.bf16 %v375_v5, %v374_v2  ;;  %s343_s16 = scalar_lea.vmem %s908_s0, %s685_s13  ;;  %v487_v11 = vpack.c.bf16 %v388_v10, %v387_v9  ;;  %v385_v12 = vld [vmem:[%s913_s5 + $0x20] sm:$0xff]  ;;  %v386_v13 = vld [vmem:[%s913_s5 + $0x28] sm:$0xff]  ;;  %v383_v15 = vld [vmem:[%s913_s5 + $0x10] sm:$0xff]  ;;  %373 = vst.msk [vmem:[#allocation2] sm:$0x3] %vm372_vm2, %v775_v3  ;;  %vm444_vm3 = vcmask 517120   ;;  %s366_s29 = scalar_lea.vmem %s915_s7, %s685_s13 }
   0xf   : > { %704 = vmatpush3.bf16.msra.mxu0 %v393_v4  ;;  %v390_v7 = vld [vmem:[%s343_s16] sm:$0x3]  ;;  %v486_v14 = vpack.c.bf16 %v386_v13, %v385_v12  ;;  %v384_v16 = vld [vmem:[%s913_s5 + $0x18] sm:$0xff]  ;;  %v382_v19 = vld [vmem:[%s913_s5 + $0x8] sm:$0xff]  ;;  %vm488_vm4 = vcmask 523264  }
  0x10   : > { %705 = vmatprep.subr.bf16.mxu0 %v775_v3  ;;  %v391_v8 = vpack.c.bf16 %v390_v7, %v390_v7  ;;  %712 = vmatpush3.bf16.msra.mxu1 %v487_v11  ;;  %v485_v17 = vpack.c.bf16 %v384_v16, %v383_v15  ;;  %v381_v18 = vld [vmem:[%s913_s5] sm:$0xff] }
  0x11   : > { %713 = vmatprep.subr.bf16.mxu1 %v775_v3  ;;  %v484_v20 = vpack.c.bf16 %v382_v19, %v381_v18  ;;  %v687_v21 = vld [vmem:[%s910_s2] ss:$0 sm:$0xff] }
  0x12   : > { %v689_v47 = vld [vmem:[%s911_s3] ss:$0 sm:$0xff] }
  0x13   : > { %706 = vmatpush3.bf16.msra.mxu0 %v392_v6  ;;  %v690_v49 = vld [vmem:[%s912_s4] ss:$0 sm:$0xff] }
  0x14   : > { %714 = vmatpush3.bf16.msra.mxu1 %v486_v14  ;;  %v692_v60 = vld [vmem:[%s914_s6] ss:$0 sm:$0xff] }
  0x15   : > { %715 = vmatprep.subr.bf16.mxu1 %v775_v3  ;;  %v482_v54 = vld [vmem:[#allocation2] sm:$0x3] }
  0x16   : > { %708 = vmatmul.mubr.msk.bf16.vlgmr.msra.gmra.mxu0 %vm400_vm1, %v391_v8 }
  0x18   : > { %716 = vmatpush3.bf16.msra.mxu1 %v485_v17 }
  0x19   : > { %717 = vmatprep.subr.bf16.mxu1 %v775_v3 }
  0x1c   : > { %718 = vmatpush3.bf16.msra.mxu1 %v484_v20 }
  0xd6   : > { %v438_v22 = vpop.f32.mrf.mxu0 }
  0xd7   : > { %v439_v23 = vadd.f32 %v687_v21, %v438_v22 }
  0xd8   : > { %v709_v24 = vpop.f32.mrf.mxu0 }
  0xd9   : > { %v445_v25 = vsel %vm444_vm3, %v439_v23, 0.0 }
  0xda   : > { %v446_v26 = vrot.slane %v445_v25, 4  ;;  %v441_v27 = vpop.f32.mrf.mxu0 }
  0xdc   : > { %v447_v28 = vadd.f32 %v446_v26, %v445_v25  ;;  %v710_v29 = vpop.f32.mrf.mxu0 }
  0xde   : > { %v448_v30 = vrot.slane %v447_v28, 2 }
  0xe0   : > { %v449_v31 = vadd.f32 %v448_v30, %v447_v28 }
  0xe2   : > { %v450_v32 = vrot.slane %v449_v31, 1 }
  0xe4   : > { %v451_v33 = vadd.f32 %v450_v32, %v449_v31 }
  0xe6   : > { %v453_v34 = vmul.f32 0.5, %v451_v33 }
  0xe8   : > { %v454_v35 = vsub.f32 %v439_v23, %v453_v34 }
  0xea   : > { %v455_v36 = vmul.f32 %v454_v35, %v454_v35 }
  0xec   : > { %v456_v37 = vsel %vm444_vm3, %v455_v36, 0.0 }
  0xed   : > { %v457_v38 = vrot.slane %v456_v37, 4 }
  0xef   : > { %v458_v39 = vadd.f32 %v457_v38, %v456_v37 }
  0xf1   : > { %v459_v40 = vrot.slane %v458_v39, 2 }
  0xf3   : > { %v460_v41 = vadd.f32 %v459_v40, %v458_v39 }
  0xf5   : > { %v461_v42 = vrot.slane %v460_v41, 1 }
  0xf7   : > { %v462_v43 = vadd.f32 %v461_v42, %v460_v41 }
  0xf9   : > { %v463_v44 = vmul.f32 0.5, %v462_v43 }
  0xfb   : > { %v464_v45 = vadd.f32 1e-05, %v463_v44 }
  0xfd   : > { %749 = vrsqrt.f32 %v464_v45 }
 0x10a   : > { %v750_v46 = vpop.eup %749 }
 0x10b   : > { %v466_v48 = vmul.f32 %v750_v46, %v454_v35 }
 0x10d   : > { %v473_v50 = vmul.f32 %v689_v47, %v466_v48 }
 0x10f   : > { %v480_v51 = vadd.f32 %v690_v49, %v473_v50 }
 0x111   : > { %v481_v52 = vmax.f32 %v480_v51, 0.0 }
 0x113   : > { %v483_v53 = vpack.c.bf16 %v481_v52, %v481_v52 }
 0x115   : > { %720 = vmatmul.mubr.msk.bf16.vlgmr.msra.gmra.mxu1 %vm488_vm4, %v483_v53 }
 0x1d5   : > { %v526_v55 = vpop.f32.mrf.mxu1 }
 0x1d6   : > { %v532_v56 = vadd.f32 %v526_v55, %v482_v54 }
 0x1d7   : > { %v721_v57 = vpop.f32.mrf.mxu1 }
 0x1d8   : > { %534 = vst.msk [vmem:[#allocation2] sm:$0x3] %vm372_vm2, %v532_v56 }
 0x1d9   : > { %v529_v58 = vpop.f32.mrf.mxu1 }
 0x1db   : > { %v722_v59 = vpop.f32.mrf.mxu1 }
 0x1df   : > { %v538_v61 = vld [vmem:[#allocation2] sm:$0x3] }
 0x1e0   : > { %v545_v62 = vadd.f32 %v692_v60, %v538_v61 }
 0x1e2   : > { %546 = vst.msk [vmem:[%s366_s29] sm:$0x3] %vm372_vm2, %v545_v62 }
 0x1e3 PF: > { %s17_s26 = sadd.s32 1, %s773_s26   ;;  %s916_s24 = smov %s769_s25 }
 0x1e4   : > { %p14_p5 = scmp.ge.s32.totalorder %s17_s26, 4   ;;  %s917_s25 = smov %s919_s27 }
 0x1e6   :  { %16 = sbr.rel (!%p14_p5) target bundleno = 2 (0x2), region = 101 }

// kernel: byol_forward.8
= control target key start
LH: loop header
LB: loop body
LE: loop exit
PB: predicated region body
PF: predicated region fallthrough
CT: control target
= control target key end

     0   :  { %s2047_s0 = inlined_call_operand.vmem [shape: f32[2,2,32], index: 0, kind: input, shape index: {}]   ;;  %s2048_s1 = inlined_call_operand.vmem [shape: f32[32,64], index: 1, kind: input, shape index: {}]   ;;  %s2049_s2 = inlined_call_operand.vmem [shape: f32[1,64], index: 2, kind: input, shape index: {}]   ;;  %s2050_s3 = inlined_call_operand.vmem [shape: f32[1,64], index: 3, kind: input, shape index: {}]   ;;  %s2051_s4 = inlined_call_operand.vmem [shape: f32[1,64], index: 4, kind: input, shape index: {}]   ;;  %s2052_s5 = inlined_call_operand.vmem [shape: f32[64,16], index: 5, kind: input, shape index: {}]   ;;  %s2053_s6 = inlined_call_operand.vmem [shape: f32[1,16], index: 6, kind: input, shape index: {}]   ;;  %s2054_s7 = inlined_call_operand.vmem [shape: f32[32,64], index: 7, kind: input, shape index: {}]   ;;  %s2055_s8 = inlined_call_operand.vmem [shape: f32[1,64], index: 8, kind: input, shape index: {}]   ;;  %s2056_s9 = inlined_call_operand.vmem [shape: f32[1,64], index: 9, kind: input, shape index: {}]   ;;  %s2057_s10 = inlined_call_operand.vmem [shape: f32[1,64], index: 10, kind: input, shape index: {}]   ;;  %s2058_s11 = inlined_call_operand.vmem [shape: f32[64,16], index: 11, kind: input, shape index: {}]   ;;  %s2059_s12 = inlined_call_operand.vmem [shape: f32[1,16], index: 12, kind: input, shape index: {}]   ;;  %s2060_s13 = inlined_call_operand.vmem [shape: f32[2,2,16], index: 13, kind: output, shape index: {0}]   ;;  %s2061_s14 = inlined_call_operand.hbm [shape: f32[32,64], index: 14, kind: output, shape index: {1}]   ;;  %s2062_s15 = inlined_call_operand.hbm [shape: f32[1,64], index: 15, kind: output, shape index: {2}]   ;;  %s2063_s16 = inlined_call_operand.hbm [shape: f32[1,64], index: 16, kind: output, shape index: {3}]   ;;  %s2064_s17 = inlined_call_operand.hbm [shape: f32[1,64], index: 17, kind: output, shape index: {4}]   ;;  %s2065_s18 = inlined_call_operand.vmem [shape: f32[64,16], index: 18, kind: output, shape index: {5}]   ;;  %s2066_s19 = inlined_call_operand.hbm [shape: f32[1,16], index: 19, kind: output, shape index: {6}]  }
   0x1   :  { %2069 = sst [smem:[#allocation14_spill]] %s2047_s0 }
   0x2   :  { %2070 = sst [smem:[#allocation15_spill]] %s2048_s1 }
   0x3   :  { %2071 = sst [smem:[#allocation16_spill]] %s2049_s2 }
   0x4   :  { %2072 = sst [smem:[#allocation17_spill]] %s2050_s3 }
   0x5   :  { %2073 = sst [smem:[#allocation18_spill]] %s2052_s5 }
   0x6   :  { %2074 = sst [smem:[#allocation19_spill]] %s2054_s7 }
   0x7   :  { %25 = vsyncpa [#allocation4], 0 }
   0x8   :  { %26 = vsyncpa [#allocation6], 0 }
   0x9   :  { %27 = vsyncpa [#allocation9], 0  ;;  %s1801_s0 = smov 0   ;;  %s1803_s30 = smov 0  }
   0xa   :  { %s1805_s20 = smov 0  }
   0xb LB: > { %s45_s1 = sadd.s32 1, %s1686_s30  ;;  %p1424_p1 = scmp.ge.s32.totalorder %s1690_s20, 1  ;;  %s1690_s20 = sphi %s1805_s20, %s33_s20   ;;  %s1686_s30 = sphi %s1803_s30, %s2085_s30   ;;  %s1682_s0 = sphi %s1801_s0, %s2084_s0  }
   0xc   : > { %p47_p0 = scmp.ge.s32.totalorder %s45_s1, 2  ;;  %p647_p2 = scmp.lt.s32.totalorder %s1690_s20, 3 }
   0xe   : > { %s2087_s1 = smov (%p47_p0, %s45_s1), 0  ;;  %p648_p3 = pnand %p1424_p1, %p647_p2 }
   0xf   : > { %s2075_s7 = sld [smem:[#allocation19_spill]] (!%p648_p3)  ;;  %p742_p4 = scmp.lt.s32.totalorder (!%p648_p3), %s1682_s0, 1 }
  0x10   : > { %651 = sbr.rel (%p648_p3) target bundleno = 503 (0x1f7), region = 72  ;;  %s2076_s26 = sld [smem:[#allocation15_spill]] (!%p648_p3) }
  0x11   : > { %s2077_s2 = sld [smem:[#allocation14_spill]] (!%p648_p3)  ;;  %s2081_s24 = sadd.s32 (!%p648_p3), 4294967295, %s1690_s20  }
  0x12   : > { %s2078_s5 = sld [smem:[#allocation18_spill]] (!%p648_p3)  ;;  %p1974_p5 = scmp.eq.s32.totalorder (!%p648_p3), %s2081_s24, 1 }
  0x13   : > { %s2080_s21 = sld [smem:[#allocation17_spill]] (!%p648_p3)  ;;  %s1695_s3 = smov (!%p648_p3), [#allocation8]  }
  0x14   : > { %s1119_s27 = sshll.u32 (!%p648_p3), %s1695_s3, 4  ;;  %s1120_s27 = int_to_ptr.vmem [resolvable:$true] %s1119_s27 }
  0x15   : > { %v803_v0 = vld [vmem:[%s2075_s7 + $0x10] sm:$0xff]  ;;  %v804_v1 = vld [vmem:[%s2075_s7 + $0x18] sm:$0xff]  ;;  %v1692_v3 = vmov 0.0   ;;  %v801_v7 = vld [vmem:[%s2075_s7] sm:$0xff]  ;;  %vm1693_vm0 = vmmov 0   ;;  %vm821_vm1 = vcmask 523264  }
  0x16   : > { %v811_v2 = vld [vmem:[%s2076_s26 + $0x10] sm:$0xff]  ;;  %1451 = vmatprep.subr.bf16.mxu0 %v1692_v3  ;;  %v807_v4 = vmul.f32 0.99, %v803_v0  ;;  %v808_v5 = vmul.f32 0.99, %v804_v1  ;;  %v812_v6 = vld [vmem:[%s2076_s26 + $0x18] sm:$0xff]  ;;  %1455 = vmatprep.mubr.msk.bf16.mxu0 %vm1693_vm0, %v1692_v3 }
  0x17   : > { %v815_v8 = vmul.f32 0.01, %v811_v2  ;;  %v816_v9 = vmul.f32 0.01, %v812_v6  ;;  %v802_v10 = vld [vmem:[%s2075_s7 + $0x8] sm:$0xff]  ;;  %v809_v11 = vld [vmem:[%s2076_s26] sm:$0xff]  ;;  %1459 = vmatprep.subr.bf16.mxu1 %v1692_v3  ;;  %1467 = vmatprep.mubr.msk.bf16.mxu1 %vm1693_vm0, %v1692_v3  ;;  %v906_v6 = vlaneseq }
  0x18   : > { %v805_v12 = vmul.f32 0.99, %v801_v7  ;;  %v806_v13 = vmul.f32 0.99, %v802_v10  ;;  %v810_v14 = vld [vmem:[%s2076_s26 + $0x8] sm:$0xff]  ;;  %s2089_s0 = smov (!%p742_p4, %s1682_s0), 1 }
  0x19   : > { %v819_v15 = vadd.f32 %v815_v8, %v807_v4  ;;  %v820_v16 = vadd.f32 %v816_v9, %v808_v5  ;;  %v813_v17 = vmul.f32 0.01, %v809_v11  ;;  %v814_v18 = vmul.f32 0.01, %v810_v14  ;;  %s2068_s28 = sshll.u32 %s2089_s0, 1  ;;  %v851_v25 = vld [vmem:[%s2058_s11 + $0x30] sm:$0xff] }
  0x1a   : > { %s745_s23 = scalar_lea.vmem %s2077_s2, %s2068_s28  ;;  %vm911_vm2 = vcmask 261120   ;;  %v852_v26 = vld [vmem:[%s2058_s11 + $0x38] sm:$0xff]  ;;  %v867_v27 = vld [vmem:[%s2078_s5 + $0x30] sm:$0xff]  ;;  %v859_v28 = vmul.f32 0.99, %v851_v25  ;;  %v849_v35 = vld [vmem:[%s2058_s11 + $0x20] sm:$0xff] }
  0x1b   : > { %824 = vst.msk [vmem:[#allocation3 + $0x10] sm:$0xff] %vm821_vm1, %v819_v15  ;;  %825 = vst.msk [vmem:[#allocation3 + $0x18] sm:$0xff] %vm821_vm1, %v820_v16  ;;  %v904_v19 = vpack.c.bf16 %v820_v16, %v819_v15  ;;  %v817_v20 = vadd.f32 %v813_v17, %v805_v12  ;;  %v818_v21 = vadd.f32 %v814_v18, %v806_v13  ;;  %v901_v23 = vld [vmem:[%s745_s23] sm:$0x3]  ;;  %v860_v29 = vmul.f32 0.99, %v852_v26 }
  0x1c   : > { %v902_v24 = vpack.c.bf16 %v901_v23, %v901_v23  ;;  %v868_v30 = vld [vmem:[%s2078_s5 + $0x38] sm:$0xff]  ;;  %v875_v31 = vmul.f32 0.01, %v867_v27  ;;  %v850_v36 = vld [vmem:[%s2058_s11 + $0x28] sm:$0xff]  ;;  %v865_v37 = vld [vmem:[%s2078_s5 + $0x20] sm:$0xff]  ;;  %vm885_vm3 = vcmask 130048  }
  0x1d   : > { %1452 = vmatpush3.bf16.msra.mxu0 %v904_v19  ;;  %822 = vst.msk [vmem:[#allocation3] sm:$0xff] %vm821_vm1, %v817_v20  ;;  %823 = vst.msk [vmem:[#allocation3 + $0x8] sm:$0xff] %vm821_vm1, %v818_v21  ;;  %v903_v22 = vpack.c.bf16 %v818_v21, %v817_v20  ;;  %v876_v32 = vmul.f32 0.01, %v868_v30  ;;  %v857_v38 = vmul.f32 0.99, %v849_v35 }
  0x1e   : > { %1453 = vmatprep.subr.bf16.mxu0 %v1692_v3  ;;  %v883_v33 = vadd.f32 %v875_v31, %v859_v28  ;;  %v858_v39 = vmul.f32 0.99, %v850_v36  ;;  %v866_v40 = vld [vmem:[%s2078_s5 + $0x28] sm:$0xff]  ;;  %v873_v42 = vmul.f32 0.01, %v865_v37  ;;  %v847_v46 = vld [vmem:[%s2058_s11 + $0x10] sm:$0xff] }
  0x1f   : > { %v884_v34 = vadd.f32 %v876_v32, %v860_v29  ;;  %v874_v43 = vmul.f32 0.01, %v866_v40  ;;  %v848_v47 = vld [vmem:[%s2058_s11 + $0x18] sm:$0xff]  ;;  %v863_v48 = vld [vmem:[%s2078_s5 + $0x10] sm:$0xff]  ;;  %v855_v49 = vmul.f32 0.99, %v847_v46 }
  0x20   : > { %v881_v44 = vadd.f32 %v873_v42, %v857_v38  ;;  %v856_v50 = vmul.f32 0.99, %v848_v47  ;;  %v864_v51 = vld [vmem:[%s2078_s5 + $0x18] sm:$0xff]  ;;  %v871_v53 = vmul.f32 0.01, %v863_v48  ;;  %v845_v57 = vld [vmem:[%s2058_s11] sm:$0xff] }
  0x21   : > { %1454 = vmatpush3.bf16.msra.mxu0 %v903_v22  ;;  %v998_v41 = vpack.c.bf16 %v884_v34, %v883_v33  ;;  %v882_v45 = vadd.f32 %v874_v43, %v858_v39  ;;  %v872_v54 = vmul.f32 0.01, %v864_v51  ;;  %v846_v58 = vld [vmem:[%s2058_s11 + $0x8] sm:$0xff]  ;;  %v861_v59 = vld [vmem:[%s2078_s5] sm:$0xff]  ;;  %v853_v60 = vmul.f32 0.99, %v845_v57 }
  0x22   : > { %v879_v55 = vadd.f32 %v871_v53, %v855_v49  ;;  %v854_v61 = vmul.f32 0.99, %v846_v58  ;;  %v862_v62 = vld [vmem:[%s2078_s5 + $0x8] sm:$0xff]  ;;  %v869_v0 = vmul.f32 0.01, %v861_v59  ;;  %892 = vst.msk [vmem:[%s2065_s18 + $0x30] sm:$0xff] %vm885_vm3, %v883_v33 }
  0x23   : > { %1460 = vmatpush3.bf16.msra.mxu1 %v998_v41  ;;  %v997_v52 = vpack.c.bf16 %v882_v45, %v881_v44  ;;  %v880_v56 = vadd.f32 %v872_v54, %v856_v50  ;;  %v870_v1 = vmul.f32 0.01, %v862_v62  ;;  %893 = vst.msk [vmem:[%s2065_s18 + $0x38] sm:$0xff] %vm885_vm3, %v884_v34  ;;  %890 = vst.msk [vmem:[%s2065_s18 + $0x20] sm:$0xff] %vm885_vm3, %v881_v44  ;;  %vm799_vm4 = vcmask 123904   ;;  %s2079_s2 = sld [smem:[#allocation16_spill]] }
  0x24   : > { %1456 = vmatmul.mubr.msk.bf16.vlgmr.msra.gmra.mxu0 %vm911_vm2, %v902_v24  ;;  %1461 = vmatprep.subr.bf16.mxu1 %v1692_v3  ;;  %891 = vst.msk [vmem:[%s2065_s18 + $0x28] sm:$0xff] %vm885_vm3, %v882_v45  ;;  %888 = vst.msk [vmem:[%s2065_s18 + $0x10] sm:$0xff] %vm885_vm3, %v879_v55  ;;  %v877_v2 = vadd.f32 %v869_v0, %v853_v60  ;;  %v826_v7 = vld [vmem:[%s2055_s8] sm:$0x1]  ;;  %v907_v11 = vshrl.u32 %v906_v6, 7  ;;  %vm955_vm5 = vcmask 517120  }
  0x25   : > { %v996_v63 = vpack.c.bf16 %v880_v56, %v879_v55  ;;  %889 = vst.msk [vmem:[%s2065_s18 + $0x18] sm:$0xff] %vm885_vm3, %v880_v56  ;;  %v878_v4 = vadd.f32 %v870_v1, %v854_v61  ;;  %v827_v9 = vmul.f32 0.99, %v826_v7  ;;  %v833_v38 = vld [vmem:[%s2056_s9] sm:$0x1]  ;;  %vm831_vm6 = vcmask 516096  }
  0x26   : > { %886 = vst.msk [vmem:[%s2065_s18] sm:$0xff] %vm885_vm3, %v877_v2  ;;  %v1948_v13 = vsub.s32 0, %v907_v11  ;;  %v835_v39 = vld [vmem:[%s2080_s21] sm:$0x1]  ;;  %v834_v42 = vmul.f32 0.99, %v833_v38 }
  0x27   : > { %1462 = vmatpush3.bf16.msra.mxu1 %v997_v52  ;;  %887 = vst.msk [vmem:[%s2065_s18 + $0x8] sm:$0xff] %vm885_vm3, %v878_v4  ;;  %v995_v5 = vpack.c.bf16 %v878_v4, %v877_v2  ;;  %v839_v40 = vld [vmem:[%s2057_s10] sm:$0x1]  ;;  %v836_v43 = vmul.f32 0.01, %v835_v39  ;;  %vm899_vm7 = vcmask 122880  }
  0x28   : > { %1463 = vmatprep.subr.bf16.mxu1 %v1692_v3  ;;  %800 = vst.msk [vmem:[#allocation2] sm:$0x3] %vm799_vm4, %v1692_v3  ;;  %v841_v41 = vld [vmem:[%s2051_s4] sm:$0x1]  ;;  %v840_v44 = vmul.f32 0.99, %v839_v40 }
  0x29   : > { %v828_v8 = vld [vmem:[%s2079_s2] sm:$0x1]  ;;  %v842_v45 = vmul.f32 0.01, %v841_v41  ;;  %v837_v46 = vadd.f32 %v836_v43, %v834_v42  ;;  %s1694_s7 = smov [#allocation5]  }
  0x2a   : > { %v829_v10 = vmul.f32 0.01, %v828_v8  ;;  %v894_v56 = vld [vmem:[%s2059_s12] sm:$0x1]  ;;  %s1093_s21 = sshll.u32 %s1694_s7, 4  ;;  %s1094_s21 = int_to_ptr.vmem [resolvable:$true] %s1093_s21 }
  0x2b   : > { %1464 = vmatpush3.bf16.msra.mxu1 %v996_v63  ;;  %v843_v47 = vadd.f32 %v842_v45, %v840_v44  ;;  %v982_v48 = vrot.slane %v837_v46, %v1948_v13  ;;  %v896_v57 = vld [vmem:[%s2053_s6] sm:$0x1]  ;;  %v895_v58 = vmul.f32 0.99, %v894_v56  ;;  %838 = vst.msk [vmem:[#allocation7] sm:$0x1] %vm831_vm6, %v837_v46  ;;  %p1543_p9 = scmp.lt.s32.totalorder %s1094_s21, %s1094_s21 }
  0x2c   : > { %1465 = vmatprep.subr.bf16.mxu1 %v1692_v3  ;;  %v830_v12 = vadd.f32 %v829_v10, %v827_v9  ;;  %v897_v59 = vmul.f32 0.01, %v896_v57  ;;  %s1536_s5 = scalar_lea.vmem %s1094_s21, 16  ;;  %s1542_s28 = scalar_lea.vmem %s1094_s21, 32 }
  0x2d   : > { %v989_v51 = vrot.slane %v843_v47, %v1948_v13  ;;  %844 = vst.msk [vmem:[#allocation8] sm:$0x1] %vm831_vm6, %v843_v47  ;;  %p1537_p6 = scmp.ne.s32.totalorder %s1094_s21, %s1536_s5  ;;  %p1544_p10 = scmp.lt.s32.totalorder %s1542_s28, %s1536_s5 }
  0x2e   : > { %v909_v14 = vrot.slane %v830_v12, %v1948_v13  ;;  %832 = vst.msk [vmem:[#allocation5] sm:$0x1] %vm831_vm6, %v830_v12  ;;  %v1978_v60 = vadd.f32 %v897_v59, %v895_v58 }
  0x2f   : > { %1466 = vmatpush3.bf16.msra.mxu1 %v995_v5  ;;  %p1538_p7 = pnand %p1537_p6, %p1974_p5  ;;  %p1545_p11 = por %p1544_p10, %p1543_p9 }
  0x31   : > { %p1539_p8 = pneg %p1538_p7 }
  0x33   : > { %p1546_p12 = pnand %p1545_p11, %p1539_p8 }
  0xe4   : > { %v949_v15 = vpop.f32.mrf.mxu0 }
  0xe5   : > { %v950_v3 = vadd.f32 %v949_v15, %v909_v14 }
  0xe6   : > { %v1457_v16 = vpop.f32.mrf.mxu0 }
  0xe7   : > { %v956_v17 = vsel %vm955_vm5, %v950_v3, 0.0 }
  0xe8   : > { %v957_v18 = vrot.slane %v956_v17, 4  ;;  %v952_v19 = vpop.f32.mrf.mxu0 }
  0xea   : > { %v958_v20 = vadd.f32 %v957_v18, %v956_v17  ;;  %v1458_v21 = vpop.f32.mrf.mxu0 }
  0xec   : > { %v959_v22 = vrot.slane %v958_v20, 2 }
  0xee   : > { %v960_v23 = vadd.f32 %v959_v22, %v958_v20 }
  0xf0   : > { %v961_v24 = vrot.slane %v960_v23, 1 }
  0xf2   : > { %v962_v25 = vadd.f32 %v961_v24, %v960_v23 }
  0xf4   : > { %v964_v26 = vmul.f32 0.5, %v962_v25 }
  0xf6   : > { %v965_v27 = vsub.f32 %v950_v3, %v964_v26 }
  0xf8   : > { %v966_v28 = vmul.f32 %v965_v27, %v965_v27 }
  0xfa   : > { %v967_v29 = vsel %vm955_vm5, %v966_v28, 0.0 }
  0xfb   : > { %v968_v30 = vrot.slane %v967_v29, 4 }
  0xfd   : > { %v969_v31 = vadd.f32 %v968_v30, %v967_v29 }
  0xff   : > { %v970_v32 = vrot.slane %v969_v31, 2 }
 0x101   : > { %v971_v33 = vadd.f32 %v970_v32, %v969_v31 }
 0x103   : > { %v972_v34 = vrot.slane %v971_v33, 1 }
 0x105   : > { %v973_v35 = vadd.f32 %v972_v34, %v971_v33 }
 0x107   : > { %v974_v36 = vmul.f32 0.5, %v973_v35 }
 0x109   : > { %v975_v37 = vadd.f32 1e-05, %v974_v36 }
 0x10b   : > { %1534 = vrsqrt.f32 %v975_v37 }
 0x118   : > { %v1535_v49 = vpop.eup %1534 }
 0x119   : > { %v977_v50 = vmul.f32 %v1535_v49, %v965_v27 }
 0x11b   : > { %v984_v52 = vmul.f32 %v982_v48, %v977_v50 }
 0x11d   : > { %v991_v53 = vadd.f32 %v989_v51, %v984_v52 }
 0x11f   : > { %v992_v54 = vmax.f32 %v991_v53, 0.0 }
 0x121   : > { %v994_v55 = vpack.c.bf16 %v992_v54, %v992_v54 }
 0x123   : > { %1468 = vmatmul.mubr.msk.bf16.vlgmr.msra.gmra.mxu1 %vm821_vm1, %v994_v55 }
 0x124   : > { %1549 = shalt.err (!%p1546_p12)
}
 0x125   : > { %1474 = dma.vmem_to_hbm [thread:$0]  (%p1974_p5), %s1094_s21, 16, %s2062_s15, [#allocation6]   ;;  %900 = vst.msk [vmem:[#allocation10] sm:$0x1] %vm899_vm7, %v1978_v60 }
 0x126   : > { %s1560_s2 = scalar_lea.vmem %s1120_s27, 16  ;;  %s1566_s23 = scalar_lea.vmem %s1120_s27, 32 }
 0x127   : > { %p1561_p13 = scmp.ne.s32.totalorder %s1120_s27, %s1560_s2  ;;  %p1567_p2 = scmp.lt.s32.totalorder %s1120_s27, %s1120_s27 }
 0x128   : > { %p1568_p3 = scmp.lt.s32.totalorder %s1566_s23, %s1560_s2 }
 0x129   : > { %p1562_p0 = pnand %p1561_p13, %p1974_p5 }
 0x12a   : > { %p1569_p4 = por %p1568_p3, %p1567_p2 }
 0x12b   : > { %p1563_p1 = pneg %p1562_p0 }
 0x12d   : > { %p1570_p6 = pnand %p1569_p4, %p1563_p1 }
 0x12f   : > { %1573 = shalt.err (!%p1570_p6)
}
 0x130   : > { %1478 = dma.vmem_to_hbm [thread:$0]  (%p1974_p5), %s1120_s27, 16, %s2064_s17, [#allocation9]  }
 0x131   : > { %s1696_s21 = smov [#allocation3]  }
 0x132   : > { %s1077_s3 = sshll.u32 %s1696_s21, 4  ;;  %s1078_s3 = int_to_ptr.vmem [resolvable:$true] %s1077_s3 }
 0x133   : > { %s1584_s5 = scalar_lea.vmem %s1078_s3, 512  ;;  %p1591_p10 = scmp.lt.s32.totalorder %s1078_s3, %s1078_s3 }
 0x134   : > { %p1585_p7 = scmp.ne.s32.totalorder %s1078_s3, %s1584_s5  ;;  %p1592_p11 = scmp.lt.s32.totalorder %s1584_s5, %s1584_s5 }
 0x136   : > { %p1586_p8 = pnand %p1585_p7, %p1974_p5  ;;  %p1593_p12 = por %p1592_p11, %p1591_p10 }
 0x138   : > { %p1587_p9 = pneg %p1586_p8 }
 0x13a   : > { %p1594_p13 = pnand %p1593_p12, %p1587_p9 }
 0x13c   : > { %1597 = shalt.err (!%p1594_p13)
}
 0x13d   : > { %s1697_s28 = smov 128   ;;  %s1698_s29 = smov 8  }
 0x13e   : > { %1472 = dma.vmem_to_hbm [thread:$0]  (%p1974_p5), %s1078_s3, 512, %s2061_s14, [#allocation4], %s1697_s28, %s1697_s28, %s1698_s29  }
 0x13f   : > { %s1699_s2 = smov [#allocation7]   ;;  %s1700_s24 = smov [#allocation10]  }
 0x140   : > { %s1106_s23 = sshll.u32 %s1699_s2, 4  ;;  %s1134_s7 = sshll.u32 %s1700_s24, 4  ;;  %s1107_s23 = int_to_ptr.vmem [resolvable:$true] %s1106_s23  ;;  %s1135_s7 = int_to_ptr.vmem [resolvable:$true] %s1134_s7 }
 0x141   : > { %s1608_s21 = scalar_lea.vmem %s1107_s23, 16  ;;  %s1614_s5 = scalar_lea.vmem %s1107_s23, 32 }
 0x142   : > { %p1609_p0 = scmp.ne.s32.totalorder %s1107_s23, %s1608_s21  ;;  %p1615_p3 = scmp.lt.s32.totalorder %s1107_s23, %s1107_s23 }
 0x143   : > { %p1616_p4 = scmp.lt.s32.totalorder %s1614_s5, %s1608_s21 }
 0x144   : > { %p1610_p1 = pnand %p1609_p0, %p1974_p5 }
 0x145   : > { %p1617_p6 = por %p1616_p4, %p1615_p3 }
 0x146   : > { %p1611_p2 = pneg %p1610_p1 }
 0x148   : > { %p1618_p7 = pnand %p1617_p6, %p1611_p2 }
 0x14a   : > { %1621 = shalt.err (!%p1618_p7)
}
 0x14b   : > { %1476 = dma.vmem_to_hbm [thread:$0]  (%p1974_p5), %s1107_s23, 16, %s2063_s16, [#allocation6]  }
 0x14c   : > { %s1632_s29 = scalar_lea.vmem %s1135_s7, 16  ;;  %s1638_s22 = scalar_lea.vmem %s1135_s7, 32 }
 0x14d   : > { %p1633_p8 = scmp.ne.s32.totalorder %s1135_s7, %s1632_s29  ;;  %p1639_p11 = scmp.lt.s32.totalorder %s1135_s7, %s1135_s7 }
 0x14e   : > { %p1640_p12 = scmp.lt.s32.totalorder %s1638_s22, %s1632_s29 }
 0x14f   : > { %p1634_p9 = pnand %p1633_p8, %p1974_p5 }
 0x150   : > { %p1641_p13 = por %p1640_p12, %p1639_p11 }
 0x151   : > { %p1635_p10 = pneg %p1634_p9 }
 0x153   : > { %p1642_p0 = pnand %p1641_p13, %p1635_p10 }
 0x155   : > { %1645 = shalt.err (!%p1642_p0)
}
 0x156   : > { %1480 = dma.vmem_to_hbm [thread:$0]  (%p1974_p5), %s1135_s7, 16, %s2066_s19, [#allocation9]   ;;  %v993_v61 = vld [vmem:[#allocation2] sm:$0x3]  ;;  %v1053_v4 = vrot.slane %v1978_v60, %v1948_v13 }
 0x157   : > { %s2083_s23 = sshll.u32 %s2089_s0, 1 }
 0x158   : > { %s787_s5 = scalar_lea.vmem %s2060_s13, %s2083_s23 }
 0x1e3   : > { %v1036_v62 = vpop.f32.mrf.mxu1 }
 0x1e4   : > { %v1042_v63 = vadd.f32 %v1036_v62, %v993_v61 }
 0x1e5   : > { %v1469_v0 = vpop.f32.mrf.mxu1 }
 0x1e6   : > { %1044 = vst.msk [vmem:[#allocation2] sm:$0x3] %vm799_vm4, %v1042_v63 }
 0x1e7   : > { %v1039_v1 = vpop.f32.mrf.mxu1 }
 0x1e9   : > { %v1470_v2 = vpop.f32.mrf.mxu1 }
 0x1ed   : > { %v1048_v5 = vld [vmem:[#allocation2] sm:$0x3] }
 0x1ee   : > { %v1055_v6 = vadd.f32 %v1053_v4, %v1048_v5 }
 0x1f0   : > { %1056 = vst.msk [vmem:[%s787_s5] sm:$0x3] %vm799_vm4, %v1055_v6 }
 0x1f1   : > { %1669 = dma.done.wait (%p1974_p5), [#allocation4], 512  }
 0x1f2   : > { %1671 = vsyncadd (%p1974_p5), [#allocation4], 4294966784 }
 0x1f3   : > { %1673 = dma.done.wait (%p1974_p5), [#allocation6], 32  }
 0x1f4   : > { %1675 = vsyncadd (%p1974_p5), [#allocation6], 4294967264 }
 0x1f5   : > { %1677 = dma.done.wait (%p1974_p5), [#allocation9], 32  }
 0x1f6   : > { %1679 = vsyncadd (%p1974_p5), [#allocation9], 4294967264 }
 0x1f7 PF: > { %s33_s20 = sadd.s32 1, %s1690_s20   ;;  %s2084_s0 = smov %s1686_s30 }
 0x1f8   : > { %p30_p1 = scmp.ge.s32.totalorder %s33_s20, 4   ;;  %s2085_s30 = smov %s2087_s1 }
 0x1fa   :  { %32 = sbr.rel (!%p30_p1) target bundleno = 11 (0xb), region = 197 }
 0x1ff   :  { %1178 = vsyncpa [#allocation4], 1 }
 0x200   :  { %1180 = vsyncpa [#allocation4 + $0x1], 1 }
 0x201   :  { %1181 = vsyncpa [#allocation6], 1 }
 0x202   :  { %1182 = vsyncpa [#allocation9], 1 }

// kernel: byol_forward.7
= control target key start
LH: loop header
LB: loop body
LE: loop exit
PB: predicated region body
PF: predicated region fallthrough
CT: control target
= control target key end

     0   :  { %13 = vsyncpa [#allocation4], 0  ;;  %s1296_s24 = smov 0   ;;  %s1298_s25 = smov 0   ;;  %s1663_s0 = inlined_call_operand.vmem [shape: f32[2,2,1024], index: 0, kind: input, shape index: {}]   ;;  %s1664_s1 = inlined_call_operand.vmem [shape: f32[1024,32], index: 1, kind: input, shape index: {}]   ;;  %s1665_s2 = inlined_call_operand.vmem [shape: f32[1,32], index: 2, kind: input, shape index: {}]   ;;  %s1666_s3 = inlined_call_operand.vmem [shape: f32[1024,32], index: 3, kind: input, shape index: {}]   ;;  %s1667_s4 = inlined_call_operand.vmem [shape: f32[1,32], index: 4, kind: input, shape index: {}]   ;;  %s1668_s5 = inlined_call_operand.vmem [shape: f32[2,2,32], index: 5, kind: output, shape index: {0}]   ;;  %s1669_s6 = inlined_call_operand.vmem [shape: f32[1024,32], index: 6, kind: output, shape index: {1}]   ;;  %s1670_s7 = inlined_call_operand.hbm [shape: f32[1,32], index: 7, kind: output, shape index: {2}]  }
   0x1   :  { %s1300_s26 = smov 0   ;;  %s1302_s27 = smov 0  }
   0x2   :  { %s1304_s28 = smov 0  }
   0x3 LB: > { %s28_s30 = sadd.s32 1, %s1243_s26  ;;  %s31_s8 = sadd.s32 1, %s1247_s27  ;;  %s1251_s28 = sphi %s1304_s28, %s19_s28   ;;  %s1247_s27 = sphi %s1302_s27, %s1676_s27   ;;  %s1243_s26 = sphi %s1300_s26, %s1675_s26   ;;  %s1239_s25 = sphi %s1298_s25, %s1674_s25   ;;  %s1235_s24 = sphi %s1296_s24, %s1673_s24  }
   0x4   : > { %p29_p0 = scmp.ge.s32.totalorder %s28_s30, 2  ;;  %p1074_p1 = scmp.ge.s32.totalorder %s1251_s28, 1 }
   0x5   : > { %p279_p2 = scmp.lt.s32.totalorder %s1251_s28, 5 }
   0x6   : > { %s1678_s30 = smov (%p29_p0, %s28_s30), 0  ;;  %s1680_s8 = smov (!%p29_p0, %s31_s8), %s1247_s27 }
   0x7   : > { %p280_p3 = pnand %p1074_p1, %p279_p2  ;;  %p33_p4 = scmp.ge.s32.totalorder %s1680_s8, 2 }
   0x8   : > { %s1075_s9 = sshll.u32 (!%p280_p3), %s1235_s24, 2  ;;  %p330_p5 = scmp.lt.s32.totalorder (!%p280_p3), %s1239_s25, 1 }
   0x9   : > { %s1682_s8 = smov (%p33_p4, %s1680_s8), 0  ;;  %283 = sbr.rel (%p280_p3) target bundleno = 342 (0x156), region = 40 }
   0xa   : > { %p332_p6 = scmp.lt.s32.totalorder (!%p280_p3), %s1075_s9, 7  ;;  %s1078_s10 = sshll.u32 (!%p280_p3), %s1235_s24, 6 }
   0xb   : > { %p340_p7 = scmp.lt.s32.totalorder (!%p280_p3), %s1078_s10, 127  ;;  %p1085_p8 = scmp.ne.s32.totalorder (!%p280_p3), %s1235_s24, 0 }
   0xe   : > { %s1684_s25 = smov (!%p330_p5, %s1239_s25), 1  ;;  %s1686_s9 = smov (!%p332_p6, %s1075_s9), 7 }
   0xf   : > { %s1076_s11 = sshll.u32 %s1684_s25, 3  ;;  %s1082_s13 = sshll.u32 %s1684_s25, 1 }
  0x10   : > { %s335_s12 = sadd.s32 %s1076_s11, %s1686_s9  ;;  %s1334_s17 = scalar_lea.vmem %s1668_s5, %s1082_s13 }
  0x11   : > { %s1077_s14 = sshll.u32 %s335_s12, 1  ;;  %s1688_s10 = smov (!%p340_p7, %s1078_s10), 127 }
  0x12   : > { %s1339_s20 = scalar_lea.vmem %s1663_s0, %s1077_s14  ;;  %s1079_s21 = sshll.u32 %s1688_s10, 3 }
  0x13   : > { %s1344_s29 = scalar_lea.vmem %s1664_s1, %s1079_s21  ;;  %s1349_s11 = scalar_lea.vmem %s1666_s3, %s1079_s21 }
  0x14   : > { %s1354_s15 = scalar_lea.vmem %s1669_s6, %s1079_s21  ;;  %365 = sbr.rel (%p1085_p8) target bundleno = 27 (0x1b), region = 44 }
  0x19   : > { %vm366_vm0 = vcmask 254976   ;;  %v1253_v0 = vmov 0.0  }
  0x1a   : > { %367 = vst.msk [vmem:[#allocation2] sm:$0x3] %vm366_vm0, %v1253_v0 }
  0x1b PF: > { %v398_v1 = vld [vmem:[%s1349_s11 + $0xf0] sm:$0xff]  ;;  %v399_v2 = vld [vmem:[%s1349_s11 + $0xf8] sm:$0xff]  ;;  %vm693_vm1 = vcmask 261120   ;;  %vm758_vm2 = vcmask 253952   ;;  %v688_v10 = vld [vmem:[%s1667_s4] sm:$0x1] }
  0x1c   : > { %v526_v3 = vld [vmem:[%s1344_s29 + $0xf0] sm:$0xff]  ;;  %v462_v4 = vmul.f32 0.99, %v398_v1  ;;  %v463_v5 = vmul.f32 0.99, %v399_v2  ;;  %v527_v6 = vld [vmem:[%s1344_s29 + $0xf8] sm:$0xff] }
  0x1d   : > { %v430_v7 = vld [vmem:[%s1349_s11 + $0x1f0] sm:$0xff]  ;;  %v590_v8 = vmul.f32 0.01, %v526_v3  ;;  %v591_v9 = vmul.f32 0.01, %v527_v6  ;;  %v431_v13 = vld [vmem:[%s1349_s11 + $0x1f8] sm:$0xff] }
  0x1e   : > { %v689_v11 = vmul.f32 0.99, %v688_v10  ;;  %v690_v12 = vld [vmem:[%s1665_s2] sm:$0x1]  ;;  %v558_v14 = vld [vmem:[%s1344_s29 + $0x1f0] sm:$0xff]  ;;  %v559_v19 = vld [vmem:[%s1344_s29 + $0x1f8] sm:$0xff] }
  0x1f   : > { %v654_v15 = vadd.f32 %v590_v8, %v462_v4  ;;  %v655_v16 = vadd.f32 %v591_v9, %v463_v5  ;;  %v691_v17 = vmul.f32 0.01, %v690_v12  ;;  %v494_v18 = vmul.f32 0.99, %v430_v7  ;;  %v382_v20 = vld [vmem:[%s1349_s11 + $0x70] sm:$0xff]  ;;  %v383_v26 = vld [vmem:[%s1349_s11 + $0x78] sm:$0xff] }
  0x20   : > { %v495_v21 = vmul.f32 0.99, %v431_v13  ;;  %v622_v22 = vmul.f32 0.01, %v558_v14  ;;  %v623_v23 = vmul.f32 0.01, %v559_v19 }
  0x21   : > { %v1372_v24 = vadd.f32 %v691_v17, %v689_v11  ;;  %724 = vst.msk [vmem:[%s1354_s15 + $0xf0] sm:$0xff] %vm693_vm1, %v654_v15  ;;  %725 = vst.msk [vmem:[%s1354_s15 + $0xf8] sm:$0xff] %vm693_vm1, %v655_v16  ;;  %v803_v25 = vpack.c.bf16 %v655_v16, %v654_v15  ;;  %v446_v27 = vmul.f32 0.99, %v382_v20  ;;  %v510_v28 = vld [vmem:[%s1344_s29 + $0x70] sm:$0xff]  ;;  %v511_v29 = vld [vmem:[%s1344_s29 + $0x78] sm:$0xff] }
  0x22   : > { %v686_v30 = vadd.f32 %v622_v22, %v494_v18  ;;  %v687_v31 = vadd.f32 %v623_v23, %v495_v21  ;;  %v447_v32 = vmul.f32 0.99, %v383_v26  ;;  %v574_v33 = vmul.f32 0.01, %v510_v28  ;;  %v414_v34 = vld [vmem:[%s1349_s11 + $0x170] sm:$0xff]  ;;  %v415_v35 = vld [vmem:[%s1349_s11 + $0x178] sm:$0xff] }
  0x23   : > { %759 = vst.msk [vmem:[#allocation3] sm:$0x1] %vm758_vm2, %v1372_v24  ;;  %1091 = vmatprep.subr.bf16.mxu0 %v803_v25  ;;  %v575_v36 = vmul.f32 0.01, %v511_v29  ;;  %v478_v37 = vmul.f32 0.99, %v414_v34 }
  0x24   : > { %v479_v38 = vmul.f32 0.99, %v415_v35  ;;  %756 = vst.msk [vmem:[%s1354_s15 + $0x1f0] sm:$0xff] %vm693_vm1, %v686_v30  ;;  %757 = vst.msk [vmem:[%s1354_s15 + $0x1f8] sm:$0xff] %vm693_vm1, %v687_v31  ;;  %v819_v39 = vpack.c.bf16 %v687_v31, %v686_v30  ;;  %v638_v40 = vadd.f32 %v574_v33, %v446_v27  ;;  %v542_v41 = vld [vmem:[%s1344_s29 + $0x170] sm:$0xff]  ;;  %v543_v42 = vld [vmem:[%s1344_s29 + $0x178] sm:$0xff] }
  0x25   : > { %v396_v43 = vld [vmem:[%s1349_s11 + $0xe0] sm:$0xff]  ;;  %v639_v44 = vadd.f32 %v575_v36, %v447_v32  ;;  %v606_v45 = vmul.f32 0.01, %v542_v41  ;;  %v607_v46 = vmul.f32 0.01, %v543_v42  ;;  %v397_v47 = vld [vmem:[%s1349_s11 + $0xe8] sm:$0xff] }
  0x26   : > { %v524_v48 = vld [vmem:[%s1344_s29 + $0xe0] sm:$0xff]  ;;  %1113 = vmatprep.subr.bf16.mxu1 %v819_v39  ;;  %708 = vst.msk [vmem:[%s1354_s15 + $0x70] sm:$0xff] %vm693_vm1, %v638_v40  ;;  %v460_v49 = vmul.f32 0.99, %v396_v43  ;;  %v461_v50 = vmul.f32 0.99, %v397_v47 }
  0x27   : > { %v525_v51 = vld [vmem:[%s1344_s29 + $0xe8] sm:$0xff]  ;;  %v428_v52 = vld [vmem:[%s1349_s11 + $0x1e0] sm:$0xff]  ;;  %709 = vst.msk [vmem:[%s1354_s15 + $0x78] sm:$0xff] %vm693_vm1, %v639_v44  ;;  %v795_v53 = vpack.c.bf16 %v639_v44, %v638_v40  ;;  %v670_v54 = vadd.f32 %v606_v45, %v478_v37  ;;  %v671_v55 = vadd.f32 %v607_v46, %v479_v38  ;;  %v588_v56 = vmul.f32 0.01, %v524_v48  ;;  %v394_v26 = vld [vmem:[%s1349_s11 + $0xd0] sm:$0xff] }
  0x28   : > { %v429_v57 = vld [vmem:[%s1349_s11 + $0x1e8] sm:$0xff]  ;;  %v556_v58 = vld [vmem:[%s1344_s29 + $0x1e0] sm:$0xff]  ;;  %v589_v60 = vmul.f32 0.01, %v525_v51  ;;  %v492_v61 = vmul.f32 0.99, %v428_v52 }
  0x29   : > { %v557_v59 = vld [vmem:[%s1344_s29 + $0x1e8] sm:$0xff]  ;;  %v493_v62 = vmul.f32 0.99, %v429_v57  ;;  %1092 = vmatpush3.bf16.msra.mxu0 %v795_v53  ;;  %740 = vst.msk [vmem:[%s1354_s15 + $0x170] sm:$0xff] %vm693_vm1, %v670_v54  ;;  %741 = vst.msk [vmem:[%s1354_s15 + $0x178] sm:$0xff] %vm693_vm1, %v671_v55  ;;  %v811_v63 = vpack.c.bf16 %v671_v55, %v670_v54  ;;  %v652_v0 = vadd.f32 %v588_v56, %v460_v49  ;;  %v380_v3 = vld [vmem:[%s1349_s11 + $0x60] sm:$0xff] }
  0x2a   : > { %v620_v1 = vmul.f32 0.01, %v556_v58  ;;  %v621_v2 = vmul.f32 0.01, %v557_v59  ;;  %v381_v4 = vld [vmem:[%s1349_s11 + $0x68] sm:$0xff]  ;;  %v653_v5 = vadd.f32 %v589_v60, %v461_v50  ;;  %v508_v8 = vld [vmem:[%s1344_s29 + $0x60] sm:$0xff] }
  0x2b   : > { %v444_v6 = vmul.f32 0.99, %v380_v3  ;;  %v445_v7 = vmul.f32 0.99, %v381_v4  ;;  %v509_v9 = vld [vmem:[%s1344_s29 + $0x68] sm:$0xff]  ;;  %1114 = vmatpush3.bf16.msra.mxu1 %v811_v63  ;;  %722 = vst.msk [vmem:[%s1354_s15 + $0xe0] sm:$0xff] %vm693_vm1, %v652_v0 }
  0x2c   : > { %v684_v10 = vadd.f32 %v620_v1, %v492_v61  ;;  %v685_v11 = vadd.f32 %v621_v2, %v493_v62  ;;  %v572_v12 = vmul.f32 0.01, %v508_v8  ;;  %v573_v13 = vmul.f32 0.01, %v509_v9  ;;  %v412_v14 = vld [vmem:[%s1349_s11 + $0x160] sm:$0xff]  ;;  %v413_v15 = vld [vmem:[%s1349_s11 + $0x168] sm:$0xff] }
  0x2d   : > { %723 = vst.msk [vmem:[%s1354_s15 + $0xe8] sm:$0xff] %vm693_vm1, %v653_v5  ;;  %v802_v16 = vpack.c.bf16 %v653_v5, %v652_v0  ;;  %v476_v17 = vmul.f32 0.99, %v412_v14  ;;  %v477_v18 = vmul.f32 0.99, %v413_v15  ;;  %v540_v19 = vld [vmem:[%s1344_s29 + $0x160] sm:$0xff] }
  0x2e   : > { %v541_v20 = vld [vmem:[%s1344_s29 + $0x168] sm:$0xff]  ;;  %754 = vst.msk [vmem:[%s1354_s15 + $0x1e0] sm:$0xff] %vm693_vm1, %v684_v10  ;;  %755 = vst.msk [vmem:[%s1354_s15 + $0x1e8] sm:$0xff] %vm693_vm1, %v685_v11  ;;  %v818_v21 = vpack.c.bf16 %v685_v11, %v684_v10  ;;  %v636_v22 = vadd.f32 %v572_v12, %v444_v6  ;;  %v637_v23 = vadd.f32 %v573_v13, %v445_v7  ;;  %v604_v25 = vmul.f32 0.01, %v540_v19  ;;  %v395_v27 = vld [vmem:[%s1349_s11 + $0xd8] sm:$0xff] }
  0x2f   : > { %v522_v28 = vld [vmem:[%s1344_s29 + $0xd0] sm:$0xff]  ;;  %1093 = vmatprep.subr.bf16.mxu0 %v802_v16  ;;  %v605_v29 = vmul.f32 0.01, %v541_v20  ;;  %v458_v30 = vmul.f32 0.99, %v394_v26  ;;  %v523_v34 = vld [vmem:[%s1344_s29 + $0xd8] sm:$0xff] }
  0x30   : > { %v459_v31 = vmul.f32 0.99, %v395_v27  ;;  %1115 = vmatprep.subr.bf16.mxu1 %v818_v21  ;;  %706 = vst.msk [vmem:[%s1354_s15 + $0x60] sm:$0xff] %vm693_vm1, %v636_v22  ;;  %707 = vst.msk [vmem:[%s1354_s15 + $0x68] sm:$0xff] %vm693_vm1, %v637_v23  ;;  %v794_v32 = vpack.c.bf16 %v637_v23, %v636_v22  ;;  %v668_v33 = vadd.f32 %v604_v25, %v476_v17  ;;  %v586_v35 = vmul.f32 0.01, %v522_v28 }
  0x31   : > { %v426_v36 = vld [vmem:[%s1349_s11 + $0x1d0] sm:$0xff]  ;;  %v427_v37 = vld [vmem:[%s1349_s11 + $0x1d8] sm:$0xff]  ;;  %v669_v38 = vadd.f32 %v605_v29, %v477_v18  ;;  %v587_v39 = vmul.f32 0.01, %v523_v34  ;;  %v392_v6 = vld [vmem:[%s1349_s11 + $0xc0] sm:$0xff]  ;;  %vm901_vm3 = vcmask 254976  }
  0x32   : > { %v490_v40 = vmul.f32 0.99, %v426_v36  ;;  %v491_v41 = vmul.f32 0.99, %v427_v37  ;;  %1094 = vmatpush3.bf16.msra.mxu0 %v794_v32  ;;  %738 = vst.msk [vmem:[%s1354_s15 + $0x160] sm:$0xff] %vm693_vm1, %v668_v33  ;;  %v650_v42 = vadd.f32 %v586_v35, %v458_v30  ;;  %v554_v43 = vld [vmem:[%s1344_s29 + $0x1d0] sm:$0xff] }
  0x33   : > { %v555_v44 = vld [vmem:[%s1344_s29 + $0x1d8] sm:$0xff]  ;;  %v378_v45 = vld [vmem:[%s1349_s11 + $0x50] sm:$0xff]  ;;  %739 = vst.msk [vmem:[%s1354_s15 + $0x168] sm:$0xff] %vm693_vm1, %v669_v38  ;;  %v810_v46 = vpack.c.bf16 %v669_v38, %v668_v33  ;;  %v651_v47 = vadd.f32 %v587_v39, %v459_v31  ;;  %v618_v48 = vmul.f32 0.01, %v554_v43  ;;  %v393_v7 = vld [vmem:[%s1349_s11 + $0xc8] sm:$0xff] }
  0x34   : > { %v619_v49 = vmul.f32 0.01, %v555_v44  ;;  %v379_v50 = vld [vmem:[%s1349_s11 + $0x58] sm:$0xff]  ;;  %v506_v51 = vld [vmem:[%s1344_s29 + $0x50] sm:$0xff]  ;;  %720 = vst.msk [vmem:[%s1354_s15 + $0xd0] sm:$0xff] %vm693_vm1, %v650_v42  ;;  %v520_v11 = vld [vmem:[%s1344_s29 + $0xc0] sm:$0xff] }
  0x35   : > { %v442_v52 = vmul.f32 0.99, %v378_v45  ;;  %v443_v53 = vmul.f32 0.99, %v379_v50  ;;  %v507_v54 = vld [vmem:[%s1344_s29 + $0x58] sm:$0xff]  ;;  %v410_v55 = vld [vmem:[%s1349_s11 + $0x150] sm:$0xff]  ;;  %1116 = vmatpush3.bf16.msra.mxu1 %v810_v46  ;;  %v801_v56 = vpack.c.bf16 %v651_v47, %v650_v42  ;;  %v682_v57 = vadd.f32 %v618_v48, %v490_v40 }
  0x36   : > { %721 = vst.msk [vmem:[%s1354_s15 + $0xd8] sm:$0xff] %vm693_vm1, %v651_v47  ;;  %v683_v58 = vadd.f32 %v619_v49, %v491_v41  ;;  %v570_v59 = vmul.f32 0.01, %v506_v51  ;;  %v411_v60 = vld [vmem:[%s1349_s11 + $0x158] sm:$0xff]  ;;  %v538_v61 = vld [vmem:[%s1344_s29 + $0x150] sm:$0xff]  ;;  %v521_v12 = vld [vmem:[%s1344_s29 + $0xc8] sm:$0xff] }
  0x37   : > { %v539_v62 = vld [vmem:[%s1344_s29 + $0x158] sm:$0xff]  ;;  %v571_v63 = vmul.f32 0.01, %v507_v54  ;;  %v474_v0 = vmul.f32 0.99, %v410_v55  ;;  %1095 = vmatprep.subr.bf16.mxu0 %v801_v56  ;;  %752 = vst.msk [vmem:[%s1354_s15 + $0x1d0] sm:$0xff] %vm693_vm1, %v682_v57 }
  0x38   : > { %v475_v1 = vmul.f32 0.99, %v411_v60  ;;  %753 = vst.msk [vmem:[%s1354_s15 + $0x1d8] sm:$0xff] %vm693_vm1, %v683_v58  ;;  %v817_v2 = vpack.c.bf16 %v683_v58, %v682_v57  ;;  %v634_v3 = vadd.f32 %v570_v59, %v442_v52  ;;  %v602_v4 = vmul.f32 0.01, %v538_v61  ;;  %v424_v17 = vld [vmem:[%s1349_s11 + $0x1c0] sm:$0xff] }
  0x39   : > { %v603_v5 = vmul.f32 0.01, %v539_v62  ;;  %v635_v8 = vadd.f32 %v571_v63, %v443_v53  ;;  %v456_v9 = vmul.f32 0.99, %v392_v6  ;;  %v457_v10 = vmul.f32 0.99, %v393_v7 }
  0x3a   : > { %1117 = vmatprep.subr.bf16.mxu1 %v817_v2  ;;  %704 = vst.msk [vmem:[%s1354_s15 + $0x50] sm:$0xff] %vm693_vm1, %v634_v3  ;;  %v666_v13 = vadd.f32 %v602_v4, %v474_v0  ;;  %v584_v15 = vmul.f32 0.01, %v520_v11  ;;  %v585_v16 = vmul.f32 0.01, %v521_v12  ;;  %v425_v18 = vld [vmem:[%s1349_s11 + $0x1c8] sm:$0xff] }
  0x3b   : > { %v667_v14 = vadd.f32 %v603_v5, %v475_v1  ;;  %705 = vst.msk [vmem:[%s1354_s15 + $0x58] sm:$0xff] %vm693_vm1, %v635_v8  ;;  %v793_v19 = vpack.c.bf16 %v635_v8, %v634_v3  ;;  %v488_v20 = vmul.f32 0.99, %v424_v17  ;;  %v489_v21 = vmul.f32 0.99, %v425_v18  ;;  %v552_v22 = vld [vmem:[%s1344_s29 + $0x1c0] sm:$0xff] }
  0x3c   : > { %v553_v23 = vld [vmem:[%s1344_s29 + $0x1c8] sm:$0xff]  ;;  %736 = vst.msk [vmem:[%s1354_s15 + $0x150] sm:$0xff] %vm693_vm1, %v666_v13  ;;  %v648_v26 = vadd.f32 %v584_v15, %v456_v9  ;;  %v649_v27 = vadd.f32 %v585_v16, %v457_v10  ;;  %v616_v28 = vmul.f32 0.01, %v552_v22  ;;  %v376_v29 = vld [vmem:[%s1349_s11 + $0x40] sm:$0xff]  ;;  %v390_v48 = vld [vmem:[%s1349_s11 + $0xb0] sm:$0xff] }
  0x3d   : > { %737 = vst.msk [vmem:[%s1354_s15 + $0x158] sm:$0xff] %vm693_vm1, %v667_v14  ;;  %v809_v25 = vpack.c.bf16 %v667_v14, %v666_v13  ;;  %v377_v30 = vld [vmem:[%s1349_s11 + $0x48] sm:$0xff]  ;;  %v504_v31 = vld [vmem:[%s1344_s29 + $0x40] sm:$0xff]  ;;  %1096 = vmatpush3.bf16.msra.mxu0 %v793_v19  ;;  %v617_v32 = vmul.f32 0.01, %v553_v23  ;;  %v391_v53 = vld [vmem:[%s1349_s11 + $0xb8] sm:$0xff] }
  0x3e   : > { %v440_v33 = vmul.f32 0.99, %v376_v29  ;;  %v441_v34 = vmul.f32 0.99, %v377_v30  ;;  %718 = vst.msk [vmem:[%s1354_s15 + $0xc0] sm:$0xff] %vm693_vm1, %v648_v26  ;;  %719 = vst.msk [vmem:[%s1354_s15 + $0xc8] sm:$0xff] %vm693_vm1, %v649_v27  ;;  %v800_v35 = vpack.c.bf16 %v649_v27, %v648_v26  ;;  %v680_v36 = vadd.f32 %v616_v28, %v488_v20 }
  0x3f   : > { %1118 = vmatpush3.bf16.msra.mxu1 %v809_v25  ;;  %v505_v37 = vld [vmem:[%s1344_s29 + $0x48] sm:$0xff]  ;;  %v568_v38 = vmul.f32 0.01, %v504_v31  ;;  %v408_v39 = vld [vmem:[%s1349_s11 + $0x140] sm:$0xff]  ;;  %v681_v41 = vadd.f32 %v617_v32, %v489_v21  ;;  %v518_v54 = vld [vmem:[%s1344_s29 + $0xb0] sm:$0xff]  ;;  %p1086_p9 = scmp.ne.s32.totalorder %s1235_s24, 1 }
  0x40   : > { %v409_v40 = vld [vmem:[%s1349_s11 + $0x148] sm:$0xff]  ;;  %v569_v42 = vmul.f32 0.01, %v505_v37  ;;  %v472_v43 = vmul.f32 0.99, %v408_v39  ;;  %1097 = vmatprep.subr.bf16.mxu0 %v800_v35  ;;  %750 = vst.msk [vmem:[%s1354_s15 + $0x1c0] sm:$0xff] %vm693_vm1, %v680_v36 }
  0x41   : > { %v473_v44 = vmul.f32 0.99, %v409_v40  ;;  %v632_v45 = vadd.f32 %v568_v38, %v440_v33  ;;  %v536_v46 = vld [vmem:[%s1344_s29 + $0x140] sm:$0xff]  ;;  %v537_v47 = vld [vmem:[%s1344_s29 + $0x148] sm:$0xff]  ;;  %751 = vst.msk [vmem:[%s1354_s15 + $0x1c8] sm:$0xff] %vm693_vm1, %v681_v41  ;;  %v816_v49 = vpack.c.bf16 %v681_v41, %v680_v36  ;;  %v519_v57 = vld [vmem:[%s1344_s29 + $0xb8] sm:$0xff] }
  0x42   : > { %v633_v50 = vadd.f32 %v569_v42, %v441_v34  ;;  %v600_v51 = vmul.f32 0.01, %v536_v46  ;;  %v601_v52 = vmul.f32 0.01, %v537_v47  ;;  %v454_v55 = vmul.f32 0.99, %v390_v48 }
  0x43   : > { %702 = vst.msk [vmem:[%s1354_s15 + $0x40] sm:$0xff] %vm693_vm1, %v632_v45  ;;  %v455_v56 = vmul.f32 0.99, %v391_v53  ;;  %v422_v58 = vld [vmem:[%s1349_s11 + $0x1b0] sm:$0xff]  ;;  %1119 = vmatprep.subr.bf16.mxu1 %v816_v49  ;;  %v582_v62 = vmul.f32 0.01, %v518_v54 }
  0x44   : > { %703 = vst.msk [vmem:[%s1354_s15 + $0x48] sm:$0xff] %vm693_vm1, %v633_v50  ;;  %v792_v59 = vpack.c.bf16 %v633_v50, %v632_v45  ;;  %v664_v60 = vadd.f32 %v600_v51, %v472_v43  ;;  %v665_v61 = vadd.f32 %v601_v52, %v473_v44  ;;  %v423_v63 = vld [vmem:[%s1349_s11 + $0x1b8] sm:$0xff]  ;;  %v550_v0 = vld [vmem:[%s1344_s29 + $0x1b0] sm:$0xff]  ;;  %v583_v2 = vmul.f32 0.01, %v519_v57  ;;  %v388_v32 = vld [vmem:[%s1349_s11 + $0xa0] sm:$0xff] }
  0x45   : > { %v551_v1 = vld [vmem:[%s1344_s29 + $0x1b8] sm:$0xff]  ;;  %v486_v3 = vmul.f32 0.99, %v422_v58  ;;  %v487_v4 = vmul.f32 0.99, %v423_v63  ;;  %v646_v6 = vadd.f32 %v582_v62, %v454_v55  ;;  %v374_v9 = vld [vmem:[%s1349_s11 + $0x30] sm:$0xff] }
  0x46   : > { %1098 = vmatpush3.bf16.msra.mxu0 %v792_v59  ;;  %734 = vst.msk [vmem:[%s1354_s15 + $0x140] sm:$0xff] %vm693_vm1, %v664_v60  ;;  %735 = vst.msk [vmem:[%s1354_s15 + $0x148] sm:$0xff] %vm693_vm1, %v665_v61  ;;  %v808_v5 = vpack.c.bf16 %v665_v61, %v664_v60  ;;  %v614_v7 = vmul.f32 0.01, %v550_v0  ;;  %v615_v8 = vmul.f32 0.01, %v551_v1  ;;  %v647_v11 = vadd.f32 %v583_v2, %v455_v56 }
  0x47   : > { %v375_v10 = vld [vmem:[%s1349_s11 + $0x38] sm:$0xff]  ;;  %v438_v12 = vmul.f32 0.99, %v374_v9  ;;  %v502_v14 = vld [vmem:[%s1344_s29 + $0x30] sm:$0xff]  ;;  %716 = vst.msk [vmem:[%s1354_s15 + $0xb0] sm:$0xff] %vm693_vm1, %v646_v6  ;;  %v389_v33 = vld [vmem:[%s1349_s11 + $0xa8] sm:$0xff] }
  0x48   : > { %v439_v13 = vmul.f32 0.99, %v375_v10  ;;  %v503_v15 = vld [vmem:[%s1344_s29 + $0x38] sm:$0xff]  ;;  %1120 = vmatpush3.bf16.msra.mxu1 %v808_v5  ;;  %v678_v16 = vadd.f32 %v614_v7, %v486_v3  ;;  %v679_v17 = vadd.f32 %v615_v8, %v487_v4  ;;  %v566_v18 = vmul.f32 0.01, %v502_v14  ;;  %v406_v20 = vld [vmem:[%s1349_s11 + $0x130] sm:$0xff] }
  0x49   : > { %v567_v19 = vmul.f32 0.01, %v503_v15  ;;  %v407_v21 = vld [vmem:[%s1349_s11 + $0x138] sm:$0xff]  ;;  %717 = vst.msk [vmem:[%s1354_s15 + $0xb8] sm:$0xff] %vm693_vm1, %v647_v11  ;;  %v799_v22 = vpack.c.bf16 %v647_v11, %v646_v6  ;;  %v470_v23 = vmul.f32 0.99, %v406_v20 }
  0x4a   : > { %v471_v25 = vmul.f32 0.99, %v407_v21  ;;  %v534_v26 = vld [vmem:[%s1344_s29 + $0x130] sm:$0xff]  ;;  %v535_v27 = vld [vmem:[%s1344_s29 + $0x138] sm:$0xff]  ;;  %748 = vst.msk [vmem:[%s1354_s15 + $0x1b0] sm:$0xff] %vm693_vm1, %v678_v16  ;;  %749 = vst.msk [vmem:[%s1354_s15 + $0x1b8] sm:$0xff] %vm693_vm1, %v679_v17  ;;  %v815_v28 = vpack.c.bf16 %v679_v17, %v678_v16  ;;  %v630_v29 = vadd.f32 %v566_v18, %v438_v12 }
  0x4b   : > { %v631_v30 = vadd.f32 %v567_v19, %v439_v13  ;;  %v598_v31 = vmul.f32 0.01, %v534_v26  ;;  %v516_v34 = vld [vmem:[%s1344_s29 + $0xa0] sm:$0xff]  ;;  %1099 = vmatprep.subr.bf16.mxu0 %v799_v22  ;;  %v599_v35 = vmul.f32 0.01, %v535_v27  ;;  %v517_v40 = vld [vmem:[%s1344_s29 + $0xa8] sm:$0xff] }
  0x4c   : > { %v452_v36 = vmul.f32 0.99, %v388_v32  ;;  %v453_v37 = vmul.f32 0.99, %v389_v33  ;;  %1121 = vmatprep.subr.bf16.mxu1 %v815_v28  ;;  %700 = vst.msk [vmem:[%s1354_s15 + $0x30] sm:$0xff] %vm693_vm1, %v630_v29  ;;  %v420_v42 = vld [vmem:[%s1349_s11 + $0x1a0] sm:$0xff] }
  0x4d   : > { %701 = vst.msk [vmem:[%s1354_s15 + $0x38] sm:$0xff] %vm693_vm1, %v631_v30  ;;  %v791_v38 = vpack.c.bf16 %v631_v30, %v630_v29  ;;  %v662_v39 = vadd.f32 %v598_v31, %v470_v23  ;;  %v580_v41 = vmul.f32 0.01, %v516_v34  ;;  %v421_v43 = vld [vmem:[%s1349_s11 + $0x1a8] sm:$0xff]  ;;  %v663_v44 = vadd.f32 %v599_v35, %v471_v25  ;;  %v548_v49 = vld [vmem:[%s1344_s29 + $0x1a0] sm:$0xff]  ;;  %v386_v12 = vld [vmem:[%s1349_s11 + $0x90] sm:$0xff] }
  0x4e   : > { %v581_v45 = vmul.f32 0.01, %v517_v40  ;;  %v484_v46 = vmul.f32 0.99, %v420_v42  ;;  %v485_v47 = vmul.f32 0.99, %v421_v43  ;;  %v767_v31 = vlaneseq }
  0x4f   : > { %1100 = vmatpush3.bf16.msra.mxu0 %v791_v38  ;;  %732 = vst.msk [vmem:[%s1354_s15 + $0x130] sm:$0xff] %vm693_vm1, %v662_v39  ;;  %v644_v48 = vadd.f32 %v580_v41, %v452_v36  ;;  %v549_v50 = vld [vmem:[%s1344_s29 + $0x1a8] sm:$0xff]  ;;  %v372_v51 = vld [vmem:[%s1349_s11 + $0x20] sm:$0xff]  ;;  %733 = vst.msk [vmem:[%s1354_s15 + $0x138] sm:$0xff] %vm693_vm1, %v663_v44  ;;  %v807_v52 = vpack.c.bf16 %v663_v44, %v662_v39  ;;  %v612_v54 = vmul.f32 0.01, %v548_v49 }
  0x50   : > { %v645_v53 = vadd.f32 %v581_v45, %v453_v37  ;;  %v613_v55 = vmul.f32 0.01, %v549_v50  ;;  %v373_v56 = vld [vmem:[%s1349_s11 + $0x28] sm:$0xff]  ;;  %v500_v57 = vld [vmem:[%s1344_s29 + $0x20] sm:$0xff]  ;;  %v436_v58 = vmul.f32 0.99, %v372_v51 }
  0x51   : > { %714 = vst.msk [vmem:[%s1354_s15 + $0xa0] sm:$0xff] %vm693_vm1, %v644_v48  ;;  %v437_v59 = vmul.f32 0.99, %v373_v56  ;;  %v501_v60 = vld [vmem:[%s1344_s29 + $0x28] sm:$0xff]  ;;  %v404_v61 = vld [vmem:[%s1349_s11 + $0x120] sm:$0xff]  ;;  %1122 = vmatpush3.bf16.msra.mxu1 %v807_v52  ;;  %v676_v63 = vadd.f32 %v612_v54, %v484_v46  ;;  %v387_v13 = vld [vmem:[%s1349_s11 + $0x98] sm:$0xff] }
  0x52   : > { %715 = vst.msk [vmem:[%s1354_s15 + $0xa8] sm:$0xff] %vm693_vm1, %v645_v53  ;;  %v798_v62 = vpack.c.bf16 %v645_v53, %v644_v48  ;;  %v677_v0 = vadd.f32 %v613_v55, %v485_v47  ;;  %v564_v1 = vmul.f32 0.01, %v500_v57  ;;  %v405_v2 = vld [vmem:[%s1349_s11 + $0x128] sm:$0xff]  ;;  %v532_v3 = vld [vmem:[%s1344_s29 + $0x120] sm:$0xff]  ;;  %v514_v17 = vld [vmem:[%s1344_s29 + $0x90] sm:$0xff] }
  0x53   : > { %v533_v4 = vld [vmem:[%s1344_s29 + $0x128] sm:$0xff]  ;;  %v565_v5 = vmul.f32 0.01, %v501_v60  ;;  %v468_v6 = vmul.f32 0.99, %v404_v61  ;;  %746 = vst.msk [vmem:[%s1354_s15 + $0x1a0] sm:$0xff] %vm693_vm1, %v676_v63 }
  0x54   : > { %v469_v7 = vmul.f32 0.99, %v405_v2  ;;  %1101 = vmatprep.subr.bf16.mxu0 %v798_v62  ;;  %747 = vst.msk [vmem:[%s1354_s15 + $0x1a8] sm:$0xff] %vm693_vm1, %v677_v0  ;;  %v814_v8 = vpack.c.bf16 %v677_v0, %v676_v63  ;;  %v628_v9 = vadd.f32 %v564_v1, %v436_v58  ;;  %v596_v10 = vmul.f32 0.01, %v532_v3  ;;  %v515_v18 = vld [vmem:[%s1344_s29 + $0x98] sm:$0xff] }
  0x55   : > { %v597_v11 = vmul.f32 0.01, %v533_v4  ;;  %v629_v14 = vadd.f32 %v565_v5, %v437_v59  ;;  %v450_v15 = vmul.f32 0.99, %v386_v12  ;;  %v451_v16 = vmul.f32 0.99, %v387_v13 }
  0x56   : > { %1123 = vmatprep.subr.bf16.mxu1 %v814_v8  ;;  %698 = vst.msk [vmem:[%s1354_s15 + $0x20] sm:$0xff] %vm693_vm1, %v628_v9  ;;  %v660_v19 = vadd.f32 %v596_v10, %v468_v6  ;;  %v578_v21 = vmul.f32 0.01, %v514_v17  ;;  %v579_v22 = vmul.f32 0.01, %v515_v18  ;;  %v418_v23 = vld [vmem:[%s1349_s11 + $0x190] sm:$0xff] }
  0x57   : > { %v661_v20 = vadd.f32 %v597_v11, %v469_v7  ;;  %v419_v25 = vld [vmem:[%s1349_s11 + $0x198] sm:$0xff]  ;;  %699 = vst.msk [vmem:[%s1354_s15 + $0x28] sm:$0xff] %vm693_vm1, %v629_v14  ;;  %v790_v26 = vpack.c.bf16 %v629_v14, %v628_v9  ;;  %v482_v27 = vmul.f32 0.99, %v418_v23  ;;  %v546_v29 = vld [vmem:[%s1344_s29 + $0x190] sm:$0xff]  ;;  %v384_v57 = vld [vmem:[%s1349_s11 + $0x80] sm:$0xff] }
  0x58   : > { %v483_v28 = vmul.f32 0.99, %v419_v25  ;;  %v547_v30 = vld [vmem:[%s1344_s29 + $0x198] sm:$0xff]  ;;  %730 = vst.msk [vmem:[%s1354_s15 + $0x120] sm:$0xff] %vm693_vm1, %v660_v19  ;;  %v642_v33 = vadd.f32 %v578_v21, %v450_v15  ;;  %v643_v34 = vadd.f32 %v579_v22, %v451_v16  ;;  %v610_v35 = vmul.f32 0.01, %v546_v29 }
  0x59   : > { %731 = vst.msk [vmem:[%s1354_s15 + $0x128] sm:$0xff] %vm693_vm1, %v661_v20  ;;  %v806_v32 = vpack.c.bf16 %v661_v20, %v660_v19  ;;  %v370_v36 = vld [vmem:[%s1349_s11 + $0x10] sm:$0xff]  ;;  %v371_v37 = vld [vmem:[%s1349_s11 + $0x18] sm:$0xff]  ;;  %1102 = vmatpush3.bf16.msra.mxu0 %v790_v26  ;;  %v611_v39 = vmul.f32 0.01, %v547_v30  ;;  %v1582_v58 = vshrl.u32 %v767_v31, 7 }
  0x5a   : > { %v498_v38 = vld [vmem:[%s1344_s29 + $0x10] sm:$0xff]  ;;  %v434_v40 = vmul.f32 0.99, %v370_v36  ;;  %v435_v41 = vmul.f32 0.99, %v371_v37  ;;  %712 = vst.msk [vmem:[%s1354_s15 + $0x90] sm:$0xff] %vm693_vm1, %v642_v33  ;;  %v797_v42 = vpack.c.bf16 %v643_v34, %v642_v33  ;;  %v674_v43 = vadd.f32 %v610_v35, %v482_v27 }
  0x5b   : > { %1124 = vmatpush3.bf16.msra.mxu1 %v806_v32  ;;  %713 = vst.msk [vmem:[%s1354_s15 + $0x98] sm:$0xff] %vm693_vm1, %v643_v34  ;;  %v499_v44 = vld [vmem:[%s1344_s29 + $0x18] sm:$0xff]  ;;  %v562_v45 = vmul.f32 0.01, %v498_v38  ;;  %v402_v46 = vld [vmem:[%s1349_s11 + $0x110] sm:$0xff]  ;;  %v675_v50 = vadd.f32 %v611_v39, %v483_v28  ;;  %v385_v63 = vld [vmem:[%s1349_s11 + $0x88] sm:$0xff] }
  0x5c   : > { %v403_v47 = vld [vmem:[%s1349_s11 + $0x118] sm:$0xff]  ;;  %v1254_v48 = vmov 1983009808   ;;  %v563_v51 = vmul.f32 0.01, %v499_v44  ;;  %1103 = vmatprep.subr.bf16.mxu0 %v797_v42  ;;  %744 = vst.msk [vmem:[%s1354_s15 + $0x190] sm:$0xff] %vm693_vm1, %v674_v43 }
  0x5d   : > { %v765_v49 = vunpack.c.l.s4 %v1254_v48  ;;  %v466_v52 = vmul.f32 0.99, %v402_v46  ;;  %v467_v53 = vmul.f32 0.99, %v403_v47  ;;  %v626_v54 = vadd.f32 %v562_v45, %v434_v40  ;;  %v530_v55 = vld [vmem:[%s1344_s29 + $0x110] sm:$0xff]  ;;  %v531_v56 = vld [vmem:[%s1344_s29 + $0x118] sm:$0xff] }
  0x5e   : > { %745 = vst.msk [vmem:[%s1354_s15 + $0x198] sm:$0xff] %vm693_vm1, %v675_v50  ;;  %v813_v59 = vpack.c.bf16 %v675_v50, %v674_v43  ;;  %v627_v60 = vadd.f32 %v563_v51, %v435_v41  ;;  %v594_v61 = vmul.f32 0.01, %v530_v55  ;;  %v595_v62 = vmul.f32 0.01, %v531_v56  ;;  %v512_v0 = vld [vmem:[%s1344_s29 + $0x80] sm:$0xff] }
  0x5f   : > { %696 = vst.msk [vmem:[%s1354_s15 + $0x10] sm:$0xff] %vm693_vm1, %v626_v54  ;;  %v448_v1 = vmul.f32 0.99, %v384_v57  ;;  %v449_v2 = vmul.f32 0.99, %v385_v63  ;;  %v513_v3 = vld [vmem:[%s1344_s29 + $0x88] sm:$0xff]  ;;  %v766_v5 = vunpack.c.0.s8 %v765_v49 }
  0x60   : > { %v416_v4 = vld [vmem:[%s1349_s11 + $0x180] sm:$0xff]  ;;  %1125 = vmatprep.subr.bf16.mxu1 %v813_v59  ;;  %697 = vst.msk [vmem:[%s1354_s15 + $0x18] sm:$0xff] %vm693_vm1, %v627_v60  ;;  %v789_v6 = vpack.c.bf16 %v627_v60, %v626_v54  ;;  %v658_v7 = vadd.f32 %v594_v61, %v466_v52  ;;  %v659_v8 = vadd.f32 %v595_v62, %v467_v53  ;;  %v576_v9 = vmul.f32 0.01, %v512_v0  ;;  %v417_v10 = vld [vmem:[%s1349_s11 + $0x188] sm:$0xff] }
  0x61   : > { %v544_v11 = vld [vmem:[%s1344_s29 + $0x180] sm:$0xff]  ;;  %v545_v12 = vld [vmem:[%s1344_s29 + $0x188] sm:$0xff]  ;;  %v577_v13 = vmul.f32 0.01, %v513_v3  ;;  %v480_v14 = vmul.f32 0.99, %v416_v4  ;;  %v769_v28 = vsub.s32 %v766_v5, %v1582_v58 }
  0x62   : > { %v481_v15 = vmul.f32 0.99, %v417_v10  ;;  %1104 = vmatpush3.bf16.msra.mxu0 %v789_v6  ;;  %728 = vst.msk [vmem:[%s1354_s15 + $0x110] sm:$0xff] %vm693_vm1, %v658_v7  ;;  %729 = vst.msk [vmem:[%s1354_s15 + $0x118] sm:$0xff] %vm693_vm1, %v659_v8  ;;  %v805_v16 = vpack.c.bf16 %v659_v8, %v658_v7  ;;  %v640_v17 = vadd.f32 %v576_v9, %v448_v1  ;;  %v608_v18 = vmul.f32 0.01, %v544_v11 }
  0x63   : > { %v609_v19 = vmul.f32 0.01, %v545_v12  ;;  %v368_v20 = vld [vmem:[%s1349_s11] sm:$0xff]  ;;  %v369_v21 = vld [vmem:[%s1349_s11 + $0x8] sm:$0xff]  ;;  %v641_v22 = vadd.f32 %v577_v13, %v449_v2 }
  0x64   : > { %v432_v23 = vmul.f32 0.99, %v368_v20  ;;  %v433_v25 = vmul.f32 0.99, %v369_v21  ;;  %v496_v26 = vld [vmem:[%s1344_s29] sm:$0xff]  ;;  %v497_v27 = vld [vmem:[%s1344_s29 + $0x8] sm:$0xff]  ;;  %1126 = vmatpush3.bf16.msra.mxu1 %v805_v16  ;;  %v672_v29 = vadd.f32 %v608_v18, %v480_v14 }
  0x65   : > { %710 = vst.msk [vmem:[%s1354_s15 + $0x80] sm:$0xff] %vm693_vm1, %v640_v17  ;;  %v673_v30 = vadd.f32 %v609_v19, %v481_v15  ;;  %v560_v31 = vmul.f32 0.01, %v496_v26  ;;  %v561_v32 = vmul.f32 0.01, %v497_v27  ;;  %v400_v33 = vld [vmem:[%s1349_s11 + $0x100] sm:$0xff]  ;;  %v796_v35 = vpack.c.bf16 %v641_v22, %v640_v17 }
  0x66   : > { %v401_v34 = vld [vmem:[%s1349_s11 + $0x108] sm:$0xff]  ;;  %711 = vst.msk [vmem:[%s1354_s15 + $0x88] sm:$0xff] %vm693_vm1, %v641_v22  ;;  %v464_v36 = vmul.f32 0.99, %v400_v33  ;;  %v528_v38 = vld [vmem:[%s1344_s29 + $0x100] sm:$0xff]  ;;  %742 = vst.msk [vmem:[%s1354_s15 + $0x180] sm:$0xff] %vm693_vm1, %v672_v29 }
  0x67   : > { %v465_v37 = vmul.f32 0.99, %v401_v34  ;;  %v529_v39 = vld [vmem:[%s1344_s29 + $0x108] sm:$0xff]  ;;  %743 = vst.msk [vmem:[%s1354_s15 + $0x188] sm:$0xff] %vm693_vm1, %v673_v30  ;;  %v812_v40 = vpack.c.bf16 %v673_v30, %v672_v29  ;;  %v624_v41 = vadd.f32 %v560_v31, %v432_v23  ;;  %v625_v42 = vadd.f32 %v561_v32, %v433_v25  ;;  %v760_v44 = vld [vmem:[%s1339_s20] sm:$0xff]  ;;  %1105 = vmatprep.subr.bf16.mxu0 %v796_v35 }
  0x68   : > { %v592_v43 = vmul.f32 0.01, %v528_v38  ;;  %v593_v45 = vmul.f32 0.01, %v529_v39  ;;  %v770_v46 = vrot.slane %v760_v44, %v769_v28  ;;  %v763_v47 = vcombine.high %v760_v44, %v760_v44  ;;  %v761_v3 = vld [vmem:[#allocation2] sm:$0x3] }
  0x69   : > { %1127 = vmatprep.subr.bf16.mxu1 %v812_v40  ;;  %694 = vst.msk [vmem:[%s1354_s15] sm:$0xff] %vm693_vm1, %v624_v41  ;;  %695 = vst.msk [vmem:[%s1354_s15 + $0x8] sm:$0xff] %vm693_vm1, %v625_v42  ;;  %v788_v48 = vpack.c.bf16 %v625_v42, %v624_v41 }
  0x6a   : > { %v656_v49 = vadd.f32 %v592_v43, %v464_v36  ;;  %v657_v50 = vadd.f32 %v593_v45, %v465_v37  ;;  %v778_v51 = vcombine.high %v770_v46, %v770_v46  ;;  %v777_v52 = vrot.slane %v763_v47, %v769_v28 }
  0x6b   : > { %1106 = vmatpush3.bf16.msra.mxu0 %v788_v48  ;;  %v784_v53 = vpack.c.bf16 %v770_v46, %v770_v46 }
  0x6c   : > { %726 = vst.msk [vmem:[%s1354_s15 + $0x100] sm:$0xff] %vm693_vm1, %v656_v49  ;;  %727 = vst.msk [vmem:[%s1354_s15 + $0x108] sm:$0xff] %vm693_vm1, %v657_v50  ;;  %v804_v54 = vpack.c.bf16 %v657_v50, %v656_v49  ;;  %v785_v55 = vpack.c.bf16 %v778_v51, %v778_v51  ;;  %v779_v56 = vcombine.high %v777_v52, %v777_v52 }
  0x6d   : > { %v786_v57 = vpack.c.bf16 %v777_v52, %v777_v52 }
  0x6e   : > { %1128 = vmatpush3.bf16.msra.mxu1 %v804_v54  ;;  %852 = vmatprep.mubr.bf16.mxu0 %v785_v55  ;;  %v787_v59 = vpack.c.bf16 %v779_v56, %v779_v56 }
  0x6f   : > { %853 = vmatmul.mubr.bf16.vlgmr.msra.gmra.mxu0 %v784_v53 }
  0x70   : > { %892 = vmatprep.mubr.bf16.mxu1 %v787_v59 }
  0x71   : > { %893 = vmatmul.mubr.bf16.vlgmr.msra.gmra.mxu1 %v786_v57 }
 0x12f   : > { %v1107_v60 = vpop.f32.mrf.mxu0 }
 0x131   : > { %v1129_v61 = vpop.f32.mrf.mxu1  ;;  %v1108_v62 = vpop.f32.mrf.mxu0 }
 0x132   : > { %v1109_v63 = vadd.f32 %v1108_v62, %v1107_v60 }
 0x133   : > { %v1130_v0 = vpop.f32.mrf.mxu1  ;;  %v1110_v1 = vpop.f32.mrf.mxu0 }
 0x134   : > { %v1131_v2 = vadd.f32 %v1130_v0, %v1129_v61 }
 0x135   : > { %v1132_v4 = vpop.f32.mrf.mxu1  ;;  %v1111_v5 = vpop.f32.mrf.mxu0 }
 0x136   : > { %v895_v6 = vadd.f32 %v1131_v2, %v1109_v63  ;;  %906 = sbr.rel (%p1086_p9) target bundleno = 327 (0x147), region = 48 }
 0x137   : > { %v1133_v7 = vpop.f32.mrf.mxu1 }
 0x138   : > { %v900_v8 = vadd.f32 %v895_v6, %v761_v3 }
 0x13a   : > { %902 = vst.msk [vmem:[#allocation2] sm:$0x3] %vm901_vm3, %v900_v8 }
 0x13b   : > { %v911_v9 = vsub.s32 0, %v1582_v58 }
 0x13d   : > { %v912_v11 = vrot.slane %v1372_v24, %v911_v9 }
 0x141   : > { %v907_v10 = vld [vmem:[#allocation2] sm:$0x3] }
 0x142   : > { %v914_v12 = vadd.f32 %v912_v11, %v907_v10 }
 0x144   : > { %v915_v13 = vmax.f32 %v914_v12, 0.0 }
 0x146   : > { %916 = vst.msk [vmem:[%s1334_s17] sm:$0x3] %vm901_vm3, %v915_v13 }
 0x147 PF: > { %s1671_s29 = sadd.s32 4294967295, %s1251_s28   ;;  %s1255_s20 = smov [#allocation3]  }
 0x148   : > { %p1633_p10 = scmp.eq.s32.totalorder %s1671_s29, 3  ;;  %s940_s24 = sshll.u32 %s1255_s20, 4  ;;  %s941_s24 = int_to_ptr.vmem [resolvable:$true] %s940_s24 }
 0x149   : > { %s1185_s21 = scalar_lea.vmem %s941_s24, 16  ;;  %s1191_s22 = scalar_lea.vmem %s941_s24, 32 }
 0x14a   : > { %p1186_p11 = scmp.ne.s32.totalorder %s941_s24, %s1185_s21  ;;  %p1192_p0 = scmp.lt.s32.totalorder %s941_s24, %s941_s24 }
 0x14b   : > { %p1193_p1 = scmp.lt.s32.totalorder %s1191_s22, %s1185_s21 }
 0x14c   : > { %p1187_p12 = pnand %p1186_p11, %p1633_p10 }
 0x14d   : > { %p1194_p2 = por %p1193_p1, %p1192_p0 }
 0x14e   : > { %p1188_p13 = pneg %p1187_p12 }
 0x150   : > { %p1195_p3 = pnand %p1194_p2, %p1188_p13 }
 0x152   : > { %1198 = shalt.err (!%p1195_p3)
}
 0x153   : > { %1136 = dma.vmem_to_hbm [thread:$0]  (%p1633_p10), %s941_s24, 16, %s1670_s7, [#allocation4]  }
 0x154   : > { %1230 = dma.done.wait (%p1633_p10), [#allocation4], 16  }
 0x155   : > { %1232 = vsyncadd (%p1633_p10), [#allocation4], 4294967280 }
 0x156 PF: > { %s19_s28 = sadd.s32 1, %s1251_s28   ;;  %s1673_s24 = smov %s1243_s26 }
 0x157   : > { %p16_p4 = scmp.ge.s32.totalorder %s19_s28, 6   ;;  %s1674_s25 = smov %s1247_s27 }
 0x158   : > { %s1675_s26 = smov %s1678_s30  ;;  %s1676_s27 = smov %s1682_s8 }
 0x159   :  { %18 = sbr.rel (!%p16_p4) target bundleno = 3 (0x3), region = 105 }
 0x15e   :  { %968 = vsyncpa [#allocation4], 1 }
 0x15f   :  { %970 = vsyncpa [#allocation4 + $0x1], 1 }

// kernel: byol_forward.9
= control target key start
LH: loop header
LB: loop body
LE: loop exit
PB: predicated region body
PF: predicated region fallthrough
CT: control target
= control target key end

     0   :  { %s923_s27 = smov 0   ;;  %s925_s28 = smov 0   ;;  %s1019_s0 = inlined_call_operand.vmem [shape: f32[2,2,16], index: 0, kind: input, shape index: {}]   ;;  %s1020_s1 = inlined_call_operand.vmem [shape: f32[16,64], index: 1, kind: input, shape index: {}]   ;;  %s1021_s2 = inlined_call_operand.vmem [shape: f32[1,64], index: 2, kind: input, shape index: {}]   ;;  %s1022_s3 = inlined_call_operand.vmem [shape: f32[1,64], index: 3, kind: input, shape index: {}]   ;;  %s1023_s4 = inlined_call_operand.vmem [shape: f32[1,64], index: 4, kind: input, shape index: {}]   ;;  %s1024_s5 = inlined_call_operand.vmem [shape: f32[64,16], index: 5, kind: input, shape index: {}]   ;;  %s1025_s6 = inlined_call_operand.vmem [shape: f32[1,16], index: 6, kind: input, shape index: {}]   ;;  %s1026_s7 = inlined_call_operand.vmem [shape: f32[2,2,16], index: 7, kind: input, shape index: {}]   ;;  %s1027_s8 = inlined_call_operand.vmem [shape: f32[2,2,16], index: 8, kind: output, shape index: {}]  }
   0x1   :  { %s927_s29 = smov 0  }
   0x2 LB: > { %s30_s30 = sadd.s32 1, %s870_s28  ;;  %p779_p0 = scmp.ge.s32.totalorder %s874_s29, 1  ;;  %s874_s29 = sphi %s927_s29, %s18_s29   ;;  %s870_s28 = sphi %s925_s28, %s1029_s28   ;;  %s866_s27 = sphi %s923_s27, %s1028_s27  }
   0x3   : > { %p32_p1 = scmp.ge.s32.totalorder %s30_s30, 2  ;;  %p330_p2 = scmp.lt.s32.totalorder %s874_s29, 3 }
   0x5   : > { %s1031_s30 = smov (%p32_p1, %s30_s30), 0  ;;  %p331_p3 = pnand %p779_p0, %p330_p2 }
   0x6   : > { %p385_p4 = scmp.lt.s32.totalorder (!%p331_p3), %s866_s27, 1  ;;  %s408_s24 = ssub.s32 (!%p331_p3), 1, %s866_s27 }
   0x7   : > { %334 = sbr.rel (%p331_p3) target bundleno = 806 (0x326), region = 52  ;;  %p409_p5 = scmp.lt.s32.totalorder (!%p331_p3), %s408_s24, 1 }
   0xc   : > { %v425_v0 = vld [vmem:[%s1020_s1] sm:$0xff]  ;;  %v426_v1 = vld [vmem:[%s1020_s1 + $0x8] sm:$0xff]  ;;  %v876_v2 = vmov 0.0   ;;  %vm877_vm0 = vmmov 0   ;;  %s951_s13 = scalar_select %p385_p4, %s866_s27, 1  ;;  %vm448_vm1 = vcmask 130048  }
   0xd   : > { %798 = vmatprep.subr.bf16.mxu0 %v876_v2  ;;  %v441_v3 = vpack.c.bf16 %v426_v1, %v425_v0  ;;  %800 = vmatprep.mubr.msk.bf16.mxu0 %vm877_vm0, %v876_v2  ;;  %v436_v6 = vld [vmem:[%s1024_s5 + $0x30] sm:$0xff]  ;;  %v437_v7 = vld [vmem:[%s1024_s5 + $0x38] sm:$0xff]  ;;  %v434_v9 = vld [vmem:[%s1024_s5 + $0x20] sm:$0xff]  ;;  %vm423_vm2 = vcmask 123904   ;;  %vm492_vm3 = vcmask 517120   ;;  %vm536_vm4 = vcmask 523264  }
   0xe   : > { %804 = vmatprep.subr.bf16.mxu1 %v876_v2  ;;  %812 = vmatprep.mubr.msk.bf16.mxu1 %vm877_vm0, %v876_v2  ;;  %s780_s14 = sshll.u32 %s951_s13, 1  ;;  %v535_v8 = vpack.c.bf16 %v437_v7, %v436_v6  ;;  %v435_v10 = vld [vmem:[%s1024_s5 + $0x28] sm:$0xff]  ;;  %v432_v12 = vld [vmem:[%s1024_s5 + $0x10] sm:$0xff]  ;;  %v433_v13 = vld [vmem:[%s1024_s5 + $0x18] sm:$0xff]  ;;  %424 = vst.msk [vmem:[#allocation2] sm:$0x3] %vm423_vm2, %v876_v2 }
   0xf   : > { %799 = vmatpush3.bf16.msra.mxu0 %v441_v3  ;;  %s388_s17 = scalar_lea.vmem %s1019_s0, %s780_s14  ;;  %v534_v11 = vpack.c.bf16 %v435_v10, %v434_v9  ;;  %v533_v14 = vpack.c.bf16 %v433_v13, %v432_v12  ;;  %v430_v15 = vld [vmem:[%s1024_s5] sm:$0xff]  ;;  %v431_v16 = vld [vmem:[%s1024_s5 + $0x8] sm:$0xff]  ;;  %s1033_s24 = smov (!%p409_p5, %s408_s24), 1 }
  0x10   : > { %v439_v4 = vld [vmem:[%s388_s17] sm:$0x3]  ;;  %805 = vmatpush3.bf16.msra.mxu1 %v535_v8  ;;  %v532_v17 = vpack.c.bf16 %v431_v16, %v430_v15  ;;  %s781_s25 = sshll.u32 %s1033_s24, 1  ;;  %s417_s16 = scalar_lea.vmem %s1027_s8, %s780_s14 }
  0x11   : > { %v440_v5 = vpack.c.bf16 %v439_v4, %v439_v4  ;;  %806 = vmatprep.subr.bf16.mxu1 %v876_v2  ;;  %v783_v18 = vld [vmem:[%s1021_s2] ss:$0 sm:$0xff]  ;;  %s412_s10 = scalar_lea.vmem %s1026_s7, %s781_s25 }
  0x12   : > { %v785_v44 = vld [vmem:[%s1022_s3] ss:$0 sm:$0xff] }
  0x13   : > { %801 = vmatmul.mubr.msk.bf16.vlgmr.msra.gmra.mxu0 %vm448_vm1, %v440_v5  ;;  %v786_v46 = vld [vmem:[%s1023_s4] ss:$0 sm:$0xff] }
  0x14   : > { %807 = vmatpush3.bf16.msra.mxu1 %v534_v11  ;;  %v788_v57 = vld [vmem:[%s1025_s6] ss:$0 sm:$0xff] }
  0x15   : > { %808 = vmatprep.subr.bf16.mxu1 %v876_v2  ;;  %v530_v51 = vld [vmem:[#allocation2] sm:$0x3] }
  0x16   : > { %v594_v59 = vld [vmem:[%s412_s10] sm:$0x3] }
  0x17   : > { %v609_v62 = vmul.f32 %v594_v59, %v594_v59 }
  0x18   : > { %809 = vmatpush3.bf16.msra.mxu1 %v533_v14 }
  0x19   : > { %810 = vmatprep.subr.bf16.mxu1 %v876_v2  ;;  %v610_v0 = vsel %vm423_vm2, %v609_v62, 0.0 }
  0x1c   : > { %811 = vmatpush3.bf16.msra.mxu1 %v532_v17 }
  0xd3   : > { %v486_v19 = vpop.f32.mrf.mxu0 }
  0xd4   : > { %v487_v20 = vadd.f32 %v783_v18, %v486_v19 }
  0xd5   : > { %v802_v21 = vpop.f32.mrf.mxu0 }
  0xd6   : > { %v493_v22 = vsel %vm492_vm3, %v487_v20, 0.0 }
  0xd7   : > { %v494_v23 = vrot.slane %v493_v22, 4  ;;  %v489_v24 = vpop.f32.mrf.mxu0 }
  0xd9   : > { %v495_v25 = vadd.f32 %v494_v23, %v493_v22  ;;  %v803_v26 = vpop.f32.mrf.mxu0 }
  0xdb   : > { %v496_v27 = vrot.slane %v495_v25, 2 }
  0xdd   : > { %v497_v28 = vadd.f32 %v496_v27, %v495_v25 }
  0xdf   : > { %v498_v29 = vrot.slane %v497_v28, 1 }
  0xe1   : > { %v499_v30 = vadd.f32 %v498_v29, %v497_v28 }
  0xe3   : > { %v501_v31 = vmul.f32 0.5, %v499_v30 }
  0xe5   : > { %v502_v32 = vsub.f32 %v487_v20, %v501_v31 }
  0xe7   : > { %v503_v33 = vmul.f32 %v502_v32, %v502_v32 }
  0xe9   : > { %v504_v34 = vsel %vm492_vm3, %v503_v33, 0.0 }
  0xea   : > { %v505_v35 = vrot.slane %v504_v34, 4 }
  0xec   : > { %v506_v36 = vadd.f32 %v505_v35, %v504_v34 }
  0xee   : > { %v507_v37 = vrot.slane %v506_v36, 2 }
  0xf0   : > { %v508_v38 = vadd.f32 %v507_v37, %v506_v36 }
  0xf2   : > { %v509_v39 = vrot.slane %v508_v38, 1 }
  0xf4   : > { %v510_v40 = vadd.f32 %v509_v39, %v508_v38 }
  0xf6   : > { %v511_v41 = vmul.f32 0.5, %v510_v40 }
  0xf8   : > { %v512_v42 = vadd.f32 1e-05, %v511_v41 }
  0xfa   : > { %842 = vrsqrt.f32 %v512_v42 }
 0x107   : > { %v843_v43 = vpop.eup %842 }
 0x108   : > { %v514_v45 = vmul.f32 %v843_v43, %v502_v32 }
 0x10a   : > { %v521_v47 = vmul.f32 %v785_v44, %v514_v45 }
 0x10c   : > { %v528_v48 = vadd.f32 %v786_v46, %v521_v47 }
 0x10e   : > { %v529_v49 = vmax.f32 %v528_v48, 0.0 }
 0x110   : > { %v531_v50 = vpack.c.bf16 %v529_v49, %v529_v49 }
 0x112   : > { %813 = vmatmul.mubr.msk.bf16.vlgmr.msra.gmra.mxu1 %vm536_vm4, %v531_v50 }
 0x1d2   : > { %v574_v52 = vpop.f32.mrf.mxu1 }
 0x1d3   : > { %v580_v53 = vadd.f32 %v574_v52, %v530_v51 }
 0x1d4   : > { %v814_v54 = vpop.f32.mrf.mxu1 }
 0x1d5   : > { %582 = vst.msk [vmem:[#allocation2] sm:$0x3] %vm423_vm2, %v580_v53 }
 0x1d6   : > { %v577_v55 = vpop.f32.mrf.mxu1 }
 0x1d8   : > { %v815_v56 = vpop.f32.mrf.mxu1 }
 0x1dc   : > { %v586_v58 = vld [vmem:[#allocation2] sm:$0x3] }
 0x1dd   : > { %v593_v60 = vadd.f32 %v788_v57, %v586_v58 }
 0x1df   : > { %v595_v61 = vmul.f32 %v593_v60, %v593_v60 }
 0x1e1   : > { %v596_v63 = vsel %vm423_vm2, %v595_v61, 0.0 }
 0x1e2   : > { %597 = vadd.xlane.f32.xlu0 %v596_v63 }
 0x1e6   : > { %611 = vadd.xlane.f32.xlu0 %v610_v0 }
 0x26b   : > { %v598_v1 = vpop.xlane.xlu0 %597 }
 0x26c   : > { %844 = vrsqrt.f32 %v598_v1  ;;  %vm601_vm5 = vcmp.eq.f32.partialorder %v598_v1, inf  ;;  %v604_v5 = vand.u32 2147483648, %v598_v1  ;;  %vm603_vm6 = vcmp.eq.f32.partialorder %v598_v1, 0.0 }
 0x26f   : > { %v612_v2 = vpop.xlane.xlu0 %611 }
 0x270   : > { %846 = vrsqrt.f32 %v612_v2  ;;  %vm615_vm7 = vcmp.eq.f32.partialorder %v612_v2, inf  ;;  %v618_v11 = vand.u32 2147483648, %v612_v2  ;;  %vm617_vm8 = vcmp.eq.f32.partialorder %v612_v2, 0.0 }
 0x279   : > { %v845_v3 = vpop.eup %844 }
 0x27a   : > { %v600_v4 = vmul.f32 %v845_v3, %v598_v1 }
 0x27c   : > { %v602_v6 = vsel %vm601_vm5, %v598_v1, %v600_v4 }
 0x27d   : > { %v847_v7 = vpop.eup %846  ;;  %v605_v8 = vsel %vm603_vm6, %v604_v5, %v602_v6 }
 0x27e   : > { %v606_v9 = vmax.f32 %v605_v8, 1e-12  ;;  %v614_v10 = vmul.f32 %v847_v7, %v612_v2 }
 0x280   : > { %v616_v12 = vsel %vm615_vm7, %v612_v2, %v614_v10  ;;  %848 = vrcp.f32 %v606_v9 }
 0x281   : > { %v619_v13 = vsel %vm617_vm8, %v618_v11, %v616_v12 }
 0x282   : > { %v620_v14 = vmax.f32 %v619_v13, 1e-12 }
 0x284   : > { %850 = vrcp.f32 %v620_v14 }
 0x28d   : > { %v849_v15 = vpop.eup %848 }
 0x28e   : > { %v608_v17 = vmul.f32 %v849_v15, %v593_v60 }
 0x291   : > { %v851_v16 = vpop.eup %850 }
 0x292   : > { %v622_v18 = vmul.f32 %v851_v16, %v594_v59 }
 0x294   : > { %v623_v19 = vmul.f32 %v622_v18, %v608_v17 }
 0x296   : > { %v624_v20 = vsel %vm423_vm2, %v623_v19, 0.0 }
 0x297   : > { %625 = vadd.xlane.f32.xlu1 %v624_v20 }
 0x320   : > { %v626_v21 = vpop.xlane.xlu1 %625 }
 0x321   : > { %v627_v22 = vmul.f32 2.0, %v626_v21 }
 0x323   : > { %v628_v23 = vsub.f32 2.0, %v627_v22 }
 0x325   : > { %629 = vst.msk [vmem:[%s417_s16] sm:$0x3] %vm423_vm2, %v628_v23 }
 0x326 PF: > { %s18_s29 = sadd.s32 1, %s874_s29   ;;  %s1028_s27 = smov %s870_s28 }
 0x327   : > { %p15_p6 = scmp.ge.s32.totalorder %s18_s29, 4   ;;  %s1029_s28 = smov %s1031_s30 }
 0x329   :  { %17 = sbr.rel (!%p15_p6) target bundleno = 2 (0x2), region = 108 }

</bundles_post_ra>
